<compile_context>
chip_gen: v6e
topology: v6e:2x2x1
jax: 0.10.0
libtpu: 0.0.40
codegen_flags: <defaults>
</compile_context>

<pallas_src>
import functools

import jax
import jax.numpy as jnp
from jax import lax
from jax.experimental import pallas as pl
from jax.experimental.pallas import tpu as pltpu


def _round_up(x, m):
    return (x + m - 1) // m * m


def decoder_kernel(tf_ref, gates_dst_ref, emb_wih_ref, h0c_ref, wfc_ref, bfc_ref,
                   c0_ref, out_ref, gates_sc,
                   *, hidden_pad, vocab_pad, target_length):
    B = c0_ref.shape[0]
    Hp = hidden_pad
    Vp = vocab_pad

    emb_wih = emb_wih_ref[...]            # (Vp, 4Hp) fused emb @ W_ih^T (greedy path only)
    wfc = wfc_ref[...]                    # (Hp, Vp)
    c0 = c0_ref[...]                      # (B, Hp)
    h0c = h0c_ref[...]                    # (B, 4Hp) loop-invariant recurrent term
    # Hoisted broadcast: single materialization instead of one per unrolled step.
    bias = jnp.broadcast_to(bfc_ref[...], (B, Vp))       # padded lanes = -1e30

    col_iota = lax.broadcasted_iota(jnp.int32, (B, Vp), 1)

    # Initial input gates = gates for dst[:, 0] (precomputed in the wrapper).
    gates_sc[...] = gates_dst_ref[0]

    last = target_length - 1

    def step(i, _):
        gates = gates_sc[...]                                            # (B, 4Hp)
        i_g = jax.nn.sigmoid(gates[:, 0 * Hp:1 * Hp])
        f_g = jax.nn.sigmoid(gates[:, 1 * Hp:2 * Hp])
        g_g = jnp.tanh(gates[:, 2 * Hp:3 * Hp])
        o_g = jax.nn.sigmoid(gates[:, 3 * Hp:4 * Hp])
        c = f_g * c0 + i_g * g_g
        h = o_g * jnp.tanh(c)                                            # (B, Hp)

        # nn.Dropout(p=0.1) in eval mode == identity.
        logits = jnp.dot(h, wfc, preferred_element_type=jnp.float32) + bias   # (B, Vp)

        # Step-major, lane-dense store; issued before the argmax reductions.
        out_ref[i] = logits

        tf = tf_ref[i]                    # SMEM scalar
        not_last = i < last               # no next-input work on the final step

        # Teacher-forced next input: plain copy of precomputed gates (no MXU,
        # no dependency on this step's logits).
        @pl.when(jnp.logical_and(tf > 0, not_last))
        def _():
            gates_sc[...] = gates_dst_ref[i + 1]

        # Greedy next input: first-occurrence argmax -> one-hot -> fused
        # embedding+input-projection matmul.  Only on non-TF steps.
        @pl.when(jnp.logical_and(tf == 0, not_last))
        def _():
            m = jnp.max(logits, axis=1, keepdims=True)
            idx = jnp.min(jnp.where(logits == m, col_iota, Vp),
                          axis=1, keepdims=True).astype(jnp.int32)      # (B, 1)
            onehot = (col_iota == idx).astype(jnp.float32)               # (B, Vp)
            gates_sc[...] = jnp.dot(onehot, emb_wih,
                                    preferred_element_type=jnp.float32) + h0c
        return 0

    lax.fori_loop(0, target_length, step, 0, unroll=True)


def _decoder_forward_impl(dst, context, params, tf_flags):
    """dst: (B, T) int32; context: (h0, c0) each (1, B, H); tf_flags: (T-1,) int32."""
    emb, w_ih, w_hh, b_ih, b_hh, w_fc, b_fc = params
    B, T = dst.shape
    V, E = emb.shape
    H = w_hh.shape[1]
    target_length = T - 1
    Hp = _round_up(H, 128)
    Vp = _round_up(V, 128)
    f32 = jnp.float32

    # ---- weight prep: pad H/V to 128-multiples, gate slabs [i|f|g|o] each Hp wide ----
    wih4 = jnp.pad(w_ih.astype(f32).reshape(4, H, E), ((0, 0), (0, Hp - H), (0, 0)))
    wih_t = jnp.transpose(wih4, (2, 0, 1)).reshape(E, 4 * Hp)                   # (E, 4Hp)

    emb_p = jnp.pad(emb.astype(f32), ((0, Vp - V), (0, 0)))                     # (Vp, E)
    # Fused embedding + input-projection table (used only on greedy steps).
    emb_wih = jnp.dot(emb_p, wih_t)                                             # (Vp, 4Hp)

    whh4 = jnp.pad(w_hh.astype(f32).reshape(4, H, H),
                   ((0, 0), (0, Hp - H), (0, Hp - H)))
    whh_t = jnp.transpose(whh4, (2, 0, 1)).reshape(Hp, 4 * Hp)                  # (Hp, 4Hp)

    b = jnp.pad((b_ih + b_hh).astype(f32).reshape(4, H),
                ((0, 0), (0, Hp - H))).reshape(1, 4 * Hp)                       # (1, 4Hp)

    wfc_t = jnp.pad(jnp.transpose(w_fc).astype(f32),
                    ((0, Hp - H), (0, Vp - V)))                                 # (Hp, Vp)
    bfc = jnp.pad(b_fc.astype(f32), ((0, Vp - V),),
                  constant_values=-1e30).reshape(1, Vp)                         # pad lanes lose argmax

    h0 = jnp.pad(context[0].reshape(B, H).astype(f32), ((0, 0), (0, Hp - H)))
    c0 = jnp.pad(context[1].reshape(B, H).astype(f32), ((0, 0), (0, Hp - H)))

    # (perf) loop-invariant recurrent contribution, hoisted out of the kernel.
    h0_contrib = jnp.dot(h0, whh_t) + b                                         # (B, 4Hp)

    # (perf) batched precompute of input gates for every ground-truth token that
    # can be fed (dst[:, 0..T-2]); teacher-forced steps need no in-kernel matmul.
    dst_steps = jnp.transpose(dst[:, :target_length]).astype(jnp.int32)         # (T-1, B)
    x_dst = jnp.take(emb_p, dst_steps, axis=0)                                  # (T-1, B, E)
    gates_dst = jnp.einsum('tbe,eg->tbg', x_dst, wih_t) + h0_contrib[None]      # (T-1, B, 4Hp)

    kernel = functools.partial(decoder_kernel, hidden_pad=Hp, vocab_pad=Vp,
                               target_length=target_length)

    flops = target_length * 2 * (B * Hp * Vp + B * Vp * 4 * Hp)
    transcendentals = target_length * 5 * B * Hp
    bytes_accessed = 4 * (gates_dst.size + emb_wih.size + h0_contrib.size
                          + wfc_t.size + bfc.size + c0.size + tf_flags.size
                          + target_length * B * Vp)

    out = pl.pallas_call(
        kernel,
        out_shape=jax.ShapeDtypeStruct((target_length, B, Vp), jnp.float32),
        in_specs=[pl.BlockSpec(memory_space=pltpu.MemorySpace.SMEM)]            # tf flags
                 + [pl.BlockSpec(memory_space=pltpu.MemorySpace.VMEM)] * 6,
        out_specs=pl.BlockSpec(memory_space=pltpu.MemorySpace.VMEM),
        scratch_shapes=[pltpu.VMEM((B, 4 * Hp), jnp.float32)],                  # current input gates
        cost_estimate=pl.CostEstimate(flops=flops,
                                      transcendentals=transcendentals,
                                      bytes_accessed=bytes_accessed),
    )(tf_flags.astype(jnp.int32), gates_dst, emb_wih, h0_contrib, wfc_t, bfc, c0)

    # Back to batch-major (B, T-1, V), drop lane padding.
    return jnp.transpose(out, (1, 0, 2))[:, :, :V]


decoder_forward = jax.jit(_decoder_forward_impl)


def decoder_reference(dst, context, params, tf_flags):
    """Pure-JAX reference mirroring the PyTorch forward (eval-mode dropout)."""
    emb, w_ih, w_hh, b_ih, b_hh, w_fc, b_fc = params
    B, T = dst.shape
    H = w_hh.shape[1]
    h0 = context[0].reshape(B, H)
    c0 = context[1].reshape(B, H)
    inp = dst[:, 0]
    res = []
    for i in range(T - 1):
        x = emb[inp]                                             # (B, E)
        gates = x @ w_ih.T + b_ih + h0 @ w_hh.T + b_hh
        i_g = jax.nn.sigmoid(gates[:, 0:H])
        f_g = jax.nn.sigmoid(gates[:, H:2 * H])
        g_g = jnp.tanh(gates[:, 2 * H:3 * H])
        o_g = jax.nn.sigmoid(gates[:, 3 * H:4 * H])
        c = f_g * c0 + i_g * g_g
        h = o_g * jnp.tanh(c)
        logits = h @ w_fc.T + b_fc
        res.append(logits[:, None, :])
        inp = jnp.where(tf_flags[i] > 0, dst[:, i + 1], jnp.argmax(logits, axis=1))
    return jnp.concatenate(res, axis=1)


def init_params(key, vocab_size, padding_idx, embedding_size, hidden_size):
    ks = jax.random.split(key, 7)
    s = 0.1
    emb = s * jax.random.normal(ks[0], (vocab_size, embedding_size), jnp.float32)
    emb = emb.at[padding_idx].set(0.0)                           # padding_idx row = 0
    w_ih = s * jax.random.normal(ks[1], (4 * hidden_size, embedding_size), jnp.float32)
    w_hh = s * jax.random.normal(ks[2], (4 * hidden_size, hidden_size), jnp.float32)
    b_ih = s * jax.random.normal(ks[3], (4 * hidden_size,), jnp.float32)
    b_hh = s * jax.random.normal(ks[4], (4 * hidden_size,), jnp.float32)
    w_fc = s * jax.random.normal(ks[5], (vocab_size, hidden_size), jnp.float32)
    b_fc = s * jax.random.normal(ks[6], (vocab_size,), jnp.float32)
    return (emb, w_ih, w_hh, b_ih, b_hh, w_fc, b_fc)


if __name__ == "__main__":
    B, T = 8, 9                       # target_length = 8 decode steps
    vocab_size, padding_idx = 64, 0   # padded to 128 lanes inside the wrapper
    embedding_size, hidden_size = 32, 64
    teacher_forcing_ratio = 0.5

    key = jax.random.PRNGKey(0)
    k_par, k_dst, k_ctx, k_tf = jax.random.split(key, 4)

    params = init_params(k_par, vocab_size, padding_idx, embedding_size, hidden_size)
    dst = jax.random.randint(k_dst, (B, T), 0, vocab_size, jnp.int32)
    kh, kc = jax.random.split(k_ctx)
    context = (jax.random.normal(kh, (1, B, hidden_size), jnp.float32),
               jax.random.normal(kc, (1, B, hidden_size), jnp.float32))
    # per-step teacher-forcing decisions (analog of torch.rand(1) < ratio per step)
    tf_flags = (jax.random.uniform(k_tf, (T - 1,)) < teacher_forcing_ratio).astype(jnp.int32)

    out = decoder_forward(dst, context, params, tf_flags)
    out = jax.block_until_ready(out)

    ref = decoder_reference(dst, context, params, tf_flags)
    assert out.shape == (B, T - 1, vocab_size)
    assert jnp.allclose(out, ref, rtol=1e-5, atol=2e-5), "mismatch vs pure-JAX reference"

    print("KERNEL_OK")
</pallas_src>

<mosaic_0001>
module attributes {stable_mosaic.version = 11 : i64} {
  func.func @decoder_kernel(%arg0: memref<8xi32, #tpu.memory_space<smem>>, %arg1: memref<8x8x512xf32, #tpu.memory_space<vmem>>, %arg2: memref<128x512xf32, #tpu.memory_space<vmem>>, %arg3: memref<8x512xf32, #tpu.memory_space<vmem>>, %arg4: memref<128x128xf32, #tpu.memory_space<vmem>>, %arg5: memref<1x128xf32, #tpu.memory_space<vmem>>, %arg6: memref<8x128xf32, #tpu.memory_space<vmem>>, %arg7: memref<8x8x128xf32, #tpu.memory_space<vmem>>, %arg8: memref<8x512xf32, #tpu.memory_space<vmem>>) attributes {dimension_semantics = [], scalar_prefetch = 0 : i64, scratch_operands = 1 : i64, tpu.core_type = #tpu.core_type<tc>} {
    %c0 = arith.constant 0 : index
    %c0_0 = arith.constant 0 : index
    %0 = vector.load %arg2[%c0, %c0_0] : memref<128x512xf32, #tpu.memory_space<vmem>>, vector<128x512xf32>
    %c0_1 = arith.constant 0 : index
    %c0_2 = arith.constant 0 : index
    %1 = vector.load %arg4[%c0_1, %c0_2] : memref<128x128xf32, #tpu.memory_space<vmem>>, vector<128x128xf32>
    %c0_3 = arith.constant 0 : index
    %c0_4 = arith.constant 0 : index
    %2 = vector.load %arg6[%c0_3, %c0_4] : memref<8x128xf32, #tpu.memory_space<vmem>>, vector<8x128xf32>
    %c0_5 = arith.constant 0 : index
    %c0_6 = arith.constant 0 : index
    %3 = vector.load %arg3[%c0_5, %c0_6] : memref<8x512xf32, #tpu.memory_space<vmem>>, vector<8x512xf32>
    %c0_7 = arith.constant 0 : index
    %c0_8 = arith.constant 0 : index
    %4 = vector.load %arg5[%c0_7, %c0_8] : memref<1x128xf32, #tpu.memory_space<vmem>>, vector<1x128xf32>
    %5 = vector.shape_cast %4 : vector<1x128xf32> to vector<1x128xf32>
    %6 = vector.broadcast %5 : vector<1x128xf32> to vector<8x128xf32>
    %7 = tpu.iota {dimensions = array<i32: 1>} : vector<8x128xi32>
    %c0_9 = arith.constant 0 : index
    %c0_10 = arith.constant 0 : index
    %c0_11 = arith.constant 0 : index
    %8 = vector.load %arg1[%c0_9, %c0_10, %c0_11] : memref<8x8x512xf32, #tpu.memory_space<vmem>>, vector<1x8x512xf32>
    %9 = vector.shape_cast %8 : vector<1x8x512xf32> to vector<8x512xf32>
    %c0_12 = arith.constant 0 : index
    %c0_13 = arith.constant 0 : index
    %10 = vector.load %arg8[%c0_12, %c0_13] : memref<8x512xf32, #tpu.memory_space<vmem>>, vector<8x512xf32>
    tpu.vector_store %arg8[%c0_12, %c0_13], %9 {strides = array<i32>} : memref<8x512xf32, #tpu.memory_space<vmem>>, vector<8x512xf32>,
    %c0_i32 = arith.constant 0 : i32
    %c0_14 = arith.constant 0 : index
    %c0_15 = arith.constant 0 : index
    %11 = vector.load %arg8[%c0_14, %c0_15] : memref<8x512xf32, #tpu.memory_space<vmem>>, vector<8x512xf32>
    %12 = vector.extract_strided_slice %11 {offsets = [0, 0], sizes = [8, 128], strides = [1, 1]} : vector<8x512xf32> to vector<8x128xf32>
    %13 = arith.negf %12 : vector<8x128xf32>
    %14 = math.exp %13 : vector<8x128xf32>
    %cst = arith.constant 1.000000e+00 : f32
    %15 = vector.broadcast %cst : f32 to vector<8x128xf32>
    %16 = arith.addf %15, %14 : vector<8x128xf32>
    %17 = arith.divf %15, %16 : vector<8x128xf32>
    %18 = vector.extract_strided_slice %11 {offsets = [0, 128], sizes = [8, 128], strides = [1, 1]} : vector<8x512xf32> to vector<8x128xf32>
    %19 = arith.negf %18 : vector<8x128xf32>
    %20 = math.exp %19 : vector<8x128xf32>
    %cst_16 = arith.constant 1.000000e+00 : f32
    %21 = vector.broadcast %cst_16 : f32 to vector<8x128xf32>
    %22 = arith.addf %21, %20 : vector<8x128xf32>
    %23 = arith.divf %21, %22 : vector<8x128xf32>
    %24 = vector.extract_strided_slice %11 {offsets = [0, 256], sizes = [8, 128], strides = [1, 1]} : vector<8x512xf32> to vector<8x128xf32>
    %25 = math.tanh %24 : vector<8x128xf32>
    %26 = vector.extract_strided_slice %11 {offsets = [0, 384], sizes = [8, 128], strides = [1, 1]} : vector<8x512xf32> to vector<8x128xf32>
    %27 = arith.negf %26 : vector<8x128xf32>
    %28 = math.exp %27 : vector<8x128xf32>
    %cst_17 = arith.constant 1.000000e+00 : f32
    %29 = vector.broadcast %cst_17 : f32 to vector<8x128xf32>
    %30 = arith.addf %29, %28 : vector<8x128xf32>
    %31 = arith.divf %29, %30 : vector<8x128xf32>
    %32 = arith.mulf %23, %2 : vector<8x128xf32>
    %33 = arith.mulf %17, %25 : vector<8x128xf32>
    %34 = arith.addf %32, %33 : vector<8x128xf32>
    %35 = math.tanh %34 : vector<8x128xf32>
    %36 = arith.mulf %31, %35 : vector<8x128xf32>
    %cst_18 = arith.constant dense<0.000000e+00> : vector<8x128xf32>
    %37 = tpu.matmul %36, %1, %cst_18 {dimension_numbers = #tpu.dot_dimension_numbers<[1], [0], [0], [1], [0, 0, 1, 1], [], []>} : vector<8x128xf32>, vector<128x128xf32>, vector<8x128xf32> -> vector<8x128xf32>
    %38 = arith.addf %37, %6 : vector<8x128xf32>
    %39 = arith.index_cast %c0_i32 : i32 to index
    %c0_19 = arith.constant 0 : index
    %c0_20 = arith.constant 0 : index
    %40 = vector.load %arg7[%39, %c0_19, %c0_20] : memref<8x8x128xf32, #tpu.memory_space<vmem>>, vector<1x8x128xf32>
    %41 = vector.shape_cast %40 : vector<1x8x128xf32> to vector<8x128xf32>
    %42 = vector.shape_cast %38 : vector<8x128xf32> to vector<1x8x128xf32>
    tpu.vector_store %arg7[%39, %c0_19, %c0_20], %42 {strides = array<i32>} : memref<8x8x128xf32, #tpu.memory_space<vmem>>, vector<1x8x128xf32>,
    %43 = arith.index_cast %c0_i32 : i32 to index
    %44 = memref.load %arg0[%43] : memref<8xi32, #tpu.memory_space<smem>>
    %c7_i32 = arith.constant 7 : i32
    %45 = arith.cmpi slt, %c0_i32, %c7_i32 : i32
    %c0_i32_21 = arith.constant 0 : i32
    %46 = arith.cmpi sgt, %44, %c0_i32_21 : i32
    %47 = arith.andi %46, %45 : i1
    %48 = arith.extui %47 : i1 to i32
    %c0_i32_22 = arith.constant 0 : i32
    %49 = arith.cmpi ne, %48, %c0_i32_22 : i32
    scf.if %49 {
      %c1_i32_117 = arith.constant 1 : i32
      %355 = arith.addi %c0_i32, %c1_i32_117 : i32
      %356 = arith.index_cast %355 : i32 to index
      %c0_118 = arith.constant 0 : index
      %c0_119 = arith.constant 0 : index
      %357 = vector.load %arg1[%356, %c0_118, %c0_119] : memref<8x8x512xf32, #tpu.memory_space<vmem>>, vector<1x8x512xf32>
      %358 = vector.shape_cast %357 : vector<1x8x512xf32> to vector<8x512xf32>
      %c0_120 = arith.constant 0 : index
      %c0_121 = arith.constant 0 : index
      %359 = vector.load %arg8[%c0_120, %c0_121] : memref<8x512xf32, #tpu.memory_space<vmem>>, vector<8x512xf32>
      tpu.vector_store %arg8[%c0_120, %c0_121], %358 {strides = array<i32>} : memref<8x512xf32, #tpu.memory_space<vmem>>, vector<8x512xf32>,
    } else {
    }
    %c0_i32_23 = arith.constant 0 : i32
    %50 = arith.cmpi eq, %44, %c0_i32_23 : i32
    %51 = arith.andi %50, %45 : i1
    %52 = arith.extui %51 : i1 to i32
    %c0_i32_24 = arith.constant 0 : i32
    %53 = arith.cmpi ne, %52, %c0_i32_24 : i32
    scf.if %53 {
      %cst_117 = arith.constant dense<0xFF800000> : vector<8xf32>
      %355 = vector.multi_reduction <maximumf>, %38, %cst_117 [1] : vector<8x128xf32> to vector<8xf32>
      %356 = vector.shape_cast %355 : vector<8xf32> to vector<8x1xf32>
      %357 = vector.broadcast %356 : vector<8x1xf32> to vector<8x128xf32>
      %358 = arith.cmpf oeq, %38, %357 : vector<8x128xf32>
      %c128_i32 = arith.constant 128 : i32
      %359 = vector.broadcast %c128_i32 : i32 to vector<8x128xi32>
      %360 = arith.select %358, %7, %359 : vector<8x128xi1>, vector<8x128xi32>
      %cst_118 = arith.constant dense<2147483647> : vector<8xi32>
      %361 = vector.multi_reduction <minsi>, %360, %cst_118 [1] : vector<8x128xi32> to vector<8xi32>
      %362 = vector.shape_cast %361 : vector<8xi32> to vector<8x1xi32>
      %363 = vector.broadcast %362 : vector<8x1xi32> to vector<8x128xi32>
      %364 = arith.cmpi eq, %7, %363 : vector<8x128xi32>
      %365 = arith.extui %364 : vector<8x128xi1> to vector<8x128xi32>
      %366 = arith.sitofp %365 : vector<8x128xi32> to vector<8x128xf32>
      %cst_119 = arith.constant dense<0.000000e+00> : vector<8x512xf32>
      %367 = tpu.matmul %366, %0, %cst_119 {dimension_numbers = #tpu.dot_dimension_numbers<[1], [0], [0], [1], [0, 0, 1, 1], [], []>} : vector<8x128xf32>, vector<128x512xf32>, vector<8x512xf32> -> vector<8x512xf32>
      %368 = arith.addf %367, %3 : vector<8x512xf32>
      %c0_120 = arith.constant 0 : index
      %c0_121 = arith.constant 0 : index
      %369 = vector.load %arg8[%c0_120, %c0_121] : memref<8x512xf32, #tpu.memory_space<vmem>>, vector<8x512xf32>
      tpu.vector_store %arg8[%c0_120, %c0_121], %368 {strides = array<i32>} : memref<8x512xf32, #tpu.memory_space<vmem>>, vector<8x512xf32>,
    } else {
    }
    %c1_i32 = arith.constant 1 : i32
    %c0_25 = arith.constant 0 : index
    %c0_26 = arith.constant 0 : index
    %54 = vector.load %arg8[%c0_25, %c0_26] : memref<8x512xf32, #tpu.memory_space<vmem>>, vector<8x512xf32>
    %55 = vector.extract_strided_slice %54 {offsets = [0, 0], sizes = [8, 128], strides = [1, 1]} : vector<8x512xf32> to vector<8x128xf32>
    %56 = arith.negf %55 : vector<8x128xf32>
    %57 = math.exp %56 : vector<8x128xf32>
    %cst_27 = arith.constant 1.000000e+00 : f32
    %58 = vector.broadcast %cst_27 : f32 to vector<8x128xf32>
    %59 = arith.addf %58, %57 : vector<8x128xf32>
    %60 = arith.divf %58, %59 : vector<8x128xf32>
    %61 = vector.extract_strided_slice %54 {offsets = [0, 128], sizes = [8, 128], strides = [1, 1]} : vector<8x512xf32> to vector<8x128xf32>
    %62 = arith.negf %61 : vector<8x128xf32>
    %63 = math.exp %62 : vector<8x128xf32>
    %cst_28 = arith.constant 1.000000e+00 : f32
    %64 = vector.broadcast %cst_28 : f32 to vector<8x128xf32>
    %65 = arith.addf %64, %63 : vector<8x128xf32>
    %66 = arith.divf %64, %65 : vector<8x128xf32>
    %67 = vector.extract_strided_slice %54 {offsets = [0, 256], sizes = [8, 128], strides = [1, 1]} : vector<8x512xf32> to vector<8x128xf32>
    %68 = math.tanh %67 : vector<8x128xf32>
    %69 = vector.extract_strided_slice %54 {offsets = [0, 384], sizes = [8, 128], strides = [1, 1]} : vector<8x512xf32> to vector<8x128xf32>
    %70 = arith.negf %69 : vector<8x128xf32>
    %71 = math.exp %70 : vector<8x128xf32>
    %cst_29 = arith.constant 1.000000e+00 : f32
    %72 = vector.broadcast %cst_29 : f32 to vector<8x128xf32>
    %73 = arith.addf %72, %71 : vector<8x128xf32>
    %74 = arith.divf %72, %73 : vector<8x128xf32>
    %75 = arith.mulf %66, %2 : vector<8x128xf32>
    %76 = arith.mulf %60, %68 : vector<8x128xf32>
    %77 = arith.addf %75, %76 : vector<8x128xf32>
    %78 = math.tanh %77 : vector<8x128xf32>
    %79 = arith.mulf %74, %78 : vector<8x128xf32>
    %cst_30 = arith.constant dense<0.000000e+00> : vector<8x128xf32>
    %80 = tpu.matmul %79, %1, %cst_30 {dimension_numbers = #tpu.dot_dimension_numbers<[1], [0], [0], [1], [0, 0, 1, 1], [], []>} : vector<8x128xf32>, vector<128x128xf32>, vector<8x128xf32> -> vector<8x128xf32>
    %81 = arith.addf %80, %6 : vector<8x128xf32>
    %82 = arith.index_cast %c1_i32 : i32 to index
    %c0_31 = arith.constant 0 : index
    %c0_32 = arith.constant 0 : index
    %83 = vector.load %arg7[%82, %c0_31, %c0_32] : memref<8x8x128xf32, #tpu.memory_space<vmem>>, vector<1x8x128xf32>
    %84 = vector.shape_cast %83 : vector<1x8x128xf32> to vector<8x128xf32>
    %85 = vector.shape_cast %81 : vector<8x128xf32> to vector<1x8x128xf32>
    tpu.vector_store %arg7[%82, %c0_31, %c0_32], %85 {strides = array<i32>} : memref<8x8x128xf32, #tpu.memory_space<vmem>>, vector<1x8x128xf32>,
    %86 = arith.index_cast %c1_i32 : i32 to index
    %87 = memref.load %arg0[%86] : memref<8xi32, #tpu.memory_space<smem>>
    %c7_i32_33 = arith.constant 7 : i32
    %88 = arith.cmpi slt, %c1_i32, %c7_i32_33 : i32
    %c0_i32_34 = arith.constant 0 : i32
    %89 = arith.cmpi sgt, %87, %c0_i32_34 : i32
    %90 = arith.andi %89, %88 : i1
    %91 = arith.extui %90 : i1 to i32
    %c0_i32_35 = arith.constant 0 : i32
    %92 = arith.cmpi ne, %91, %c0_i32_35 : i32
    scf.if %92 {
      %c1_i32_117 = arith.constant 1 : i32
      %355 = arith.addi %c1_i32, %c1_i32_117 : i32
      %356 = arith.index_cast %355 : i32 to index
      %c0_118 = arith.constant 0 : index
      %c0_119 = arith.constant 0 : index
      %357 = vector.load %arg1[%356, %c0_118, %c0_119] : memref<8x8x512xf32, #tpu.memory_space<vmem>>, vector<1x8x512xf32>
      %358 = vector.shape_cast %357 : vector<1x8x512xf32> to vector<8x512xf32>
      %c0_120 = arith.constant 0 : index
      %c0_121 = arith.constant 0 : index
      %359 = vector.load %arg8[%c0_120, %c0_121] : memref<8x512xf32, #tpu.memory_space<vmem>>, vector<8x512xf32>
      tpu.vector_store %arg8[%c0_120, %c0_121], %358 {strides = array<i32>} : memref<8x512xf32, #tpu.memory_space<vmem>>, vector<8x512xf32>,
    } else {
    }
    %c0_i32_36 = arith.constant 0 : i32
    %93 = arith.cmpi eq, %87, %c0_i32_36 : i32
    %94 = arith.andi %93, %88 : i1
    %95 = arith.extui %94 : i1 to i32
    %c0_i32_37 = arith.constant 0 : i32
    %96 = arith.cmpi ne, %95, %c0_i32_37 : i32
    scf.if %96 {
      %cst_117 = arith.constant dense<0xFF800000> : vector<8xf32>
      %355 = vector.multi_reduction <maximumf>, %81, %cst_117 [1] : vector<8x128xf32> to vector<8xf32>
      %356 = vector.shape_cast %355 : vector<8xf32> to vector<8x1xf32>
      %357 = vector.broadcast %356 : vector<8x1xf32> to vector<8x128xf32>
      %358 = arith.cmpf oeq, %81, %357 : vector<8x128xf32>
      %c128_i32 = arith.constant 128 : i32
      %359 = vector.broadcast %c128_i32 : i32 to vector<8x128xi32>
      %360 = arith.select %358, %7, %359 : vector<8x128xi1>, vector<8x128xi32>
      %cst_118 = arith.constant dense<2147483647> : vector<8xi32>
      %361 = vector.multi_reduction <minsi>, %360, %cst_118 [1] : vector<8x128xi32> to vector<8xi32>
      %362 = vector.shape_cast %361 : vector<8xi32> to vector<8x1xi32>
      %363 = vector.broadcast %362 : vector<8x1xi32> to vector<8x128xi32>
      %364 = arith.cmpi eq, %7, %363 : vector<8x128xi32>
      %365 = arith.extui %364 : vector<8x128xi1> to vector<8x128xi32>
      %366 = arith.sitofp %365 : vector<8x128xi32> to vector<8x128xf32>
      %cst_119 = arith.constant dense<0.000000e+00> : vector<8x512xf32>
      %367 = tpu.matmul %366, %0, %cst_119 {dimension_numbers = #tpu.dot_dimension_numbers<[1], [0], [0], [1], [0, 0, 1, 1], [], []>} : vector<8x128xf32>, vector<128x512xf32>, vector<8x512xf32> -> vector<8x512xf32>
      %368 = arith.addf %367, %3 : vector<8x512xf32>
      %c0_120 = arith.constant 0 : index
      %c0_121 = arith.constant 0 : index
      %369 = vector.load %arg8[%c0_120, %c0_121] : memref<8x512xf32, #tpu.memory_space<vmem>>, vector<8x512xf32>
      tpu.vector_store %arg8[%c0_120, %c0_121], %368 {strides = array<i32>} : memref<8x512xf32, #tpu.memory_space<vmem>>, vector<8x512xf32>,
    } else {
    }
    %c2_i32 = arith.constant 2 : i32
    %c0_38 = arith.constant 0 : index
    %c0_39 = arith.constant 0 : index
    %97 = vector.load %arg8[%c0_38, %c0_39] : memref<8x512xf32, #tpu.memory_space<vmem>>, vector<8x512xf32>
    %98 = vector.extract_strided_slice %97 {offsets = [0, 0], sizes = [8, 128], strides = [1, 1]} : vector<8x512xf32> to vector<8x128xf32>
    %99 = arith.negf %98 : vector<8x128xf32>
    %100 = math.exp %99 : vector<8x128xf32>
    %cst_40 = arith.constant 1.000000e+00 : f32
    %101 = vector.broadcast %cst_40 : f32 to vector<8x128xf32>
    %102 = arith.addf %101, %100 : vector<8x128xf32>
    %103 = arith.divf %101, %102 : vector<8x128xf32>
    %104 = vector.extract_strided_slice %97 {offsets = [0, 128], sizes = [8, 128], strides = [1, 1]} : vector<8x512xf32> to vector<8x128xf32>
    %105 = arith.negf %104 : vector<8x128xf32>
    %106 = math.exp %105 : vector<8x128xf32>
    %cst_41 = arith.constant 1.000000e+00 : f32
    %107 = vector.broadcast %cst_41 : f32 to vector<8x128xf32>
    %108 = arith.addf %107, %106 : vector<8x128xf32>
    %109 = arith.divf %107, %108 : vector<8x128xf32>
    %110 = vector.extract_strided_slice %97 {offsets = [0, 256], sizes = [8, 128], strides = [1, 1]} : vector<8x512xf32> to vector<8x128xf32>
    %111 = math.tanh %110 : vector<8x128xf32>
    %112 = vector.extract_strided_slice %97 {offsets = [0, 384], sizes = [8, 128], strides = [1, 1]} : vector<8x512xf32> to vector<8x128xf32>
    %113 = arith.negf %112 : vector<8x128xf32>
    %114 = math.exp %113 : vector<8x128xf32>
    %cst_42 = arith.constant 1.000000e+00 : f32
    %115 = vector.broadcast %cst_42 : f32 to vector<8x128xf32>
    %116 = arith.addf %115, %114 : vector<8x128xf32>
    %117 = arith.divf %115, %116 : vector<8x128xf32>
    %118 = arith.mulf %109, %2 : vector<8x128xf32>
    %119 = arith.mulf %103, %111 : vector<8x128xf32>
    %120 = arith.addf %118, %119 : vector<8x128xf32>
    %121 = math.tanh %120 : vector<8x128xf32>
    %122 = arith.mulf %117, %121 : vector<8x128xf32>
    %cst_43 = arith.constant dense<0.000000e+00> : vector<8x128xf32>
    %123 = tpu.matmul %122, %1, %cst_43 {dimension_numbers = #tpu.dot_dimension_numbers<[1], [0], [0], [1], [0, 0, 1, 1], [], []>} : vector<8x128xf32>, vector<128x128xf32>, vector<8x128xf32> -> vector<8x128xf32>
    %124 = arith.addf %123, %6 : vector<8x128xf32>
    %125 = arith.index_cast %c2_i32 : i32 to index
    %c0_44 = arith.constant 0 : index
    %c0_45 = arith.constant 0 : index
    %126 = vector.load %arg7[%125, %c0_44, %c0_45] : memref<8x8x128xf32, #tpu.memory_space<vmem>>, vector<1x8x128xf32>
    %127 = vector.shape_cast %126 : vector<1x8x128xf32> to vector<8x128xf32>
    %128 = vector.shape_cast %124 : vector<8x128xf32> to vector<1x8x128xf32>
    tpu.vector_store %arg7[%125, %c0_44, %c0_45], %128 {strides = array<i32>} : memref<8x8x128xf32, #tpu.memory_space<vmem>>, vector<1x8x128xf32>,
    %129 = arith.index_cast %c2_i32 : i32 to index
    %130 = memref.load %arg0[%129] : memref<8xi32, #tpu.memory_space<smem>>
    %c7_i32_46 = arith.constant 7 : i32
    %131 = arith.cmpi slt, %c2_i32, %c7_i32_46 : i32
    %c0_i32_47 = arith.constant 0 : i32
    %132 = arith.cmpi sgt, %130, %c0_i32_47 : i32
    %133 = arith.andi %132, %131 : i1
    %134 = arith.extui %133 : i1 to i32
    %c0_i32_48 = arith.constant 0 : i32
    %135 = arith.cmpi ne, %134, %c0_i32_48 : i32
    scf.if %135 {
      %c1_i32_117 = arith.constant 1 : i32
      %355 = arith.addi %c2_i32, %c1_i32_117 : i32
      %356 = arith.index_cast %355 : i32 to index
      %c0_118 = arith.constant 0 : index
      %c0_119 = arith.constant 0 : index
      %357 = vector.load %arg1[%356, %c0_118, %c0_119] : memref<8x8x512xf32, #tpu.memory_space<vmem>>, vector<1x8x512xf32>
      %358 = vector.shape_cast %357 : vector<1x8x512xf32> to vector<8x512xf32>
      %c0_120 = arith.constant 0 : index
      %c0_121 = arith.constant 0 : index
      %359 = vector.load %arg8[%c0_120, %c0_121] : memref<8x512xf32, #tpu.memory_space<vmem>>, vector<8x512xf32>
      tpu.vector_store %arg8[%c0_120, %c0_121], %358 {strides = array<i32>} : memref<8x512xf32, #tpu.memory_space<vmem>>, vector<8x512xf32>,
    } else {
    }
    %c0_i32_49 = arith.constant 0 : i32
    %136 = arith.cmpi eq, %130, %c0_i32_49 : i32
    %137 = arith.andi %136, %131 : i1
    %138 = arith.extui %137 : i1 to i32
    %c0_i32_50 = arith.constant 0 : i32
    %139 = arith.cmpi ne, %138, %c0_i32_50 : i32
    scf.if %139 {
      %cst_117 = arith.constant dense<0xFF800000> : vector<8xf32>
      %355 = vector.multi_reduction <maximumf>, %124, %cst_117 [1] : vector<8x128xf32> to vector<8xf32>
      %356 = vector.shape_cast %355 : vector<8xf32> to vector<8x1xf32>
      %357 = vector.broadcast %356 : vector<8x1xf32> to vector<8x128xf32>
      %358 = arith.cmpf oeq, %124, %357 : vector<8x128xf32>
      %c128_i32 = arith.constant 128 : i32
      %359 = vector.broadcast %c128_i32 : i32 to vector<8x128xi32>
      %360 = arith.select %358, %7, %359 : vector<8x128xi1>, vector<8x128xi32>
      %cst_118 = arith.constant dense<2147483647> : vector<8xi32>
      %361 = vector.multi_reduction <minsi>, %360, %cst_118 [1] : vector<8x128xi32> to vector<8xi32>
      %362 = vector.shape_cast %361 : vector<8xi32> to vector<8x1xi32>
      %363 = vector.broadcast %362 : vector<8x1xi32> to vector<8x128xi32>
      %364 = arith.cmpi eq, %7, %363 : vector<8x128xi32>
      %365 = arith.extui %364 : vector<8x128xi1> to vector<8x128xi32>
      %366 = arith.sitofp %365 : vector<8x128xi32> to vector<8x128xf32>
      %cst_119 = arith.constant dense<0.000000e+00> : vector<8x512xf32>
      %367 = tpu.matmul %366, %0, %cst_119 {dimension_numbers = #tpu.dot_dimension_numbers<[1], [0], [0], [1], [0, 0, 1, 1], [], []>} : vector<8x128xf32>, vector<128x512xf32>, vector<8x512xf32> -> vector<8x512xf32>
      %368 = arith.addf %367, %3 : vector<8x512xf32>
      %c0_120 = arith.constant 0 : index
      %c0_121 = arith.constant 0 : index
      %369 = vector.load %arg8[%c0_120, %c0_121] : memref<8x512xf32, #tpu.memory_space<vmem>>, vector<8x512xf32>
      tpu.vector_store %arg8[%c0_120, %c0_121], %368 {strides = array<i32>} : memref<8x512xf32, #tpu.memory_space<vmem>>, vector<8x512xf32>,
    } else {
    }
    %c3_i32 = arith.constant 3 : i32
    %c0_51 = arith.constant 0 : index
    %c0_52 = arith.constant 0 : index
    %140 = vector.load %arg8[%c0_51, %c0_52] : memref<8x512xf32, #tpu.memory_space<vmem>>, vector<8x512xf32>
    %141 = vector.extract_strided_slice %140 {offsets = [0, 0], sizes = [8, 128], strides = [1, 1]} : vector<8x512xf32> to vector<8x128xf32>
    %142 = arith.negf %141 : vector<8x128xf32>
    %143 = math.exp %142 : vector<8x128xf32>
    %cst_53 = arith.constant 1.000000e+00 : f32
    %144 = vector.broadcast %cst_53 : f32 to vector<8x128xf32>
    %145 = arith.addf %144, %143 : vector<8x128xf32>
    %146 = arith.divf %144, %145 : vector<8x128xf32>
    %147 = vector.extract_strided_slice %140 {offsets = [0, 128], sizes = [8, 128], strides = [1, 1]} : vector<8x512xf32> to vector<8x128xf32>
    %148 = arith.negf %147 : vector<8x128xf32>
    %149 = math.exp %148 : vector<8x128xf32>
    %cst_54 = arith.constant 1.000000e+00 : f32
    %150 = vector.broadcast %cst_54 : f32 to vector<8x128xf32>
    %151 = arith.addf %150, %149 : vector<8x128xf32>
    %152 = arith.divf %150, %151 : vector<8x128xf32>
    %153 = vector.extract_strided_slice %140 {offsets = [0, 256], sizes = [8, 128], strides = [1, 1]} : vector<8x512xf32> to vector<8x128xf32>
    %154 = math.tanh %153 : vector<8x128xf32>
    %155 = vector.extract_strided_slice %140 {offsets = [0, 384], sizes = [8, 128], strides = [1, 1]} : vector<8x512xf32> to vector<8x128xf32>
    %156 = arith.negf %155 : vector<8x128xf32>
    %157 = math.exp %156 : vector<8x128xf32>
    %cst_55 = arith.constant 1.000000e+00 : f32
    %158 = vector.broadcast %cst_55 : f32 to vector<8x128xf32>
    %159 = arith.addf %158, %157 : vector<8x128xf32>
    %160 = arith.divf %158, %159 : vector<8x128xf32>
    %161 = arith.mulf %152, %2 : vector<8x128xf32>
    %162 = arith.mulf %146, %154 : vector<8x128xf32>
    %163 = arith.addf %161, %162 : vector<8x128xf32>
    %164 = math.tanh %163 : vector<8x128xf32>
    %165 = arith.mulf %160, %164 : vector<8x128xf32>
    %cst_56 = arith.constant dense<0.000000e+00> : vector<8x128xf32>
    %166 = tpu.matmul %165, %1, %cst_56 {dimension_numbers = #tpu.dot_dimension_numbers<[1], [0], [0], [1], [0, 0, 1, 1], [], []>} : vector<8x128xf32>, vector<128x128xf32>, vector<8x128xf32> -> vector<8x128xf32>
    %167 = arith.addf %166, %6 : vector<8x128xf32>
    %168 = arith.index_cast %c3_i32 : i32 to index
    %c0_57 = arith.constant 0 : index
    %c0_58 = arith.constant 0 : index
    %169 = vector.load %arg7[%168, %c0_57, %c0_58] : memref<8x8x128xf32, #tpu.memory_space<vmem>>, vector<1x8x128xf32>
    %170 = vector.shape_cast %169 : vector<1x8x128xf32> to vector<8x128xf32>
    %171 = vector.shape_cast %167 : vector<8x128xf32> to vector<1x8x128xf32>
    tpu.vector_store %arg7[%168, %c0_57, %c0_58], %171 {strides = array<i32>} : memref<8x8x128xf32, #tpu.memory_space<vmem>>, vector<1x8x128xf32>,
    %172 = arith.index_cast %c3_i32 : i32 to index
    %173 = memref.load %arg0[%172] : memref<8xi32, #tpu.memory_space<smem>>
    %c7_i32_59 = arith.constant 7 : i32
    %174 = arith.cmpi slt, %c3_i32, %c7_i32_59 : i32
    %c0_i32_60 = arith.constant 0 : i32
    %175 = arith.cmpi sgt, %173, %c0_i32_60 : i32
    %176 = arith.andi %175, %174 : i1
    %177 = arith.extui %176 : i1 to i32
    %c0_i32_61 = arith.constant 0 : i32
    %178 = arith.cmpi ne, %177, %c0_i32_61 : i32
    scf.if %178 {
      %c1_i32_117 = arith.constant 1 : i32
      %355 = arith.addi %c3_i32, %c1_i32_117 : i32
      %356 = arith.index_cast %355 : i32 to index
      %c0_118 = arith.constant 0 : index
      %c0_119 = arith.constant 0 : index
      %357 = vector.load %arg1[%356, %c0_118, %c0_119] : memref<8x8x512xf32, #tpu.memory_space<vmem>>, vector<1x8x512xf32>
      %358 = vector.shape_cast %357 : vector<1x8x512xf32> to vector<8x512xf32>
      %c0_120 = arith.constant 0 : index
      %c0_121 = arith.constant 0 : index
      %359 = vector.load %arg8[%c0_120, %c0_121] : memref<8x512xf32, #tpu.memory_space<vmem>>, vector<8x512xf32>
      tpu.vector_store %arg8[%c0_120, %c0_121], %358 {strides = array<i32>} : memref<8x512xf32, #tpu.memory_space<vmem>>, vector<8x512xf32>,
    } else {
    }
    %c0_i32_62 = arith.constant 0 : i32
    %179 = arith.cmpi eq, %173, %c0_i32_62 : i32
    %180 = arith.andi %179, %174 : i1
    %181 = arith.extui %180 : i1 to i32
    %c0_i32_63 = arith.constant 0 : i32
    %182 = arith.cmpi ne, %181, %c0_i32_63 : i32
    scf.if %182 {
      %cst_117 = arith.constant dense<0xFF800000> : vector<8xf32>
      %355 = vector.multi_reduction <maximumf>, %167, %cst_117 [1] : vector<8x128xf32> to vector<8xf32>
      %356 = vector.shape_cast %355 : vector<8xf32> to vector<8x1xf32>
      %357 = vector.broadcast %356 : vector<8x1xf32> to vector<8x128xf32>
      %358 = arith.cmpf oeq, %167, %357 : vector<8x128xf32>
      %c128_i32 = arith.constant 128 : i32
      %359 = vector.broadcast %c128_i32 : i32 to vector<8x128xi32>
      %360 = arith.select %358, %7, %359 : vector<8x128xi1>, vector<8x128xi32>
      %cst_118 = arith.constant dense<2147483647> : vector<8xi32>
      %361 = vector.multi_reduction <minsi>, %360, %cst_118 [1] : vector<8x128xi32> to vector<8xi32>
      %362 = vector.shape_cast %361 : vector<8xi32> to vector<8x1xi32>
      %363 = vector.broadcast %362 : vector<8x1xi32> to vector<8x128xi32>
      %364 = arith.cmpi eq, %7, %363 : vector<8x128xi32>
      %365 = arith.extui %364 : vector<8x128xi1> to vector<8x128xi32>
      %366 = arith.sitofp %365 : vector<8x128xi32> to vector<8x128xf32>
      %cst_119 = arith.constant dense<0.000000e+00> : vector<8x512xf32>
      %367 = tpu.matmul %366, %0, %cst_119 {dimension_numbers = #tpu.dot_dimension_numbers<[1], [0], [0], [1], [0, 0, 1, 1], [], []>} : vector<8x128xf32>, vector<128x512xf32>, vector<8x512xf32> -> vector<8x512xf32>
      %368 = arith.addf %367, %3 : vector<8x512xf32>
      %c0_120 = arith.constant 0 : index
      %c0_121 = arith.constant 0 : index
      %369 = vector.load %arg8[%c0_120, %c0_121] : memref<8x512xf32, #tpu.memory_space<vmem>>, vector<8x512xf32>
      tpu.vector_store %arg8[%c0_120, %c0_121], %368 {strides = array<i32>} : memref<8x512xf32, #tpu.memory_space<vmem>>, vector<8x512xf32>,
    } else {
    }
    %c4_i32 = arith.constant 4 : i32
    %c0_64 = arith.constant 0 : index
    %c0_65 = arith.constant 0 : index
    %183 = vector.load %arg8[%c0_64, %c0_65] : memref<8x512xf32, #tpu.memory_space<vmem>>, vector<8x512xf32>
    %184 = vector.extract_strided_slice %183 {offsets = [0, 0], sizes = [8, 128], strides = [1, 1]} : vector<8x512xf32> to vector<8x128xf32>
    %185 = arith.negf %184 : vector<8x128xf32>
    %186 = math.exp %185 : vector<8x128xf32>
    %cst_66 = arith.constant 1.000000e+00 : f32
    %187 = vector.broadcast %cst_66 : f32 to vector<8x128xf32>
    %188 = arith.addf %187, %186 : vector<8x128xf32>
    %189 = arith.divf %187, %188 : vector<8x128xf32>
    %190 = vector.extract_strided_slice %183 {offsets = [0, 128], sizes = [8, 128], strides = [1, 1]} : vector<8x512xf32> to vector<8x128xf32>
    %191 = arith.negf %190 : vector<8x128xf32>
    %192 = math.exp %191 : vector<8x128xf32>
    %cst_67 = arith.constant 1.000000e+00 : f32
    %193 = vector.broadcast %cst_67 : f32 to vector<8x128xf32>
    %194 = arith.addf %193, %192 : vector<8x128xf32>
    %195 = arith.divf %193, %194 : vector<8x128xf32>
    %196 = vector.extract_strided_slice %183 {offsets = [0, 256], sizes = [8, 128], strides = [1, 1]} : vector<8x512xf32> to vector<8x128xf32>
    %197 = math.tanh %196 : vector<8x128xf32>
    %198 = vector.extract_strided_slice %183 {offsets = [0, 384], sizes = [8, 128], strides = [1, 1]} : vector<8x512xf32> to vector<8x128xf32>
    %199 = arith.negf %198 : vector<8x128xf32>
    %200 = math.exp %199 : vector<8x128xf32>
    %cst_68 = arith.constant 1.000000e+00 : f32
    %201 = vector.broadcast %cst_68 : f32 to vector<8x128xf32>
    %202 = arith.addf %201, %200 : vector<8x128xf32>
    %203 = arith.divf %201, %202 : vector<8x128xf32>
    %204 = arith.mulf %195, %2 : vector<8x128xf32>
    %205 = arith.mulf %189, %197 : vector<8x128xf32>
    %206 = arith.addf %204, %205 : vector<8x128xf32>
    %207 = math.tanh %206 : vector<8x128xf32>
    %208 = arith.mulf %203, %207 : vector<8x128xf32>
    %cst_69 = arith.constant dense<0.000000e+00> : vector<8x128xf32>
    %209 = tpu.matmul %208, %1, %cst_69 {dimension_numbers = #tpu.dot_dimension_numbers<[1], [0], [0], [1], [0, 0, 1, 1], [], []>} : vector<8x128xf32>, vector<128x128xf32>, vector<8x128xf32> -> vector<8x128xf32>
    %210 = arith.addf %209, %6 : vector<8x128xf32>
    %211 = arith.index_cast %c4_i32 : i32 to index
    %c0_70 = arith.constant 0 : index
    %c0_71 = arith.constant 0 : index
    %212 = vector.load %arg7[%211, %c0_70, %c0_71] : memref<8x8x128xf32, #tpu.memory_space<vmem>>, vector<1x8x128xf32>
    %213 = vector.shape_cast %212 : vector<1x8x128xf32> to vector<8x128xf32>
    %214 = vector.shape_cast %210 : vector<8x128xf32> to vector<1x8x128xf32>
    tpu.vector_store %arg7[%211, %c0_70, %c0_71], %214 {strides = array<i32>} : memref<8x8x128xf32, #tpu.memory_space<vmem>>, vector<1x8x128xf32>,
    %215 = arith.index_cast %c4_i32 : i32 to index
    %216 = memref.load %arg0[%215] : memref<8xi32, #tpu.memory_space<smem>>
    %c7_i32_72 = arith.constant 7 : i32
    %217 = arith.cmpi slt, %c4_i32, %c7_i32_72 : i32
    %c0_i32_73 = arith.constant 0 : i32
    %218 = arith.cmpi sgt, %216, %c0_i32_73 : i32
    %219 = arith.andi %218, %217 : i1
    %220 = arith.extui %219 : i1 to i32
    %c0_i32_74 = arith.constant 0 : i32
    %221 = arith.cmpi ne, %220, %c0_i32_74 : i32
    scf.if %221 {
      %c1_i32_117 = arith.constant 1 : i32
      %355 = arith.addi %c4_i32, %c1_i32_117 : i32
      %356 = arith.index_cast %355 : i32 to index
      %c0_118 = arith.constant 0 : index
      %c0_119 = arith.constant 0 : index
      %357 = vector.load %arg1[%356, %c0_118, %c0_119] : memref<8x8x512xf32, #tpu.memory_space<vmem>>, vector<1x8x512xf32>
      %358 = vector.shape_cast %357 : vector<1x8x512xf32> to vector<8x512xf32>
      %c0_120 = arith.constant 0 : index
      %c0_121 = arith.constant 0 : index
      %359 = vector.load %arg8[%c0_120, %c0_121] : memref<8x512xf32, #tpu.memory_space<vmem>>, vector<8x512xf32>
      tpu.vector_store %arg8[%c0_120, %c0_121], %358 {strides = array<i32>} : memref<8x512xf32, #tpu.memory_space<vmem>>, vector<8x512xf32>,
    } else {
    }
    %c0_i32_75 = arith.constant 0 : i32
    %222 = arith.cmpi eq, %216, %c0_i32_75 : i32
    %223 = arith.andi %222, %217 : i1
    %224 = arith.extui %223 : i1 to i32
    %c0_i32_76 = arith.constant 0 : i32
    %225 = arith.cmpi ne, %224, %c0_i32_76 : i32
    scf.if %225 {
      %cst_117 = arith.constant dense<0xFF800000> : vector<8xf32>
      %355 = vector.multi_reduction <maximumf>, %210, %cst_117 [1] : vector<8x128xf32> to vector<8xf32>
      %356 = vector.shape_cast %355 : vector<8xf32> to vector<8x1xf32>
      %357 = vector.broadcast %356 : vector<8x1xf32> to vector<8x128xf32>
      %358 = arith.cmpf oeq, %210, %357 : vector<8x128xf32>
      %c128_i32 = arith.constant 128 : i32
      %359 = vector.broadcast %c128_i32 : i32 to vector<8x128xi32>
      %360 = arith.select %358, %7, %359 : vector<8x128xi1>, vector<8x128xi32>
      %cst_118 = arith.constant dense<2147483647> : vector<8xi32>
      %361 = vector.multi_reduction <minsi>, %360, %cst_118 [1] : vector<8x128xi32> to vector<8xi32>
      %362 = vector.shape_cast %361 : vector<8xi32> to vector<8x1xi32>
      %363 = vector.broadcast %362 : vector<8x1xi32> to vector<8x128xi32>
      %364 = arith.cmpi eq, %7, %363 : vector<8x128xi32>
      %365 = arith.extui %364 : vector<8x128xi1> to vector<8x128xi32>
      %366 = arith.sitofp %365 : vector<8x128xi32> to vector<8x128xf32>
      %cst_119 = arith.constant dense<0.000000e+00> : vector<8x512xf32>
      %367 = tpu.matmul %366, %0, %cst_119 {dimension_numbers = #tpu.dot_dimension_numbers<[1], [0], [0], [1], [0, 0, 1, 1], [], []>} : vector<8x128xf32>, vector<128x512xf32>, vector<8x512xf32> -> vector<8x512xf32>
      %368 = arith.addf %367, %3 : vector<8x512xf32>
      %c0_120 = arith.constant 0 : index
      %c0_121 = arith.constant 0 : index
      %369 = vector.load %arg8[%c0_120, %c0_121] : memref<8x512xf32, #tpu.memory_space<vmem>>, vector<8x512xf32>
      tpu.vector_store %arg8[%c0_120, %c0_121], %368 {strides = array<i32>} : memref<8x512xf32, #tpu.memory_space<vmem>>, vector<8x512xf32>,
    } else {
    }
    %c5_i32 = arith.constant 5 : i32
    %c0_77 = arith.constant 0 : index
    %c0_78 = arith.constant 0 : index
    %226 = vector.load %arg8[%c0_77, %c0_78] : memref<8x512xf32, #tpu.memory_space<vmem>>, vector<8x512xf32>
    %227 = vector.extract_strided_slice %226 {offsets = [0, 0], sizes = [8, 128], strides = [1, 1]} : vector<8x512xf32> to vector<8x128xf32>
    %228 = arith.negf %227 : vector<8x128xf32>
    %229 = math.exp %228 : vector<8x128xf32>
    %cst_79 = arith.constant 1.000000e+00 : f32
    %230 = vector.broadcast %cst_79 : f32 to vector<8x128xf32>
    %231 = arith.addf %230, %229 : vector<8x128xf32>
    %232 = arith.divf %230, %231 : vector<8x128xf32>
    %233 = vector.extract_strided_slice %226 {offsets = [0, 128], sizes = [8, 128], strides = [1, 1]} : vector<8x512xf32> to vector<8x128xf32>
    %234 = arith.negf %233 : vector<8x128xf32>
    %235 = math.exp %234 : vector<8x128xf32>
    %cst_80 = arith.constant 1.000000e+00 : f32
    %236 = vector.broadcast %cst_80 : f32 to vector<8x128xf32>
    %237 = arith.addf %236, %235 : vector<8x128xf32>
    %238 = arith.divf %236, %237 : vector<8x128xf32>
    %239 = vector.extract_strided_slice %226 {offsets = [0, 256], sizes = [8, 128], strides = [1, 1]} : vector<8x512xf32> to vector<8x128xf32>
    %240 = math.tanh %239 : vector<8x128xf32>
    %241 = vector.extract_strided_slice %226 {offsets = [0, 384], sizes = [8, 128], strides = [1, 1]} : vector<8x512xf32> to vector<8x128xf32>
    %242 = arith.negf %241 : vector<8x128xf32>
    %243 = math.exp %242 : vector<8x128xf32>
    %cst_81 = arith.constant 1.000000e+00 : f32
    %244 = vector.broadcast %cst_81 : f32 to vector<8x128xf32>
    %245 = arith.addf %244, %243 : vector<8x128xf32>
    %246 = arith.divf %244, %245 : vector<8x128xf32>
    %247 = arith.mulf %238, %2 : vector<8x128xf32>
    %248 = arith.mulf %232, %240 : vector<8x128xf32>
    %249 = arith.addf %247, %248 : vector<8x128xf32>
    %250 = math.tanh %249 : vector<8x128xf32>
    %251 = arith.mulf %246, %250 : vector<8x128xf32>
    %cst_82 = arith.constant dense<0.000000e+00> : vector<8x128xf32>
    %252 = tpu.matmul %251, %1, %cst_82 {dimension_numbers = #tpu.dot_dimension_numbers<[1], [0], [0], [1], [0, 0, 1, 1], [], []>} : vector<8x128xf32>, vector<128x128xf32>, vector<8x128xf32> -> vector<8x128xf32>
    %253 = arith.addf %252, %6 : vector<8x128xf32>
    %254 = arith.index_cast %c5_i32 : i32 to index
    %c0_83 = arith.constant 0 : index
    %c0_84 = arith.constant 0 : index
    %255 = vector.load %arg7[%254, %c0_83, %c0_84] : memref<8x8x128xf32, #tpu.memory_space<vmem>>, vector<1x8x128xf32>
    %256 = vector.shape_cast %255 : vector<1x8x128xf32> to vector<8x128xf32>
    %257 = vector.shape_cast %253 : vector<8x128xf32> to vector<1x8x128xf32>
    tpu.vector_store %arg7[%254, %c0_83, %c0_84], %257 {strides = array<i32>} : memref<8x8x128xf32, #tpu.memory_space<vmem>>, vector<1x8x128xf32>,
    %258 = arith.index_cast %c5_i32 : i32 to index
    %259 = memref.load %arg0[%258] : memref<8xi32, #tpu.memory_space<smem>>
    %c7_i32_85 = arith.constant 7 : i32
    %260 = arith.cmpi slt, %c5_i32, %c7_i32_85 : i32
    %c0_i32_86 = arith.constant 0 : i32
    %261 = arith.cmpi sgt, %259, %c0_i32_86 : i32
    %262 = arith.andi %261, %260 : i1
    %263 = arith.extui %262 : i1 to i32
    %c0_i32_87 = arith.constant 0 : i32
    %264 = arith.cmpi ne, %263, %c0_i32_87 : i32
    scf.if %264 {
      %c1_i32_117 = arith.constant 1 : i32
      %355 = arith.addi %c5_i32, %c1_i32_117 : i32
      %356 = arith.index_cast %355 : i32 to index
      %c0_118 = arith.constant 0 : index
      %c0_119 = arith.constant 0 : index
      %357 = vector.load %arg1[%356, %c0_118, %c0_119] : memref<8x8x512xf32, #tpu.memory_space<vmem>>, vector<1x8x512xf32>
      %358 = vector.shape_cast %357 : vector<1x8x512xf32> to vector<8x512xf32>
      %c0_120 = arith.constant 0 : index
      %c0_121 = arith.constant 0 : index
      %359 = vector.load %arg8[%c0_120, %c0_121] : memref<8x512xf32, #tpu.memory_space<vmem>>, vector<8x512xf32>
      tpu.vector_store %arg8[%c0_120, %c0_121], %358 {strides = array<i32>} : memref<8x512xf32, #tpu.memory_space<vmem>>, vector<8x512xf32>,
    } else {
    }
    %c0_i32_88 = arith.constant 0 : i32
    %265 = arith.cmpi eq, %259, %c0_i32_88 : i32
    %266 = arith.andi %265, %260 : i1
    %267 = arith.extui %266 : i1 to i32
    %c0_i32_89 = arith.constant 0 : i32
    %268 = arith.cmpi ne, %267, %c0_i32_89 : i32
    scf.if %268 {
      %cst_117 = arith.constant dense<0xFF800000> : vector<8xf32>
      %355 = vector.multi_reduction <maximumf>, %253, %cst_117 [1] : vector<8x128xf32> to vector<8xf32>
      %356 = vector.shape_cast %355 : vector<8xf32> to vector<8x1xf32>
      %357 = vector.broadcast %356 : vector<8x1xf32> to vector<8x128xf32>
      %358 = arith.cmpf oeq, %253, %357 : vector<8x128xf32>
      %c128_i32 = arith.constant 128 : i32
      %359 = vector.broadcast %c128_i32 : i32 to vector<8x128xi32>
      %360 = arith.select %358, %7, %359 : vector<8x128xi1>, vector<8x128xi32>
      %cst_118 = arith.constant dense<2147483647> : vector<8xi32>
      %361 = vector.multi_reduction <minsi>, %360, %cst_118 [1] : vector<8x128xi32> to vector<8xi32>
      %362 = vector.shape_cast %361 : vector<8xi32> to vector<8x1xi32>
      %363 = vector.broadcast %362 : vector<8x1xi32> to vector<8x128xi32>
      %364 = arith.cmpi eq, %7, %363 : vector<8x128xi32>
      %365 = arith.extui %364 : vector<8x128xi1> to vector<8x128xi32>
      %366 = arith.sitofp %365 : vector<8x128xi32> to vector<8x128xf32>
      %cst_119 = arith.constant dense<0.000000e+00> : vector<8x512xf32>
      %367 = tpu.matmul %366, %0, %cst_119 {dimension_numbers = #tpu.dot_dimension_numbers<[1], [0], [0], [1], [0, 0, 1, 1], [], []>} : vector<8x128xf32>, vector<128x512xf32>, vector<8x512xf32> -> vector<8x512xf32>
      %368 = arith.addf %367, %3 : vector<8x512xf32>
      %c0_120 = arith.constant 0 : index
      %c0_121 = arith.constant 0 : index
      %369 = vector.load %arg8[%c0_120, %c0_121] : memref<8x512xf32, #tpu.memory_space<vmem>>, vector<8x512xf32>
      tpu.vector_store %arg8[%c0_120, %c0_121], %368 {strides = array<i32>} : memref<8x512xf32, #tpu.memory_space<vmem>>, vector<8x512xf32>,
    } else {
    }
    %c6_i32 = arith.constant 6 : i32
    %c0_90 = arith.constant 0 : index
    %c0_91 = arith.constant 0 : index
    %269 = vector.load %arg8[%c0_90, %c0_91] : memref<8x512xf32, #tpu.memory_space<vmem>>, vector<8x512xf32>
    %270 = vector.extract_strided_slice %269 {offsets = [0, 0], sizes = [8, 128], strides = [1, 1]} : vector<8x512xf32> to vector<8x128xf32>
    %271 = arith.negf %270 : vector<8x128xf32>
    %272 = math.exp %271 : vector<8x128xf32>
    %cst_92 = arith.constant 1.000000e+00 : f32
    %273 = vector.broadcast %cst_92 : f32 to vector<8x128xf32>
    %274 = arith.addf %273, %272 : vector<8x128xf32>
    %275 = arith.divf %273, %274 : vector<8x128xf32>
    %276 = vector.extract_strided_slice %269 {offsets = [0, 128], sizes = [8, 128], strides = [1, 1]} : vector<8x512xf32> to vector<8x128xf32>
    %277 = arith.negf %276 : vector<8x128xf32>
    %278 = math.exp %277 : vector<8x128xf32>
    %cst_93 = arith.constant 1.000000e+00 : f32
    %279 = vector.broadcast %cst_93 : f32 to vector<8x128xf32>
    %280 = arith.addf %279, %278 : vector<8x128xf32>
    %281 = arith.divf %279, %280 : vector<8x128xf32>
    %282 = vector.extract_strided_slice %269 {offsets = [0, 256], sizes = [8, 128], strides = [1, 1]} : vector<8x512xf32> to vector<8x128xf32>
    %283 = math.tanh %282 : vector<8x128xf32>
    %284 = vector.extract_strided_slice %269 {offsets = [0, 384], sizes = [8, 128], strides = [1, 1]} : vector<8x512xf32> to vector<8x128xf32>
    %285 = arith.negf %284 : vector<8x128xf32>
    %286 = math.exp %285 : vector<8x128xf32>
    %cst_94 = arith.constant 1.000000e+00 : f32
    %287 = vector.broadcast %cst_94 : f32 to vector<8x128xf32>
    %288 = arith.addf %287, %286 : vector<8x128xf32>
    %289 = arith.divf %287, %288 : vector<8x128xf32>
    %290 = arith.mulf %281, %2 : vector<8x128xf32>
    %291 = arith.mulf %275, %283 : vector<8x128xf32>
    %292 = arith.addf %290, %291 : vector<8x128xf32>
    %293 = math.tanh %292 : vector<8x128xf32>
    %294 = arith.mulf %289, %293 : vector<8x128xf32>
    %cst_95 = arith.constant dense<0.000000e+00> : vector<8x128xf32>
    %295 = tpu.matmul %294, %1, %cst_95 {dimension_numbers = #tpu.dot_dimension_numbers<[1], [0], [0], [1], [0, 0, 1, 1], [], []>} : vector<8x128xf32>, vector<128x128xf32>, vector<8x128xf32> -> vector<8x128xf32>
    %296 = arith.addf %295, %6 : vector<8x128xf32>
    %297 = arith.index_cast %c6_i32 : i32 to index
    %c0_96 = arith.constant 0 : index
    %c0_97 = arith.constant 0 : index
    %298 = vector.load %arg7[%297, %c0_96, %c0_97] : memref<8x8x128xf32, #tpu.memory_space<vmem>>, vector<1x8x128xf32>
    %299 = vector.shape_cast %298 : vector<1x8x128xf32> to vector<8x128xf32>
    %300 = vector.shape_cast %296 : vector<8x128xf32> to vector<1x8x128xf32>
    tpu.vector_store %arg7[%297, %c0_96, %c0_97], %300 {strides = array<i32>} : memref<8x8x128xf32, #tpu.memory_space<vmem>>, vector<1x8x128xf32>,
    %301 = arith.index_cast %c6_i32 : i32 to index
    %302 = memref.load %arg0[%301] : memref<8xi32, #tpu.memory_space<smem>>
    %c7_i32_98 = arith.constant 7 : i32
    %303 = arith.cmpi slt, %c6_i32, %c7_i32_98 : i32
    %c0_i32_99 = arith.constant 0 : i32
    %304 = arith.cmpi sgt, %302, %c0_i32_99 : i32
    %305 = arith.andi %304, %303 : i1
    %306 = arith.extui %305 : i1 to i32
    %c0_i32_100 = arith.constant 0 : i32
    %307 = arith.cmpi ne, %306, %c0_i32_100 : i32
    scf.if %307 {
      %c1_i32_117 = arith.constant 1 : i32
      %355 = arith.addi %c6_i32, %c1_i32_117 : i32
      %356 = arith.index_cast %355 : i32 to index
      %c0_118 = arith.constant 0 : index
      %c0_119 = arith.constant 0 : index
      %357 = vector.load %arg1[%356, %c0_118, %c0_119] : memref<8x8x512xf32, #tpu.memory_space<vmem>>, vector<1x8x512xf32>
      %358 = vector.shape_cast %357 : vector<1x8x512xf32> to vector<8x512xf32>
      %c0_120 = arith.constant 0 : index
      %c0_121 = arith.constant 0 : index
      %359 = vector.load %arg8[%c0_120, %c0_121] : memref<8x512xf32, #tpu.memory_space<vmem>>, vector<8x512xf32>
      tpu.vector_store %arg8[%c0_120, %c0_121], %358 {strides = array<i32>} : memref<8x512xf32, #tpu.memory_space<vmem>>, vector<8x512xf32>,
    } else {
    }
    %c0_i32_101 = arith.constant 0 : i32
    %308 = arith.cmpi eq, %302, %c0_i32_101 : i32
    %309 = arith.andi %308, %303 : i1
    %310 = arith.extui %309 : i1 to i32
    %c0_i32_102 = arith.constant 0 : i32
    %311 = arith.cmpi ne, %310, %c0_i32_102 : i32
    scf.if %311 {
      %cst_117 = arith.constant dense<0xFF800000> : vector<8xf32>
      %355 = vector.multi_reduction <maximumf>, %296, %cst_117 [1] : vector<8x128xf32> to vector<8xf32>
      %356 = vector.shape_cast %355 : vector<8xf32> to vector<8x1xf32>
      %357 = vector.broadcast %356 : vector<8x1xf32> to vector<8x128xf32>
      %358 = arith.cmpf oeq, %296, %357 : vector<8x128xf32>
      %c128_i32 = arith.constant 128 : i32
      %359 = vector.broadcast %c128_i32 : i32 to vector<8x128xi32>
      %360 = arith.select %358, %7, %359 : vector<8x128xi1>, vector<8x128xi32>
      %cst_118 = arith.constant dense<2147483647> : vector<8xi32>
      %361 = vector.multi_reduction <minsi>, %360, %cst_118 [1] : vector<8x128xi32> to vector<8xi32>
      %362 = vector.shape_cast %361 : vector<8xi32> to vector<8x1xi32>
      %363 = vector.broadcast %362 : vector<8x1xi32> to vector<8x128xi32>
      %364 = arith.cmpi eq, %7, %363 : vector<8x128xi32>
      %365 = arith.extui %364 : vector<8x128xi1> to vector<8x128xi32>
      %366 = arith.sitofp %365 : vector<8x128xi32> to vector<8x128xf32>
      %cst_119 = arith.constant dense<0.000000e+00> : vector<8x512xf32>
      %367 = tpu.matmul %366, %0, %cst_119 {dimension_numbers = #tpu.dot_dimension_numbers<[1], [0], [0], [1], [0, 0, 1, 1], [], []>} : vector<8x128xf32>, vector<128x512xf32>, vector<8x512xf32> -> vector<8x512xf32>
      %368 = arith.addf %367, %3 : vector<8x512xf32>
      %c0_120 = arith.constant 0 : index
      %c0_121 = arith.constant 0 : index
      %369 = vector.load %arg8[%c0_120, %c0_121] : memref<8x512xf32, #tpu.memory_space<vmem>>, vector<8x512xf32>
      tpu.vector_store %arg8[%c0_120, %c0_121], %368 {strides = array<i32>} : memref<8x512xf32, #tpu.memory_space<vmem>>, vector<8x512xf32>,
    } else {
    }
    %c7_i32_103 = arith.constant 7 : i32
    %c0_104 = arith.constant 0 : index
    %c0_105 = arith.constant 0 : index
    %312 = vector.load %arg8[%c0_104, %c0_105] : memref<8x512xf32, #tpu.memory_space<vmem>>, vector<8x512xf32>
    %313 = vector.extract_strided_slice %312 {offsets = [0, 0], sizes = [8, 128], strides = [1, 1]} : vector<8x512xf32> to vector<8x128xf32>
    %314 = arith.negf %313 : vector<8x128xf32>
    %315 = math.exp %314 : vector<8x128xf32>
    %cst_106 = arith.constant 1.000000e+00 : f32
    %316 = vector.broadcast %cst_106 : f32 to vector<8x128xf32>
    %317 = arith.addf %316, %315 : vector<8x128xf32>
    %318 = arith.divf %316, %317 : vector<8x128xf32>
    %319 = vector.extract_strided_slice %312 {offsets = [0, 128], sizes = [8, 128], strides = [1, 1]} : vector<8x512xf32> to vector<8x128xf32>
    %320 = arith.negf %319 : vector<8x128xf32>
    %321 = math.exp %320 : vector<8x128xf32>
    %cst_107 = arith.constant 1.000000e+00 : f32
    %322 = vector.broadcast %cst_107 : f32 to vector<8x128xf32>
    %323 = arith.addf %322, %321 : vector<8x128xf32>
    %324 = arith.divf %322, %323 : vector<8x128xf32>
    %325 = vector.extract_strided_slice %312 {offsets = [0, 256], sizes = [8, 128], strides = [1, 1]} : vector<8x512xf32> to vector<8x128xf32>
    %326 = math.tanh %325 : vector<8x128xf32>
    %327 = vector.extract_strided_slice %312 {offsets = [0, 384], sizes = [8, 128], strides = [1, 1]} : vector<8x512xf32> to vector<8x128xf32>
    %328 = arith.negf %327 : vector<8x128xf32>
    %329 = math.exp %328 : vector<8x128xf32>
    %cst_108 = arith.constant 1.000000e+00 : f32
    %330 = vector.broadcast %cst_108 : f32 to vector<8x128xf32>
    %331 = arith.addf %330, %329 : vector<8x128xf32>
    %332 = arith.divf %330, %331 : vector<8x128xf32>
    %333 = arith.mulf %324, %2 : vector<8x128xf32>
    %334 = arith.mulf %318, %326 : vector<8x128xf32>
    %335 = arith.addf %333, %334 : vector<8x128xf32>
    %336 = math.tanh %335 : vector<8x128xf32>
    %337 = arith.mulf %332, %336 : vector<8x128xf32>
    %cst_109 = arith.constant dense<0.000000e+00> : vector<8x128xf32>
    %338 = tpu.matmul %337, %1, %cst_109 {dimension_numbers = #tpu.dot_dimension_numbers<[1], [0], [0], [1], [0, 0, 1, 1], [], []>} : vector<8x128xf32>, vector<128x128xf32>, vector<8x128xf32> -> vector<8x128xf32>
    %339 = arith.addf %338, %6 : vector<8x128xf32>
    %340 = arith.index_cast %c7_i32_103 : i32 to index
    %c0_110 = arith.constant 0 : index
    %c0_111 = arith.constant 0 : index
    %341 = vector.load %arg7[%340, %c0_110, %c0_111] : memref<8x8x128xf32, #tpu.memory_space<vmem>>, vector<1x8x128xf32>
    %342 = vector.shape_cast %341 : vector<1x8x128xf32> to vector<8x128xf32>
    %343 = vector.shape_cast %339 : vector<8x128xf32> to vector<1x8x128xf32>
    tpu.vector_store %arg7[%340, %c0_110, %c0_111], %343 {strides = array<i32>} : memref<8x8x128xf32, #tpu.memory_space<vmem>>, vector<1x8x128xf32>,
    %344 = arith.index_cast %c7_i32_103 : i32 to index
    %345 = memref.load %arg0[%344] : memref<8xi32, #tpu.memory_space<smem>>
    %c7_i32_112 = arith.constant 7 : i32
    %346 = arith.cmpi slt, %c7_i32_103, %c7_i32_112 : i32
    %c0_i32_113 = arith.constant 0 : i32
    %347 = arith.cmpi sgt, %345, %c0_i32_113 : i32
    %348 = arith.andi %347, %346 : i1
    %349 = arith.extui %348 : i1 to i32
    %c0_i32_114 = arith.constant 0 : i32
    %350 = arith.cmpi ne, %349, %c0_i32_114 : i32
    scf.if %350 {
      %c1_i32_117 = arith.constant 1 : i32
      %355 = arith.addi %c7_i32_103, %c1_i32_117 : i32
      %356 = arith.index_cast %355 : i32 to index
      %c0_118 = arith.constant 0 : index
      %c0_119 = arith.constant 0 : index
      %357 = vector.load %arg1[%356, %c0_118, %c0_119] : memref<8x8x512xf32, #tpu.memory_space<vmem>>, vector<1x8x512xf32>
      %358 = vector.shape_cast %357 : vector<1x8x512xf32> to vector<8x512xf32>
      %c0_120 = arith.constant 0 : index
      %c0_121 = arith.constant 0 : index
      %359 = vector.load %arg8[%c0_120, %c0_121] : memref<8x512xf32, #tpu.memory_space<vmem>>, vector<8x512xf32>
      tpu.vector_store %arg8[%c0_120, %c0_121], %358 {strides = array<i32>} : memref<8x512xf32, #tpu.memory_space<vmem>>, vector<8x512xf32>,
    } else {
    }
    %c0_i32_115 = arith.constant 0 : i32
    %351 = arith.cmpi eq, %345, %c0_i32_115 : i32
    %352 = arith.andi %351, %346 : i1
    %353 = arith.extui %352 : i1 to i32
    %c0_i32_116 = arith.constant 0 : i32
    %354 = arith.cmpi ne, %353, %c0_i32_116 : i32
    scf.if %354 {
      %cst_117 = arith.constant dense<0xFF800000> : vector<8xf32>
      %355 = vector.multi_reduction <maximumf>, %339, %cst_117 [1] : vector<8x128xf32> to vector<8xf32>
      %356 = vector.shape_cast %355 : vector<8xf32> to vector<8x1xf32>
      %357 = vector.broadcast %356 : vector<8x1xf32> to vector<8x128xf32>
      %358 = arith.cmpf oeq, %339, %357 : vector<8x128xf32>
      %c128_i32 = arith.constant 128 : i32
      %359 = vector.broadcast %c128_i32 : i32 to vector<8x128xi32>
      %360 = arith.select %358, %7, %359 : vector<8x128xi1>, vector<8x128xi32>
      %cst_118 = arith.constant dense<2147483647> : vector<8xi32>
      %361 = vector.multi_reduction <minsi>, %360, %cst_118 [1] : vector<8x128xi32> to vector<8xi32>
      %362 = vector.shape_cast %361 : vector<8xi32> to vector<8x1xi32>
      %363 = vector.broadcast %362 : vector<8x1xi32> to vector<8x128xi32>
      %364 = arith.cmpi eq, %7, %363 : vector<8x128xi32>
      %365 = arith.extui %364 : vector<8x128xi1> to vector<8x128xi32>
      %366 = arith.sitofp %365 : vector<8x128xi32> to vector<8x128xf32>
      %cst_119 = arith.constant dense<0.000000e+00> : vector<8x512xf32>
      %367 = tpu.matmul %366, %0, %cst_119 {dimension_numbers = #tpu.dot_dimension_numbers<[1], [0], [0], [1], [0, 0, 1, 1], [], []>} : vector<8x128xf32>, vector<128x512xf32>, vector<8x512xf32> -> vector<8x512xf32>
      %368 = arith.addf %367, %3 : vector<8x512xf32>
      %c0_120 = arith.constant 0 : index
      %c0_121 = arith.constant 0 : index
      %369 = vector.load %arg8[%c0_120, %c0_121] : memref<8x512xf32, #tpu.memory_space<vmem>>, vector<8x512xf32>
      tpu.vector_store %arg8[%c0_120, %c0_121], %368 {strides = array<i32>} : memref<8x512xf32, #tpu.memory_space<vmem>>, vector<8x512xf32>,
    } else {
    }
    %c8_i32 = arith.constant 8 : i32
    return
  }
}

</mosaic_0001>

<bundles_post_ra>
// kernel: _decoder_forward_impl.1
= control target key start
LH: loop header
LB: loop body
LE: loop exit
PB: predicated region body
PF: predicated region fallthrough
CT: control target
= control target key end

     0   :  { %12 = vsyncpa [#allocation4], 0  ;;  %s4341_s0 = inlined_call_operand.vmem [shape: s32[8], index: 0, kind: input, shape index: {}]   ;;  %s4342_s1 = inlined_call_operand.vmem [shape: f32[8,8,512], index: 1, kind: input, shape index: {}]   ;;  %s4343_s2 = inlined_call_operand.vmem [shape: f32[128,512], index: 2, kind: input, shape index: {}]   ;;  %s4344_s3 = inlined_call_operand.vmem [shape: f32[8,512], index: 3, kind: input, shape index: {}]   ;;  %s4345_s4 = inlined_call_operand.vmem [shape: f32[128,128], index: 4, kind: input, shape index: {}]   ;;  %s4346_s5 = inlined_call_operand.vmem [shape: f32[1,128], index: 5, kind: input, shape index: {}]   ;;  %s4347_s6 = inlined_call_operand.vmem [shape: f32[8,128], index: 6, kind: input, shape index: {}]   ;;  %s4348_s7 = inlined_call_operand.vmem [shape: f32[8,8,128], index: 7, kind: output, shape index: {}]  }
   0x1   :  { %s19_s26 = sshll.u32 %s4341_s0, 4  ;;  %s20_s26 = int_to_ptr.vmem [resolvable:$true] %s19_s26 }
   0x2   :  { %s2902_s27 = scalar_lea.vmem %s20_s26, 16  ;;  %p2907_p1 = scmp.lt.s32.totalorder %s20_s26, %s20_s26 }
   0x3   :  { %p2903_p0 = scmp.ne.s32.totalorder %s20_s26, %s2902_s27  ;;  %p2908_p2 = scmp.lt.s32.totalorder %s2902_s27, %s2902_s27 }
   0x5   :  { %p2909_p3 = por %p2908_p2, %p2907_p1 }
   0x7   :  { %p2910_p4 = pnand %p2909_p3, %p2903_p0 }
   0x9   :  { %2913 = shalt.err (!%p2910_p4)
}
   0xa   :  { %s2916_s28 = smov [#allocation3]  }
   0xb   :  { %22 = dma.vmem_to_smem %s20_s26, 16, %s2916_s28, [#allocation4]  }
   0xc   :  { %2914 = dma.done.wait [#allocation4], 16  }
   0xd   :  { %2915 = vsyncadd [#allocation4], 4294967280 }
   0xe   :  { %38 = sfence }
   0xf   :  { %v2979_v0 = vld [vmem:[%s4343_s2] sm:$0xff]  ;;  %v2984_v1 = vld [vmem:[%s4343_s2 + $0x8] sm:$0xff]  ;;  %v2989_v2 = vld [vmem:[%s4343_s2 + $0x10] sm:$0xff]  ;;  %v131_v3 = vlaneseq  ;;  %v4349_v7 = vmov 0.0   ;;  %vm2918_vm0 = vmmov 0  }
  0x10   :  { %4386 = vst [vmem:[#allocation6_spill] sm:$0xff] %v2979_v0  ;;  %4387 = vst [vmem:[#allocation7_spill] sm:$0xff] %v2984_v1  ;;  %v2994_v4 = vld [vmem:[%s4343_s2 + $0x18] sm:$0xff]  ;;  %v2999_v5 = vld [vmem:[%s4343_s2 + $0x20] sm:$0xff]  ;;  %2477 = vmatprep.subr.mxu0 %v4349_v7  ;;  %2509 = vmatprep.mubr.msk.f32.mxu0 %vm2918_vm0, %v4349_v7 }
  0x11   :  { %4388 = vst [vmem:[#allocation8_spill] sm:$0xff] %v2989_v2  ;;  %4389 = vst [vmem:[#allocation9_spill] sm:$0xff] %v2994_v4  ;;  %v3004_v6 = vld [vmem:[%s4343_s2 + $0x28] sm:$0xff]  ;;  %v3012_v8 = vld [vmem:[%s4343_s2 + $0x30] sm:$0xff]  ;;  %v3024_v11 = vand.u32 127, %v131_v3 }
  0x12   :  { %4390 = vst [vmem:[#allocation10_spill] sm:$0xff] %v2999_v5  ;;  %4391 = vst [vmem:[#allocation11_spill] sm:$0xff] %v3004_v6  ;;  %v3017_v9 = vld [vmem:[%s4343_s2 + $0x38] sm:$0xff]  ;;  %v3022_v10 = vld [vmem:[%s4343_s2 + $0x40] sm:$0xff] }
  0x13   :  { %4392 = vst [vmem:[#allocation12_spill] sm:$0xff] %v3012_v8  ;;  %4393 = vst [vmem:[#allocation13_spill] sm:$0xff] %v3017_v9  ;;  %v3029_v12 = vld [vmem:[%s4343_s2 + $0x48] sm:$0xff]  ;;  %v3034_v13 = vld [vmem:[%s4343_s2 + $0x50] sm:$0xff] }
  0x14   :  { %4394 = vst [vmem:[#allocation14_spill] sm:$0xff] %v3022_v10  ;;  %4395 = vst [vmem:[#allocation15_spill] sm:$0xff] %v3024_v11  ;;  %v3039_v14 = vld [vmem:[%s4343_s2 + $0x58] sm:$0xff]  ;;  %v3044_v15 = vld [vmem:[%s4343_s2 + $0x60] sm:$0xff] }
  0x15   :  { %4396 = vst [vmem:[#allocation16_spill] sm:$0xff] %v3029_v12  ;;  %4397 = vst [vmem:[#allocation17_spill] sm:$0xff] %v3034_v13  ;;  %v3049_v16 = vld [vmem:[%s4343_s2 + $0x68] sm:$0xff]  ;;  %v3054_v17 = vld [vmem:[%s4343_s2 + $0x70] sm:$0xff] }
  0x16   :  { %4398 = vst [vmem:[#allocation18_spill] sm:$0xff] %v3039_v14  ;;  %4399 = vst [vmem:[#allocation19_spill] sm:$0xff] %v3044_v15  ;;  %v3059_v18 = vld [vmem:[%s4343_s2 + $0x78] sm:$0xff]  ;;  %v3064_v19 = vld [vmem:[%s4343_s2 + $0x80] sm:$0xff] }
  0x17   :  { %4400 = vst [vmem:[#allocation20_spill] sm:$0xff] %v3049_v16  ;;  %4401 = vst [vmem:[#allocation21_spill] sm:$0xff] %v3054_v17  ;;  %v3069_v20 = vld [vmem:[%s4343_s2 + $0x88] sm:$0xff]  ;;  %v3074_v21 = vld [vmem:[%s4343_s2 + $0x90] sm:$0xff] }
  0x18   :  { %4402 = vst [vmem:[#allocation22_spill] sm:$0xff] %v3059_v18  ;;  %4403 = vst [vmem:[#allocation23_spill] sm:$0xff] %v3064_v19  ;;  %v3079_v22 = vld [vmem:[%s4343_s2 + $0x98] sm:$0xff]  ;;  %v3084_v23 = vld [vmem:[%s4343_s2 + $0xa0] sm:$0xff] }
  0x19   :  { %4404 = vst [vmem:[#allocation24_spill] sm:$0xff] %v3074_v21  ;;  %4405 = vst [vmem:[#allocation25_spill] sm:$0xff] %v3079_v22  ;;  %v3089_v24 = vld [vmem:[%s4343_s2 + $0xa8] sm:$0xff]  ;;  %v3094_v25 = vld [vmem:[%s4343_s2 + $0xb0] sm:$0xff] }
  0x1a   :  { %v3099_v26 = vld [vmem:[%s4343_s2 + $0xb8] sm:$0xff]  ;;  %v3104_v27 = vld [vmem:[%s4343_s2 + $0xc0] sm:$0xff]  ;;  %v3109_v28 = vld [vmem:[%s4343_s2 + $0xc8] sm:$0xff] }
  0x1b   :  { %v3114_v29 = vld [vmem:[%s4343_s2 + $0xd0] sm:$0xff]  ;;  %v3119_v30 = vld [vmem:[%s4343_s2 + $0xd8] sm:$0xff]  ;;  %v3124_v31 = vld [vmem:[%s4343_s2 + $0xe0] sm:$0xff] }
  0x1c   :  { %v3129_v32 = vld [vmem:[%s4343_s2 + $0xe8] sm:$0xff]  ;;  %v3134_v33 = vld [vmem:[%s4343_s2 + $0xf0] sm:$0xff]  ;;  %v3139_v34 = vld [vmem:[%s4343_s2 + $0xf8] sm:$0xff] }
  0x1d   :  { %v3144_v35 = vld [vmem:[%s4343_s2 + $0x100] sm:$0xff]  ;;  %v3149_v36 = vld [vmem:[%s4343_s2 + $0x108] sm:$0xff]  ;;  %v3154_v37 = vld [vmem:[%s4343_s2 + $0x110] sm:$0xff] }
  0x1e   :  { %v3159_v38 = vld [vmem:[%s4343_s2 + $0x118] sm:$0xff]  ;;  %v3164_v39 = vld [vmem:[%s4343_s2 + $0x120] sm:$0xff]  ;;  %v3169_v40 = vld [vmem:[%s4343_s2 + $0x128] sm:$0xff] }
  0x1f   :  { %v3174_v41 = vld [vmem:[%s4343_s2 + $0x130] sm:$0xff]  ;;  %v3179_v42 = vld [vmem:[%s4343_s2 + $0x138] sm:$0xff]  ;;  %v3184_v43 = vld [vmem:[%s4343_s2 + $0x140] sm:$0xff] }
  0x20   :  { %v3189_v44 = vld [vmem:[%s4343_s2 + $0x148] sm:$0xff]  ;;  %v3194_v45 = vld [vmem:[%s4343_s2 + $0x150] sm:$0xff]  ;;  %v3199_v46 = vld [vmem:[%s4343_s2 + $0x158] sm:$0xff] }
  0x21   :  { %v3204_v47 = vld [vmem:[%s4343_s2 + $0x160] sm:$0xff]  ;;  %v3209_v48 = vld [vmem:[%s4343_s2 + $0x168] sm:$0xff]  ;;  %v3214_v49 = vld [vmem:[%s4343_s2 + $0x170] sm:$0xff] }
  0x22   :  { %v3219_v50 = vld [vmem:[%s4343_s2 + $0x178] sm:$0xff]  ;;  %v3224_v51 = vld [vmem:[%s4343_s2 + $0x180] sm:$0xff]  ;;  %v3229_v52 = vld [vmem:[%s4343_s2 + $0x188] sm:$0xff] }
  0x23   :  { %v3234_v53 = vld [vmem:[%s4343_s2 + $0x190] sm:$0xff]  ;;  %v3239_v54 = vld [vmem:[%s4343_s2 + $0x198] sm:$0xff]  ;;  %v3244_v55 = vld [vmem:[%s4343_s2 + $0x1a0] sm:$0xff] }
  0x24   :  { %v3249_v56 = vld [vmem:[%s4343_s2 + $0x1a8] sm:$0xff]  ;;  %v3254_v57 = vld [vmem:[%s4343_s2 + $0x1b0] sm:$0xff]  ;;  %v3259_v58 = vld [vmem:[%s4343_s2 + $0x1b8] sm:$0xff] }
  0x25   :  { %v3264_v59 = vld [vmem:[%s4343_s2 + $0x1c0] sm:$0xff]  ;;  %v3269_v60 = vld [vmem:[%s4343_s2 + $0x1c8] sm:$0xff]  ;;  %v3274_v61 = vld [vmem:[%s4343_s2 + $0x1d0] sm:$0xff] }
  0x26   :  { %v3279_v62 = vld [vmem:[%s4343_s2 + $0x1d8] sm:$0xff]  ;;  %v3284_v63 = vld [vmem:[%s4343_s2 + $0x1e0] sm:$0xff]  ;;  %v3289_v3 = vld [vmem:[%s4343_s2 + $0x1e8] sm:$0xff] }
  0x27   :  { %v3294_v7 = vld [vmem:[%s4343_s2 + $0x1f0] sm:$0xff]  ;;  %v3299_v11 = vld [vmem:[%s4343_s2 + $0x1f8] sm:$0xff]  ;;  %v3304_v2 = vld [vmem:[%s4344_s3] sm:$0xff] }
  0x28   :  { %4406 = vst [vmem:[#allocation26_spill] sm:$0xff] %v3304_v2  ;;  %v3309_v0 = vld [vmem:[%s4344_s3 + $0x8] sm:$0xff]  ;;  %v3314_v4 = vld [vmem:[%s4344_s3 + $0x10] sm:$0xff]  ;;  %v3319_v1 = vld [vmem:[%s4344_s3 + $0x18] sm:$0xff]  ;;  %v4412_v2 = vmov 0.0  }
  0x29   :  { %4407 = vst [vmem:[#allocation27_spill] sm:$0xff] %v3309_v0  ;;  %4408 = vst [vmem:[#allocation28_spill] sm:$0xff] %v3314_v4  ;;  %v3324_v8 = vld [vmem:[%s4345_s4 + $0x78] sm:$0xff]  ;;  %v3330_v0 = vld [vmem:[%s4345_s4 + $0x70] sm:$0xff] }
  0x2a   :  { %4409 = vst [vmem:[#allocation29_spill] sm:$0xff] %v3319_v1  ;;  %4410 = vst [vmem:[#allocation30_spill] sm:$0xff] %v3324_v8  ;;  %2478 = vmatpush3.msra.mxu0 %v3324_v8  ;;  %v3336_v4 = vld [vmem:[%s4345_s4 + $0x68] sm:$0xff]  ;;  %v3343_v8 = vld [vmem:[%s4345_s4 + $0x60] sm:$0xff] }
  0x2b   :  { %4411 = vst [vmem:[#allocation31_spill] sm:$0xff] %v3330_v0  ;;  %2479 = vmatprep.subr.mxu0 %v4412_v2  ;;  %4413 = vst [vmem:[#allocation32_spill] sm:$0xff] %v3336_v4  ;;  %v3350_v1 = vld [vmem:[%s4345_s4 + $0x58] sm:$0xff]  ;;  %v134_v5 = vld [vmem:[%s4342_s1 + $0x8] sm:$0xff] }
  0x2c   :  { %2480 = vmatpush3.msra.mxu0 %v3330_v0  ;;  %4414 = vst [vmem:[#allocation33_spill] sm:$0xff] %v3343_v8  ;;  %4415 = vst [vmem:[#allocation34_spill] sm:$0xff] %v3350_v1  ;;  %v133_v0 = vld [vmem:[%s4342_s1] sm:$0xff]  ;;  %v136_v9 = vld [vmem:[%s4342_s1 + $0x18] sm:$0xff]  ;;  %v2242_v13 = vmul.f32 -1.442695, %v134_v5 }
  0x2d   :  { %2481 = vmatprep.subr.mxu0 %v4412_v2  ;;  %137 = vst [vmem:[#allocation2 + $0x10] sm:$0xff] %v133_v0  ;;  %138 = vst [vmem:[#allocation2] sm:$0xff] %v134_v5  ;;  %v2241_v6 = vmul.f32 -1.442695, %v133_v0  ;;  %v3369_v10 = vld [vmem:[%s4345_s4 + $0x50] sm:$0xff]  ;;  %v3383_v0 = vld [vmem:[%s4345_s4 + $0x40] sm:$0xff] }
  0x2e   :  { %2482 = vmatpush3.msra.mxu0 %v3336_v4  ;;  %v135_v4 = vld [vmem:[%s4342_s1 + $0x10] sm:$0xff]  ;;  %4416 = vst [vmem:[#allocation35_spill] sm:$0xff] %v3369_v10  ;;  %140 = vst [vmem:[#allocation2 + $0x8] sm:$0xff] %v136_v9  ;;  %v3390_v5 = vld [vmem:[%s4345_s4 + $0x38] sm:$0xff] }
  0x2f   :  { %2483 = vmatprep.subr.mxu0 %v4412_v2  ;;  %139 = vst [vmem:[#allocation2 + $0x18] sm:$0xff] %v135_v4  ;;  %2774 = vpow2.f32 %v2241_v6  ;;  %4418 = vst [vmem:[#allocation37_spill] sm:$0xff] %v3383_v0  ;;  %v3397_v6 = vld [vmem:[%s4345_s4 + $0x30] sm:$0xff] }
  0x30   :  { %2484 = vmatpush3.msra.mxu0 %v3343_v8  ;;  %v3376_v8 = vld [vmem:[%s4345_s4 + $0x48] sm:$0xff]  ;;  %2776 = vpow2.f32 %v2242_v13  ;;  %4419 = vst [vmem:[#allocation38_spill] sm:$0xff] %v3390_v5  ;;  %4420 = vst [vmem:[#allocation39_spill] sm:$0xff] %v3397_v6 }
  0x31   :  { %2485 = vmatprep.subr.mxu0 %v4412_v2  ;;  %4417 = vst [vmem:[#allocation36_spill] sm:$0xff] %v3376_v8  ;;  %v3404_v13 = vld [vmem:[%s4345_s4 + $0x28] sm:$0xff] }
  0x32   :  { %2486 = vmatpush3.msra.mxu0 %v3350_v1  ;;  %4421 = vst [vmem:[#allocation40_spill] sm:$0xff] %v3404_v13 }
  0x33   :  { %2487 = vmatprep.subr.mxu0 %v4412_v2 }
  0x34   :  { %2488 = vmatpush3.msra.mxu0 %v3369_v10  ;;  %v3418_v10 = vld [vmem:[%s4345_s4 + $0x18] sm:$0xff] }
  0x35   :  { %2489 = vmatprep.subr.mxu0 %v4412_v2  ;;  %4423 = vst [vmem:[#allocation42_spill] sm:$0xff] %v3418_v10 }
  0x36   :  { %2490 = vmatpush3.msra.mxu0 %v3376_v8  ;;  %v2243_v8 = vmul.f32 -1.442695, %v136_v9 }
  0x37   :  { %2491 = vmatprep.subr.mxu0 %v4412_v2 }
  0x38   :  { %2492 = vmatpush3.msra.mxu0 %v3383_v0  ;;  %v3411_v0 = vld [vmem:[%s4345_s4 + $0x20] sm:$0xff]  ;;  %2778 = vpow2.f32 %v2243_v8  ;;  %v3432_v8 = vld [vmem:[%s4345_s4 + $0x8] sm:$0xff] }
  0x39   :  { %2493 = vmatprep.subr.mxu0 %v4412_v2  ;;  %4422 = vst [vmem:[#allocation41_spill] sm:$0xff] %v3411_v0  ;;  %2780 = vtanh.f32 %v135_v4  ;;  %4425 = vst [vmem:[#allocation44_spill] sm:$0xff] %v3432_v8  ;;  %v3439_v4 = vld [vmem:[%s4345_s4] sm:$0xff] }
  0x3a   :  { %2494 = vmatpush3.msra.mxu0 %v3390_v5  ;;  %4426 = vst [vmem:[#allocation45_spill] sm:$0xff] %v3439_v4 }
  0x3b   :  { %2495 = vmatprep.subr.mxu0 %v4412_v2 }
  0x3c   :  { %2496 = vmatpush3.msra.mxu0 %v3397_v6  ;;  %v2775_v5 = vpop.eup %2774 }
  0x3d   :  { %2497 = vmatprep.subr.mxu0 %v4412_v2  ;;  %v2777_v9 = vpop.eup %2776  ;;  %v148_v6 = vadd.f32 1.0, %v2775_v5 }
  0x3e   :  { %2498 = vmatpush3.msra.mxu0 %v3404_v13  ;;  %v3425_v13 = vld [vmem:[%s4345_s4 + $0x10] sm:$0xff]  ;;  %v154_v1 = vadd.f32 1.0, %v2777_v9  ;;  %s240_s4 = sld [smem:[#allocation3]] }
  0x3f   :  { %2499 = vmatprep.subr.mxu0 %v4412_v2  ;;  %4424 = vst [vmem:[#allocation43_spill] sm:$0xff] %v3425_v13  ;;  %2782 = vrcp.f32 %v148_v6 }
  0x40   :  { %2500 = vmatpush3.msra.mxu0 %v3411_v0  ;;  %2784 = vrcp.f32 %v154_v1  ;;  %v3447_v1 = vld [vmem:[%s4347_s6] sm:$0xff] }
  0x41   :  { %2501 = vmatprep.subr.mxu0 %v4412_v2 }
  0x42   :  { %2502 = vmatpush3.msra.mxu0 %v3418_v10 }
  0x43   :  { %2503 = vmatprep.subr.mxu0 %v4412_v2 }
  0x44   :  { %2504 = vmatpush3.msra.mxu0 %v3425_v13  ;;  %p2244_p5 = scmp.le.s32.totalorder %s240_s4, 0 }
  0x45   :  { %2505 = vmatprep.subr.mxu0 %v4412_v2  ;;  %v2779_v5 = vpop.eup %2778 }
  0x46   :  { %2506 = vmatpush3.msra.mxu0 %v3432_v8  ;;  %v2781_v6 = vpop.eup %2780  ;;  %v161_v13 = vadd.f32 1.0, %v2779_v5 }
  0x47   :  { %2507 = vmatprep.subr.mxu0 %v4412_v2 }
  0x48   :  { %2508 = vmatpush3.msra.mxu0 %v3439_v4  ;;  %2786 = vrcp.f32 %v161_v13  ;;  %v3453_v4 = vld [vmem:[%s4346_s5] ss:$0 sm:$0xff] }
  0x4c   :  { %v2783_v9 = vpop.eup %2782 }
  0x4d   :  { %v2785_v10 = vpop.eup %2784  ;;  %v165_v0 = vmul.f32 %v2783_v9, %v2781_v6 }
  0x4e   :  { %v164_v14 = vmul.f32 %v2785_v10, %v3447_v1 }
  0x50   :  { %v166_v12 = vadd.f32 %v165_v0, %v164_v14 }
  0x52   :  { %2788 = vtanh.f32 %v166_v12 }
  0x55   :  { %v2787_v8 = vpop.eup %2786 }
  0x5f   :  { %v2789_v2 = vpop.eup %2788 }
  0x60   :  { %v168_v17 = vmul.f32 %v2789_v2, %v2787_v8 }
  0x62   :  { %2510 = vmatmul.mubr.f32.vlgmr.msra.gmra.mxu0 %v168_v17 }
 0x121   :  { %244 = sbr.rel (%p2244_p5) target bundleno = 297 (0x129), region = 37 }
 0x122   :  { %v235_v15 = vpop.f32.mrf.mxu0 }
 0x123   :  { %v3456_v5 = vadd.f32 %v3453_v4, %v235_v15 }
 0x124   :  { %v2511_v6 = vpop.f32.mrf.mxu0 }
 0x125   :  { %239 = vst [vmem:[%s4348_s7] sm:$0xff] %v3456_v5 }
 0x126   :  { %v2245_v10 = vld [vmem:[%s4342_s1 + $0x20] sm:$0xff]  ;;  %v2246_v12 = vld [vmem:[%s4342_s1 + $0x28] sm:$0xff]  ;;  %v2247_v14 = vld [vmem:[%s4342_s1 + $0x30] sm:$0xff] }
 0x127   :  { %250 = vst [vmem:[#allocation2 + $0x10] sm:$0xff] %v2245_v10  ;;  %251 = vst [vmem:[#allocation2] sm:$0xff] %v2246_v12  ;;  %v2248_v15 = vld [vmem:[%s4342_s1 + $0x38] sm:$0xff] }
 0x128   :  { %252 = vst [vmem:[#allocation2 + $0x18] sm:$0xff] %v2247_v14  ;;  %253 = vst [vmem:[#allocation2 + $0x8] sm:$0xff] %v2248_v15 }
 0x129 PF:  { %p2249_p6 = scmp.ne.s32.totalorder %s240_s4, 0 }
 0x12b   :  { %257 = sbr.rel (%p2249_p6) target bundleno = 929 (0x3a1), region = 41 }
 0x130   :  { %258 = vmax.xlane.f32.xlu0 %v3456_v5  ;;  %279 = vmatprep.subr.mxu0 %v3289_v3  ;;  %v4427_v17 = vld [vmem:[#allocation19_spill] sm:$0xff]  ;;  %v4428_v0 = vld [vmem:[#allocation21_spill] sm:$0xff]  ;;  %v4429_v13 = vld [vmem:[#allocation16_spill] sm:$0xff] }
 0x131   :  { %350 = vmatprep.subr.mxu1 %v3299_v11  ;;  %280 = vmatpush1.msra.mxu0 %v3284_v63  ;;  %v4430_v8 = vld [vmem:[#allocation18_spill] sm:$0xff]  ;;  %v4432_v2 = vld [vmem:[#allocation17_spill] sm:$0xff]  ;;  %v4433_v6 = vld [vmem:[#allocation11_spill] sm:$0xff] }
 0x132   :  { %351 = vmatpush1.msra.mxu1 %v3294_v7  ;;  %281 = vmatprep.subr.mxu0 %v3269_v60  ;;  %v4431_v9 = vld [vmem:[#allocation14_spill] sm:$0xff]  ;;  %v4434_v10 = vld [vmem:[#allocation13_spill] sm:$0xff]  ;;  %v4436_v14 = vld [vmem:[#allocation12_spill] sm:$0xff] }
 0x133   :  { %352 = vmatprep.subr.mxu1 %v3279_v62  ;;  %282 = vmatpush1.msra.mxu0 %v3264_v59  ;;  %v4435_v12 = vld [vmem:[#allocation10_spill] sm:$0xff]  ;;  %v4437_v15 = vld [vmem:[#allocation7_spill] sm:$0xff] }
 0x134   :  { %353 = vmatpush1.msra.mxu1 %v3274_v61  ;;  %283 = vmatprep.subr.mxu0 %v3249_v56 }
 0x135   :  { %354 = vmatprep.subr.mxu1 %v3259_v58  ;;  %284 = vmatpush1.msra.mxu0 %v3244_v55 }
 0x136   :  { %355 = vmatpush1.msra.mxu1 %v3254_v57  ;;  %285 = vmatprep.subr.mxu0 %v3229_v52 }
 0x137   :  { %356 = vmatprep.subr.mxu1 %v3239_v54  ;;  %286 = vmatpush1.msra.mxu0 %v3224_v51 }
 0x138   :  { %357 = vmatpush1.msra.mxu1 %v3234_v53  ;;  %287 = vmatprep.subr.mxu0 %v3209_v48 }
 0x139   :  { %358 = vmatprep.subr.mxu1 %v3219_v50  ;;  %288 = vmatpush1.msra.mxu0 %v3204_v47 }
 0x13a   :  { %359 = vmatpush1.msra.mxu1 %v3214_v49  ;;  %289 = vmatprep.subr.mxu0 %v3189_v44 }
 0x13b   :  { %360 = vmatprep.subr.mxu1 %v3199_v46  ;;  %290 = vmatpush1.msra.mxu0 %v3184_v43 }
 0x13c   :  { %361 = vmatpush1.msra.mxu1 %v3194_v45  ;;  %291 = vmatprep.subr.mxu0 %v3169_v40 }
 0x13d   :  { %362 = vmatprep.subr.mxu1 %v3179_v42  ;;  %292 = vmatpush1.msra.mxu0 %v3164_v39 }
 0x13e   :  { %363 = vmatpush1.msra.mxu1 %v3174_v41  ;;  %293 = vmatprep.subr.mxu0 %v3149_v36 }
 0x13f   :  { %364 = vmatprep.subr.mxu1 %v3159_v38  ;;  %294 = vmatpush1.msra.mxu0 %v3144_v35 }
 0x140   :  { %365 = vmatpush1.msra.mxu1 %v3154_v37  ;;  %295 = vmatprep.subr.mxu0 %v3129_v32 }
 0x141   :  { %366 = vmatprep.subr.mxu1 %v3139_v34  ;;  %296 = vmatpush1.msra.mxu0 %v3124_v31 }
 0x142   :  { %367 = vmatpush1.msra.mxu1 %v3134_v33  ;;  %297 = vmatprep.subr.mxu0 %v3109_v28 }
 0x143   :  { %368 = vmatprep.subr.mxu1 %v3119_v30  ;;  %298 = vmatpush1.msra.mxu0 %v3104_v27 }
 0x144   :  { %369 = vmatpush1.msra.mxu1 %v3114_v29  ;;  %299 = vmatprep.subr.mxu0 %v3089_v24 }
 0x145   :  { %370 = vmatprep.subr.mxu1 %v3099_v26  ;;  %300 = vmatpush1.msra.mxu0 %v3084_v23 }
 0x146   :  { %371 = vmatpush1.msra.mxu1 %v3094_v25  ;;  %301 = vmatprep.subr.mxu0 %v3069_v20 }
 0x147   :  { %372 = vmatprep.subr.mxu1 %v3079_v22  ;;  %302 = vmatpush1.msra.mxu0 %v3064_v19 }
 0x148   :  { %373 = vmatpush1.msra.mxu1 %v3074_v21  ;;  %303 = vmatprep.subr.mxu0 %v3049_v16 }
 0x149   :  { %374 = vmatprep.subr.mxu1 %v3059_v18  ;;  %304 = vmatpush1.msra.mxu0 %v4427_v17  ;;  %v4438_v17 = vld [vmem:[#allocation9_spill] sm:$0xff] }
 0x14a   :  { %375 = vmatpush1.msra.mxu1 %v4428_v0  ;;  %305 = vmatprep.subr.mxu0 %v4429_v13  ;;  %v4439_v0 = vld [vmem:[#allocation6_spill] sm:$0xff]  ;;  %v4440_v13 = vld [vmem:[#allocation8_spill] sm:$0xff] }
 0x14b   :  { %376 = vmatprep.subr.mxu1 %v4430_v8  ;;  %306 = vmatpush1.msra.mxu0 %v4431_v9  ;;  %v4441_v9 = vld [vmem:[#allocation15_spill] sm:$0xff] }
 0x14c   :  { %377 = vmatpush1.msra.mxu1 %v4432_v2  ;;  %307 = vmatprep.subr.mxu0 %v4433_v6 }
 0x14d   :  { %378 = vmatprep.subr.mxu1 %v4434_v10  ;;  %308 = vmatpush1.msra.mxu0 %v4435_v12 }
 0x14e   :  { %379 = vmatpush1.msra.mxu1 %v4436_v14  ;;  %309 = vmatprep.subr.mxu0 %v4437_v15  ;;  %v2919_v15 = vmov 0.0  }
 0x14f   :  { %380 = vmatprep.subr.mxu1 %v4438_v17  ;;  %310 = vmatpush1.msra.mxu0 %v4439_v0 }
 0x150   :  { %381 = vmatpush1.msra.mxu1 %v4440_v13  ;;  %343 = vmatprep.mubr.f32.mxu0 %v2919_v15 }
 0x151   :  { %414 = vmatprep.mubr.f32.mxu1 %v2919_v15 }
 0x1b9   :  { %v259_v8 = vpop.xlane.xlu0 %258 }
 0x1ba   :  { %vm260_vm1 = vcmp.eq.f32.partialorder %v3456_v5, %v259_v8  ;;  %v2920_v5 = vmov 1.0  }
 0x1bb   :  { %v261_v2 = vsel %vm260_vm1, %v4441_v9, 128 }
 0x1bc   :  { %v263_v6 = vshra.s32 %v261_v2, 16  ;;  %v262_v10 = vand.u32 65535, %v261_v2 }
 0x1be   :  { %v265_v18 = vcvt.s32.f32 %v263_v6  ;;  %v264_v16 = vcvt.s32.f32 %v262_v10  ;;  %v4442_v6 = vld [vmem:[#allocation26_spill] sm:$0xff] }
 0x1c0   :  { %266 = vmin.xlane.f32.xlu0 %v265_v18 }
 0x249   :  { %v267_v12 = vpop.xlane.xlu0 %266 }
 0x24a   :  { %vm268_vm2 = vcmp.eq.f32.partialorder %v265_v18, %v267_v12  ;;  %v273_v17 = vcvt.f32.s32 %v267_v12  ;;  %v4443_v18 = vld [vmem:[#allocation28_spill] sm:$0xff]  ;;  %v4444_v12 = vld [vmem:[#allocation27_spill] sm:$0xff] }
 0x24b   :  { %v269_v14 = vsel %vm268_vm2, %v264_v16, inf }
 0x24c   :  { %270 = vmin.xlane.f32.xlu1 %v269_v14  ;;  %v274_v13 = vshll.u32 %v273_v17, 16  ;;  %v4445_v17 = vld [vmem:[#allocation29_spill] sm:$0xff] }
 0x2d5   :  { %v271_v0 = vpop.xlane.xlu1 %270 }
 0x2d6   :  { %v272_v21 = vcvt.f32.s32 %v271_v0 }
 0x2d8   :  { %v275_v19 = vadd.s32 %v274_v13, %v272_v21 }
 0x2da   :  { %vm276_vm3 = vcmp.eq.s32.totalorder %v4441_v9, %v275_v19 }
 0x2db   :  { %2251 = vmatmul.mubr.msk.f32.vlgmr.msra.gmra.mxu0 %vm276_vm3, %v2920_v5  ;;  %2252 = vmatmul.mubr.msk.f32.vlgmr.msra.gmra.mxu1 %vm276_vm3, %v2920_v5 }
 0x39b   :  { %v345_v8 = vpop.f32.mrf.mxu0  ;;  %v416_v2 = vpop.f32.mrf.mxu1 }
 0x39c   :  { %v346_v10 = vadd.f32 %v345_v8, %v4442_v6  ;;  %v417_v16 = vadd.f32 %v416_v2, %v4443_v18 }
 0x39d   :  { %v347_v14 = vpop.f32.mrf.mxu0  ;;  %v418_v22 = vpop.f32.mrf.mxu1 }
 0x39e   :  { %421 = vst [vmem:[#allocation2 + $0x10] sm:$0xff] %v346_v10  ;;  %423 = vst [vmem:[#allocation2 + $0x18] sm:$0xff] %v417_v16  ;;  %v348_v15 = vadd.f32 %v347_v14, %v4444_v12  ;;  %v419_v0 = vadd.f32 %v418_v22, %v4445_v17 }
 0x3a0   :  { %422 = vst [vmem:[#allocation2] sm:$0xff] %v348_v15  ;;  %424 = vst [vmem:[#allocation2 + $0x8] sm:$0xff] %v419_v0 }
 0x3a1 PF:  { %v4446_v19 = vmov 0.0   ;;  %v4447_v13 = vld [vmem:[#allocation30_spill] sm:$0xff]  ;;  %v4448_v2 = vld [vmem:[#allocation31_spill] sm:$0xff]  ;;  %v4449_v22 = vld [vmem:[#allocation32_spill] sm:$0xff]  ;;  %s2257_s2 = sld [smem:[#allocation3 + $0x1]] }
 0x3a2   :  { %2512 = vmatprep.subr.mxu0 %v4446_v19  ;;  %2544 = vmatprep.mubr.msk.f32.mxu0 %vm2918_vm0, %v4446_v19  ;;  %v4450_v6 = vld [vmem:[#allocation33_spill] sm:$0xff]  ;;  %v4451_v10 = vld [vmem:[#allocation34_spill] sm:$0xff]  ;;  %v4452_v16 = vld [vmem:[#allocation35_spill] sm:$0xff] }
 0x3a3   :  { %2513 = vmatpush3.msra.mxu0 %v4447_v13  ;;  %v4453_v12 = vld [vmem:[#allocation36_spill] sm:$0xff]  ;;  %v4454_v17 = vld [vmem:[#allocation37_spill] sm:$0xff] }
 0x3a4   :  { %2514 = vmatprep.subr.mxu0 %v4446_v19 }
 0x3a5   :  { %v425_v21 = vld [vmem:[#allocation2 + $0x10] sm:$0xff]  ;;  %2515 = vmatpush3.msra.mxu0 %v4448_v2  ;;  %v427_v15 = vld [vmem:[#allocation2 + $0x18] sm:$0xff] }
 0x3a6   :  { %v2253_v5 = vmul.f32 -1.442695, %v425_v21  ;;  %2516 = vmatprep.subr.mxu0 %v4446_v19  ;;  %v4457_v2 = vld [vmem:[#allocation40_spill] sm:$0xff] }
 0x3a7   :  { %v426_v9 = vld [vmem:[#allocation2] sm:$0xff]  ;;  %2517 = vmatpush3.msra.mxu0 %v4449_v22  ;;  %v428_v18 = vld [vmem:[#allocation2 + $0x8] sm:$0xff]  ;;  %v4458_v22 = vld [vmem:[#allocation41_spill] sm:$0xff]  ;;  %p2258_p7 = scmp.le.s32.totalorder %s2257_s2, 0 }
 0x3a8   :  { %v2254_v8 = vmul.f32 -1.442695, %v426_v9  ;;  %2790 = vpow2.f32 %v2253_v5  ;;  %2518 = vmatprep.subr.mxu0 %v4446_v19  ;;  %v2255_v14 = vmul.f32 -1.442695, %v428_v18  ;;  %v4455_v9 = vld [vmem:[#allocation38_spill] sm:$0xff] }
 0x3a9   :  { %2519 = vmatpush3.msra.mxu0 %v4450_v6  ;;  %v4459_v6 = vld [vmem:[#allocation42_spill] sm:$0xff] }
 0x3aa   :  { %2792 = vpow2.f32 %v2254_v8  ;;  %2520 = vmatprep.subr.mxu0 %v4446_v19  ;;  %v4456_v8 = vld [vmem:[#allocation39_spill] sm:$0xff] }
 0x3ab   :  { %2521 = vmatpush3.msra.mxu0 %v4451_v10  ;;  %2794 = vpow2.f32 %v2255_v14  ;;  %v4460_v10 = vld [vmem:[#allocation43_spill] sm:$0xff] }
 0x3ac   :  { %2522 = vmatprep.subr.mxu0 %v4446_v19  ;;  %2796 = vtanh.f32 %v427_v15 }
 0x3ad   :  { %2523 = vmatpush3.msra.mxu0 %v4452_v16  ;;  %v4461_v16 = vld [vmem:[#allocation44_spill] sm:$0xff] }
 0x3ae   :  { %2524 = vmatprep.subr.mxu0 %v4446_v19 }
 0x3af   :  { %2525 = vmatpush3.msra.mxu0 %v4453_v12  ;;  %v4462_v12 = vld [vmem:[#allocation45_spill] sm:$0xff] }
 0x3b0   :  { %2526 = vmatprep.subr.mxu0 %v4446_v19 }
 0x3b1   :  { %2527 = vmatpush3.msra.mxu0 %v4454_v17 }
 0x3b2   :  { %2528 = vmatprep.subr.mxu0 %v4446_v19 }
 0x3b3   :  { %2529 = vmatpush3.msra.mxu0 %v4455_v9 }
 0x3b4   :  { %2530 = vmatprep.subr.mxu0 %v4446_v19 }
 0x3b5   :  { %v2791_v0 = vpop.eup %2790  ;;  %2531 = vmatpush3.msra.mxu0 %v4456_v8 }
 0x3b6   :  { %v432_v13 = vadd.f32 1.0, %v2791_v0  ;;  %2532 = vmatprep.subr.mxu0 %v4446_v19 }
 0x3b7   :  { %v2793_v21 = vpop.eup %2792  ;;  %2533 = vmatpush3.msra.mxu0 %v4457_v2 }
 0x3b8   :  { %v438_v5 = vadd.f32 1.0, %v2793_v21  ;;  %2798 = vrcp.f32 %v432_v13  ;;  %2534 = vmatprep.subr.mxu0 %v4446_v19  ;;  %v2795_v18 = vpop.eup %2794 }
 0x3b9   :  { %2535 = vmatpush3.msra.mxu0 %v4458_v22  ;;  %v2797_v14 = vpop.eup %2796  ;;  %v445_v17 = vadd.f32 1.0, %v2795_v18 }
 0x3ba   :  { %2800 = vrcp.f32 %v438_v5  ;;  %2536 = vmatprep.subr.mxu0 %v4446_v19 }
 0x3bb   :  { %2537 = vmatpush3.msra.mxu0 %v4459_v6  ;;  %2802 = vrcp.f32 %v445_v17 }
 0x3bc   :  { %2538 = vmatprep.subr.mxu0 %v4446_v19 }
 0x3bd   :  { %2539 = vmatpush3.msra.mxu0 %v4460_v10 }
 0x3be   :  { %2540 = vmatprep.subr.mxu0 %v4446_v19 }
 0x3bf   :  { %2541 = vmatpush3.msra.mxu0 %v4461_v16 }
 0x3c0   :  { %2542 = vmatprep.subr.mxu0 %v4446_v19 }
 0x3c1   :  { %2543 = vmatpush3.msra.mxu0 %v4462_v12 }
 0x3c5   :  { %v2799_v15 = vpop.eup %2798 }
 0x3c6   :  { %v449_v21 = vmul.f32 %v2799_v15, %v2797_v14 }
 0x3c7   :  { %v2801_v0 = vpop.eup %2800 }
 0x3c8   :  { %v448_v9 = vmul.f32 %v2801_v0, %v3447_v1  ;;  %v2803_v5 = vpop.eup %2802 }
 0x3ca   :  { %v450_v13 = vadd.f32 %v449_v21, %v448_v9 }
 0x3cc   :  { %2804 = vtanh.f32 %v450_v13 }
 0x3d9   :  { %v2805_v8 = vpop.eup %2804 }
 0x3da   :  { %v452_v2 = vmul.f32 %v2805_v8, %v2803_v5 }
 0x3dc   :  { %2545 = vmatmul.mubr.f32.vlgmr.msra.gmra.mxu0 %v452_v2 }
 0x49b   :  { %529 = sbr.rel (%p2258_p7) target bundleno = 1187 (0x4a3), region = 45 }
 0x49c   :  { %v519_v22 = vpop.f32.mrf.mxu0 }
 0x49d   :  { %v3582_v6 = vadd.f32 %v3453_v4, %v519_v22 }
 0x49e   :  { %v2546_v19 = vpop.f32.mrf.mxu0 }
 0x49f   :  { %2256 = vst [vmem:[%s4348_s7 + $0x8] sm:$0xff] %v3582_v6 }
 0x4a0   :  { %v2259_v10 = vld [vmem:[%s4342_s1 + $0x40] sm:$0xff]  ;;  %v2260_v18 = vld [vmem:[%s4342_s1 + $0x48] sm:$0xff]  ;;  %v2261_v16 = vld [vmem:[%s4342_s1 + $0x50] sm:$0xff] }
 0x4a1   :  { %535 = vst [vmem:[#allocation2 + $0x10] sm:$0xff] %v2259_v10  ;;  %536 = vst [vmem:[#allocation2] sm:$0xff] %v2260_v18  ;;  %v2262_v14 = vld [vmem:[%s4342_s1 + $0x58] sm:$0xff] }
 0x4a2   :  { %537 = vst [vmem:[#allocation2 + $0x18] sm:$0xff] %v2261_v16  ;;  %538 = vst [vmem:[#allocation2 + $0x8] sm:$0xff] %v2262_v14 }
 0x4a3 PF:  { %p2263_p8 = scmp.ne.s32.totalorder %s2257_s2, 0 }
 0x4a5   :  { %542 = sbr.rel (%p2263_p8) target bundleno = 1819 (0x71b), region = 49 }
 0x4aa   :  { %543 = vmax.xlane.f32.xlu0 %v3582_v6  ;;  %564 = vmatprep.subr.mxu0 %v3289_v3  ;;  %v4463_v12 = vld [vmem:[#allocation25_spill] sm:$0xff]  ;;  %v4464_v15 = vld [vmem:[#allocation23_spill] sm:$0xff]  ;;  %v4465_v17 = vld [vmem:[#allocation24_spill] sm:$0xff] }
 0x4ab   :  { %635 = vmatprep.subr.mxu1 %v3299_v11  ;;  %565 = vmatpush1.msra.mxu0 %v3284_v63  ;;  %v4466_v0 = vld [vmem:[#allocation20_spill] sm:$0xff]  ;;  %v4467_v21 = vld [vmem:[#allocation22_spill] sm:$0xff]  ;;  %v4468_v9 = vld [vmem:[#allocation19_spill] sm:$0xff] }
 0x4ac   :  { %636 = vmatpush1.msra.mxu1 %v3294_v7  ;;  %566 = vmatprep.subr.mxu0 %v3269_v60  ;;  %v4469_v13 = vld [vmem:[#allocation21_spill] sm:$0xff]  ;;  %v4470_v5 = vld [vmem:[#allocation16_spill] sm:$0xff]  ;;  %v4471_v8 = vld [vmem:[#allocation18_spill] sm:$0xff] }
 0x4ad   :  { %637 = vmatprep.subr.mxu1 %v3279_v62  ;;  %567 = vmatpush1.msra.mxu0 %v3264_v59  ;;  %v4472_v2 = vld [vmem:[#allocation14_spill] sm:$0xff]  ;;  %v4473_v22 = vld [vmem:[#allocation17_spill] sm:$0xff]  ;;  %v4474_v19 = vld [vmem:[#allocation11_spill] sm:$0xff] }
 0x4ae   :  { %638 = vmatpush1.msra.mxu1 %v3274_v61  ;;  %568 = vmatprep.subr.mxu0 %v3249_v56  ;;  %v4475_v10 = vld [vmem:[#allocation13_spill] sm:$0xff]  ;;  %v4476_v18 = vld [vmem:[#allocation10_spill] sm:$0xff]  ;;  %v4477_v16 = vld [vmem:[#allocation12_spill] sm:$0xff] }
 0x4af   :  { %639 = vmatprep.subr.mxu1 %v3259_v58  ;;  %569 = vmatpush1.msra.mxu0 %v3244_v55  ;;  %v4478_v14 = vld [vmem:[#allocation7_spill] sm:$0xff] }
 0x4b0   :  { %640 = vmatpush1.msra.mxu1 %v3254_v57  ;;  %570 = vmatprep.subr.mxu0 %v3229_v52 }
 0x4b1   :  { %641 = vmatprep.subr.mxu1 %v3239_v54  ;;  %571 = vmatpush1.msra.mxu0 %v3224_v51 }
 0x4b2   :  { %642 = vmatpush1.msra.mxu1 %v3234_v53  ;;  %572 = vmatprep.subr.mxu0 %v3209_v48 }
 0x4b3   :  { %643 = vmatprep.subr.mxu1 %v3219_v50  ;;  %573 = vmatpush1.msra.mxu0 %v3204_v47 }
 0x4b4   :  { %644 = vmatpush1.msra.mxu1 %v3214_v49  ;;  %574 = vmatprep.subr.mxu0 %v3189_v44 }
 0x4b5   :  { %645 = vmatprep.subr.mxu1 %v3199_v46  ;;  %575 = vmatpush1.msra.mxu0 %v3184_v43 }
 0x4b6   :  { %646 = vmatpush1.msra.mxu1 %v3194_v45  ;;  %576 = vmatprep.subr.mxu0 %v3169_v40 }
 0x4b7   :  { %647 = vmatprep.subr.mxu1 %v3179_v42  ;;  %577 = vmatpush1.msra.mxu0 %v3164_v39 }
 0x4b8   :  { %648 = vmatpush1.msra.mxu1 %v3174_v41  ;;  %578 = vmatprep.subr.mxu0 %v3149_v36 }
 0x4b9   :  { %649 = vmatprep.subr.mxu1 %v3159_v38  ;;  %579 = vmatpush1.msra.mxu0 %v3144_v35 }
 0x4ba   :  { %650 = vmatpush1.msra.mxu1 %v3154_v37  ;;  %580 = vmatprep.subr.mxu0 %v3129_v32 }
 0x4bb   :  { %651 = vmatprep.subr.mxu1 %v3139_v34  ;;  %581 = vmatpush1.msra.mxu0 %v3124_v31 }
 0x4bc   :  { %652 = vmatpush1.msra.mxu1 %v3134_v33  ;;  %582 = vmatprep.subr.mxu0 %v3109_v28 }
 0x4bd   :  { %653 = vmatprep.subr.mxu1 %v3119_v30  ;;  %583 = vmatpush1.msra.mxu0 %v3104_v27 }
 0x4be   :  { %654 = vmatpush1.msra.mxu1 %v3114_v29  ;;  %584 = vmatprep.subr.mxu0 %v3089_v24 }
 0x4bf   :  { %655 = vmatprep.subr.mxu1 %v3099_v26  ;;  %585 = vmatpush1.msra.mxu0 %v3084_v23 }
 0x4c0   :  { %656 = vmatpush1.msra.mxu1 %v3094_v25  ;;  %586 = vmatprep.subr.mxu0 %v3069_v20 }
 0x4c1   :  { %657 = vmatprep.subr.mxu1 %v4463_v12  ;;  %587 = vmatpush1.msra.mxu0 %v4464_v15  ;;  %v4479_v12 = vld [vmem:[#allocation9_spill] sm:$0xff]  ;;  %v4480_v15 = vld [vmem:[#allocation6_spill] sm:$0xff] }
 0x4c2   :  { %658 = vmatpush1.msra.mxu1 %v4465_v17  ;;  %588 = vmatprep.subr.mxu0 %v4466_v0  ;;  %v4481_v17 = vld [vmem:[#allocation8_spill] sm:$0xff] }
 0x4c3   :  { %659 = vmatprep.subr.mxu1 %v4467_v21  ;;  %589 = vmatpush1.msra.mxu0 %v4468_v9  ;;  %v4482_v21 = vld [vmem:[#allocation15_spill] sm:$0xff] }
 0x4c4   :  { %660 = vmatpush1.msra.mxu1 %v4469_v13  ;;  %590 = vmatprep.subr.mxu0 %v4470_v5 }
 0x4c5   :  { %661 = vmatprep.subr.mxu1 %v4471_v8  ;;  %591 = vmatpush1.msra.mxu0 %v4472_v2 }
 0x4c6   :  { %662 = vmatpush1.msra.mxu1 %v4473_v22  ;;  %592 = vmatprep.subr.mxu0 %v4474_v19 }
 0x4c7   :  { %663 = vmatprep.subr.mxu1 %v4475_v10  ;;  %593 = vmatpush1.msra.mxu0 %v4476_v18  ;;  %v2921_v10 = vmov 0.0  }
 0x4c8   :  { %664 = vmatpush1.msra.mxu1 %v4477_v16  ;;  %594 = vmatprep.subr.mxu0 %v4478_v14 }
 0x4c9   :  { %665 = vmatprep.subr.mxu1 %v4479_v12  ;;  %595 = vmatpush1.msra.mxu0 %v4480_v15 }
 0x4ca   :  { %666 = vmatpush1.msra.mxu1 %v4481_v17  ;;  %628 = vmatprep.mubr.f32.mxu0 %v2921_v10 }
 0x4cb   :  { %699 = vmatprep.mubr.f32.mxu1 %v2921_v10 }
 0x533   :  { %v544_v0 = vpop.xlane.xlu0 %543 }
 0x534   :  { %vm545_vm4 = vcmp.eq.f32.partialorder %v3582_v6, %v544_v0  ;;  %v2922_v6 = vmov 1.0  }
 0x535   :  { %v546_v9 = vsel %vm545_vm4, %v4482_v21, 128 }
 0x536   :  { %v548_v13 = vshra.s32 %v546_v9, 16  ;;  %v547_v8 = vand.u32 65535, %v546_v9  ;;  %v4483_v9 = vld [vmem:[#allocation26_spill] sm:$0xff] }
 0x538   :  { %v550_v5 = vcvt.s32.f32 %v548_v13  ;;  %v549_v22 = vcvt.s32.f32 %v547_v8 }
 0x53a   :  { %551 = vmin.xlane.f32.xlu0 %v550_v5 }
 0x5c3   :  { %v552_v2 = vpop.xlane.xlu0 %551 }
 0x5c4   :  { %vm553_vm5 = vcmp.eq.f32.partialorder %v550_v5, %v552_v2  ;;  %v558_v18 = vcvt.f32.s32 %v552_v2  ;;  %v4484_v5 = vld [vmem:[#allocation28_spill] sm:$0xff]  ;;  %v4485_v2 = vld [vmem:[#allocation27_spill] sm:$0xff] }
 0x5c5   :  { %v554_v19 = vsel %vm553_vm5, %v549_v22, inf }
 0x5c6   :  { %555 = vmin.xlane.f32.xlu1 %v554_v19  ;;  %v559_v14 = vshll.u32 %v558_v18, 16  ;;  %v4486_v18 = vld [vmem:[#allocation29_spill] sm:$0xff] }
 0x64f   :  { %v556_v16 = vpop.xlane.xlu1 %555 }
 0x650   :  { %v557_v12 = vcvt.f32.s32 %v556_v16 }
 0x652   :  { %v560_v15 = vadd.s32 %v559_v14, %v557_v12 }
 0x654   :  { %vm561_vm6 = vcmp.eq.s32.totalorder %v4482_v21, %v560_v15 }
 0x655   :  { %2265 = vmatmul.mubr.msk.f32.vlgmr.msra.gmra.mxu0 %vm561_vm6, %v2922_v6  ;;  %2266 = vmatmul.mubr.msk.f32.vlgmr.msra.gmra.mxu1 %vm561_vm6, %v2922_v6 }
 0x715   :  { %v630_v17 = vpop.f32.mrf.mxu0  ;;  %v701_v0 = vpop.f32.mrf.mxu1 }
 0x716   :  { %v631_v13 = vadd.f32 %v630_v17, %v4483_v9  ;;  %v702_v8 = vadd.f32 %v701_v0, %v4484_v5 }
 0x717   :  { %v632_v22 = vpop.f32.mrf.mxu0  ;;  %v703_v19 = vpop.f32.mrf.mxu1 }
 0x718   :  { %706 = vst [vmem:[#allocation2 + $0x10] sm:$0xff] %v631_v13  ;;  %708 = vst [vmem:[#allocation2 + $0x18] sm:$0xff] %v702_v8  ;;  %v633_v10 = vadd.f32 %v632_v22, %v4485_v2  ;;  %v704_v16 = vadd.f32 %v703_v19, %v4486_v18 }
 0x71a   :  { %707 = vst [vmem:[#allocation2] sm:$0xff] %v633_v10  ;;  %709 = vst [vmem:[#allocation2 + $0x8] sm:$0xff] %v704_v16 }
 0x71b PF:  { %v4487_v21 = vmov 0.0   ;;  %v4488_v15 = vld [vmem:[#allocation30_spill] sm:$0xff]  ;;  %v4489_v0 = vld [vmem:[#allocation31_spill] sm:$0xff]  ;;  %v4490_v9 = vld [vmem:[#allocation32_spill] sm:$0xff]  ;;  %s2271_s30 = sld [smem:[#allocation3 + $0x2]] }
 0x71c   :  { %2547 = vmatprep.subr.mxu0 %v4487_v21  ;;  %2579 = vmatprep.mubr.msk.f32.mxu0 %vm2918_vm0, %v4487_v21  ;;  %v4491_v13 = vld [vmem:[#allocation33_spill] sm:$0xff]  ;;  %v4492_v5 = vld [vmem:[#allocation34_spill] sm:$0xff]  ;;  %v4493_v22 = vld [vmem:[#allocation35_spill] sm:$0xff] }
 0x71d   :  { %2548 = vmatpush3.msra.mxu0 %v4488_v15  ;;  %v4494_v2 = vld [vmem:[#allocation36_spill] sm:$0xff]  ;;  %v4495_v18 = vld [vmem:[#allocation37_spill] sm:$0xff] }
 0x71e   :  { %2549 = vmatprep.subr.mxu0 %v4487_v21 }
 0x71f   :  { %v710_v14 = vld [vmem:[#allocation2 + $0x10] sm:$0xff]  ;;  %2550 = vmatpush3.msra.mxu0 %v4489_v0  ;;  %v712_v10 = vld [vmem:[#allocation2 + $0x18] sm:$0xff] }
 0x720   :  { %v2267_v6 = vmul.f32 -1.442695, %v710_v14  ;;  %2551 = vmatprep.subr.mxu0 %v4487_v21  ;;  %v4498_v0 = vld [vmem:[#allocation40_spill] sm:$0xff] }
 0x721   :  { %v711_v12 = vld [vmem:[#allocation2] sm:$0xff]  ;;  %2552 = vmatpush3.msra.mxu0 %v4490_v9  ;;  %v713_v8 = vld [vmem:[#allocation2 + $0x8] sm:$0xff]  ;;  %v4499_v9 = vld [vmem:[#allocation41_spill] sm:$0xff]  ;;  %p2272_p9 = scmp.le.s32.totalorder %s2271_s30, 0 }
 0x722   :  { %v2268_v17 = vmul.f32 -1.442695, %v711_v12  ;;  %2806 = vpow2.f32 %v2267_v6  ;;  %2553 = vmatprep.subr.mxu0 %v4487_v21  ;;  %v2269_v19 = vmul.f32 -1.442695, %v713_v8  ;;  %v4496_v12 = vld [vmem:[#allocation38_spill] sm:$0xff] }
 0x723   :  { %2554 = vmatpush3.msra.mxu0 %v4491_v13  ;;  %v4500_v13 = vld [vmem:[#allocation42_spill] sm:$0xff] }
 0x724   :  { %2808 = vpow2.f32 %v2268_v17  ;;  %2555 = vmatprep.subr.mxu0 %v4487_v21  ;;  %v4497_v17 = vld [vmem:[#allocation39_spill] sm:$0xff] }
 0x725   :  { %2556 = vmatpush3.msra.mxu0 %v4492_v5  ;;  %2810 = vpow2.f32 %v2269_v19  ;;  %v4501_v5 = vld [vmem:[#allocation43_spill] sm:$0xff] }
 0x726   :  { %2557 = vmatprep.subr.mxu0 %v4487_v21  ;;  %2812 = vtanh.f32 %v712_v10 }
 0x727   :  { %2558 = vmatpush3.msra.mxu0 %v4493_v22  ;;  %v4502_v22 = vld [vmem:[#allocation44_spill] sm:$0xff] }
 0x728   :  { %2559 = vmatprep.subr.mxu0 %v4487_v21 }
 0x729   :  { %2560 = vmatpush3.msra.mxu0 %v4494_v2  ;;  %v4503_v2 = vld [vmem:[#allocation45_spill] sm:$0xff] }
 0x72a   :  { %2561 = vmatprep.subr.mxu0 %v4487_v21 }
 0x72b   :  { %2562 = vmatpush3.msra.mxu0 %v4495_v18 }
 0x72c   :  { %2563 = vmatprep.subr.mxu0 %v4487_v21 }
 0x72d   :  { %2564 = vmatpush3.msra.mxu0 %v4496_v12 }
 0x72e   :  { %2565 = vmatprep.subr.mxu0 %v4487_v21 }
 0x72f   :  { %v2807_v16 = vpop.eup %2806  ;;  %2566 = vmatpush3.msra.mxu0 %v4497_v17 }
 0x730   :  { %v717_v15 = vadd.f32 1.0, %v2807_v16  ;;  %2567 = vmatprep.subr.mxu0 %v4487_v21 }
 0x731   :  { %v2809_v14 = vpop.eup %2808  ;;  %2568 = vmatpush3.msra.mxu0 %v4498_v0 }
 0x732   :  { %v723_v6 = vadd.f32 1.0, %v2809_v14  ;;  %2814 = vrcp.f32 %v717_v15  ;;  %2569 = vmatprep.subr.mxu0 %v4487_v21  ;;  %v2811_v8 = vpop.eup %2810 }
 0x733   :  { %2570 = vmatpush3.msra.mxu0 %v4499_v9  ;;  %v2813_v19 = vpop.eup %2812  ;;  %v730_v18 = vadd.f32 1.0, %v2811_v8 }
 0x734   :  { %2816 = vrcp.f32 %v723_v6  ;;  %2571 = vmatprep.subr.mxu0 %v4487_v21 }
 0x735   :  { %2572 = vmatpush3.msra.mxu0 %v4500_v13  ;;  %2818 = vrcp.f32 %v730_v18 }
 0x736   :  { %2573 = vmatprep.subr.mxu0 %v4487_v21 }
 0x737   :  { %2574 = vmatpush3.msra.mxu0 %v4501_v5 }
 0x738   :  { %2575 = vmatprep.subr.mxu0 %v4487_v21 }
 0x739   :  { %2576 = vmatpush3.msra.mxu0 %v4502_v22 }
 0x73a   :  { %2577 = vmatprep.subr.mxu0 %v4487_v21 }
 0x73b   :  { %2578 = vmatpush3.msra.mxu0 %v4503_v2 }
 0x73f   :  { %v2815_v10 = vpop.eup %2814 }
 0x740   :  { %v734_v14 = vmul.f32 %v2815_v10, %v2813_v19 }
 0x741   :  { %v2817_v16 = vpop.eup %2816 }
 0x742   :  { %v733_v12 = vmul.f32 %v2817_v16, %v3447_v1  ;;  %v2819_v6 = vpop.eup %2818 }
 0x744   :  { %v735_v15 = vadd.f32 %v734_v14, %v733_v12 }
 0x746   :  { %2820 = vtanh.f32 %v735_v15 }
 0x753   :  { %v2821_v17 = vpop.eup %2820 }
 0x754   :  { %v737_v0 = vmul.f32 %v2821_v17, %v2819_v6 }
 0x756   :  { %2580 = vmatmul.mubr.f32.vlgmr.msra.gmra.mxu0 %v737_v0 }
 0x815   :  { %814 = sbr.rel (%p2272_p9) target bundleno = 2077 (0x81d), region = 53 }
 0x816   :  { %v804_v9 = vpop.f32.mrf.mxu0 }
 0x817   :  { %v3708_v13 = vadd.f32 %v3453_v4, %v804_v9 }
 0x818   :  { %v2581_v21 = vpop.f32.mrf.mxu0 }
 0x819   :  { %2270 = vst [vmem:[%s4348_s7 + $0x10] sm:$0xff] %v3708_v13 }
 0x81a   :  { %v2273_v5 = vld [vmem:[%s4342_s1 + $0x60] sm:$0xff]  ;;  %v2274_v8 = vld [vmem:[%s4342_s1 + $0x68] sm:$0xff]  ;;  %v2275_v22 = vld [vmem:[%s4342_s1 + $0x70] sm:$0xff] }
 0x81b   :  { %820 = vst [vmem:[#allocation2 + $0x10] sm:$0xff] %v2273_v5  ;;  %821 = vst [vmem:[#allocation2] sm:$0xff] %v2274_v8  ;;  %v2276_v19 = vld [vmem:[%s4342_s1 + $0x78] sm:$0xff] }
 0x81c   :  { %822 = vst [vmem:[#allocation2 + $0x18] sm:$0xff] %v2275_v22  ;;  %823 = vst [vmem:[#allocation2 + $0x8] sm:$0xff] %v2276_v19 }
 0x81d PF:  { %p2277_p10 = scmp.ne.s32.totalorder %s2271_s30, 0 }
 0x81f   :  { %827 = sbr.rel (%p2277_p10) target bundleno = 2709 (0xa95), region = 57 }
 0x824   :  { %828 = vmax.xlane.f32.xlu0 %v3708_v13  ;;  %849 = vmatprep.subr.mxu0 %v3289_v3  ;;  %v4504_v2 = vld [vmem:[#allocation25_spill] sm:$0xff]  ;;  %v4505_v10 = vld [vmem:[#allocation23_spill] sm:$0xff]  ;;  %v4506_v18 = vld [vmem:[#allocation24_spill] sm:$0xff] }
 0x825   :  { %920 = vmatprep.subr.mxu1 %v3299_v11  ;;  %850 = vmatpush1.msra.mxu0 %v3284_v63  ;;  %v4507_v16 = vld [vmem:[#allocation20_spill] sm:$0xff]  ;;  %v4508_v14 = vld [vmem:[#allocation22_spill] sm:$0xff]  ;;  %v4509_v12 = vld [vmem:[#allocation19_spill] sm:$0xff] }
 0x826   :  { %921 = vmatpush1.msra.mxu1 %v3294_v7  ;;  %851 = vmatprep.subr.mxu0 %v3269_v60  ;;  %v4510_v15 = vld [vmem:[#allocation21_spill] sm:$0xff]  ;;  %v4511_v6 = vld [vmem:[#allocation16_spill] sm:$0xff]  ;;  %v4512_v17 = vld [vmem:[#allocation18_spill] sm:$0xff] }
 0x827   :  { %922 = vmatprep.subr.mxu1 %v3279_v62  ;;  %852 = vmatpush1.msra.mxu0 %v3264_v59  ;;  %v4513_v0 = vld [vmem:[#allocation14_spill] sm:$0xff]  ;;  %v4514_v9 = vld [vmem:[#allocation17_spill] sm:$0xff]  ;;  %v4515_v21 = vld [vmem:[#allocation11_spill] sm:$0xff] }
 0x828   :  { %923 = vmatpush1.msra.mxu1 %v3274_v61  ;;  %853 = vmatprep.subr.mxu0 %v3249_v56  ;;  %v4516_v5 = vld [vmem:[#allocation13_spill] sm:$0xff]  ;;  %v4517_v8 = vld [vmem:[#allocation10_spill] sm:$0xff]  ;;  %v4518_v22 = vld [vmem:[#allocation12_spill] sm:$0xff] }
 0x829   :  { %924 = vmatprep.subr.mxu1 %v3259_v58  ;;  %854 = vmatpush1.msra.mxu0 %v3244_v55  ;;  %v4519_v19 = vld [vmem:[#allocation7_spill] sm:$0xff] }
 0x82a   :  { %925 = vmatpush1.msra.mxu1 %v3254_v57  ;;  %855 = vmatprep.subr.mxu0 %v3229_v52 }
 0x82b   :  { %926 = vmatprep.subr.mxu1 %v3239_v54  ;;  %856 = vmatpush1.msra.mxu0 %v3224_v51 }
 0x82c   :  { %927 = vmatpush1.msra.mxu1 %v3234_v53  ;;  %857 = vmatprep.subr.mxu0 %v3209_v48 }
 0x82d   :  { %928 = vmatprep.subr.mxu1 %v3219_v50  ;;  %858 = vmatpush1.msra.mxu0 %v3204_v47 }
 0x82e   :  { %929 = vmatpush1.msra.mxu1 %v3214_v49  ;;  %859 = vmatprep.subr.mxu0 %v3189_v44 }
 0x82f   :  { %930 = vmatprep.subr.mxu1 %v3199_v46  ;;  %860 = vmatpush1.msra.mxu0 %v3184_v43 }
 0x830   :  { %931 = vmatpush1.msra.mxu1 %v3194_v45  ;;  %861 = vmatprep.subr.mxu0 %v3169_v40 }
 0x831   :  { %932 = vmatprep.subr.mxu1 %v3179_v42  ;;  %862 = vmatpush1.msra.mxu0 %v3164_v39 }
 0x832   :  { %933 = vmatpush1.msra.mxu1 %v3174_v41  ;;  %863 = vmatprep.subr.mxu0 %v3149_v36 }
 0x833   :  { %934 = vmatprep.subr.mxu1 %v3159_v38  ;;  %864 = vmatpush1.msra.mxu0 %v3144_v35 }
 0x834   :  { %935 = vmatpush1.msra.mxu1 %v3154_v37  ;;  %865 = vmatprep.subr.mxu0 %v3129_v32 }
 0x835   :  { %936 = vmatprep.subr.mxu1 %v3139_v34  ;;  %866 = vmatpush1.msra.mxu0 %v3124_v31 }
 0x836   :  { %937 = vmatpush1.msra.mxu1 %v3134_v33  ;;  %867 = vmatprep.subr.mxu0 %v3109_v28 }
 0x837   :  { %938 = vmatprep.subr.mxu1 %v3119_v30  ;;  %868 = vmatpush1.msra.mxu0 %v3104_v27 }
 0x838   :  { %939 = vmatpush1.msra.mxu1 %v3114_v29  ;;  %869 = vmatprep.subr.mxu0 %v3089_v24 }
 0x839   :  { %940 = vmatprep.subr.mxu1 %v3099_v26  ;;  %870 = vmatpush1.msra.mxu0 %v3084_v23 }
 0x83a   :  { %941 = vmatpush1.msra.mxu1 %v3094_v25  ;;  %871 = vmatprep.subr.mxu0 %v3069_v20 }
 0x83b   :  { %942 = vmatprep.subr.mxu1 %v4504_v2  ;;  %872 = vmatpush1.msra.mxu0 %v4505_v10  ;;  %v4520_v2 = vld [vmem:[#allocation9_spill] sm:$0xff]  ;;  %v4521_v10 = vld [vmem:[#allocation6_spill] sm:$0xff] }
 0x83c   :  { %943 = vmatpush1.msra.mxu1 %v4506_v18  ;;  %873 = vmatprep.subr.mxu0 %v4507_v16  ;;  %v4522_v18 = vld [vmem:[#allocation8_spill] sm:$0xff] }
 0x83d   :  { %944 = vmatprep.subr.mxu1 %v4508_v14  ;;  %874 = vmatpush1.msra.mxu0 %v4509_v12  ;;  %v4523_v14 = vld [vmem:[#allocation15_spill] sm:$0xff] }
 0x83e   :  { %945 = vmatpush1.msra.mxu1 %v4510_v15  ;;  %875 = vmatprep.subr.mxu0 %v4511_v6 }
 0x83f   :  { %946 = vmatprep.subr.mxu1 %v4512_v17  ;;  %876 = vmatpush1.msra.mxu0 %v4513_v0 }
 0x840   :  { %947 = vmatpush1.msra.mxu1 %v4514_v9  ;;  %877 = vmatprep.subr.mxu0 %v4515_v21 }
 0x841   :  { %948 = vmatprep.subr.mxu1 %v4516_v5  ;;  %878 = vmatpush1.msra.mxu0 %v4517_v8  ;;  %v2923_v5 = vmov 0.0  }
 0x842   :  { %949 = vmatpush1.msra.mxu1 %v4518_v22  ;;  %879 = vmatprep.subr.mxu0 %v4519_v19 }
 0x843   :  { %950 = vmatprep.subr.mxu1 %v4520_v2  ;;  %880 = vmatpush1.msra.mxu0 %v4521_v10 }
 0x844   :  { %951 = vmatpush1.msra.mxu1 %v4522_v18  ;;  %913 = vmatprep.mubr.f32.mxu0 %v2923_v5 }
 0x845   :  { %984 = vmatprep.mubr.f32.mxu1 %v2923_v5 }
 0x8ad   :  { %v829_v16 = vpop.xlane.xlu0 %828 }
 0x8ae   :  { %vm830_vm7 = vcmp.eq.f32.partialorder %v3708_v13, %v829_v16  ;;  %v2924_v13 = vmov 1.0  }
 0x8af   :  { %v831_v12 = vsel %vm830_vm7, %v4523_v14, 128 }
 0x8b0   :  { %v833_v15 = vshra.s32 %v831_v12, 16  ;;  %v832_v17 = vand.u32 65535, %v831_v12  ;;  %v4524_v12 = vld [vmem:[#allocation26_spill] sm:$0xff] }
 0x8b2   :  { %v835_v6 = vcvt.s32.f32 %v833_v15  ;;  %v834_v9 = vcvt.s32.f32 %v832_v17 }
 0x8b4   :  { %836 = vmin.xlane.f32.xlu0 %v835_v6 }
 0x93d   :  { %v837_v0 = vpop.xlane.xlu0 %836 }
 0x93e   :  { %vm838_vm8 = vcmp.eq.f32.partialorder %v835_v6, %v837_v0  ;;  %v843_v8 = vcvt.f32.s32 %v837_v0  ;;  %v4525_v6 = vld [vmem:[#allocation28_spill] sm:$0xff]  ;;  %v4526_v0 = vld [vmem:[#allocation27_spill] sm:$0xff] }
 0x93f   :  { %v839_v21 = vsel %vm838_vm8, %v834_v9, inf }
 0x940   :  { %840 = vmin.xlane.f32.xlu1 %v839_v21  ;;  %v844_v19 = vshll.u32 %v843_v8, 16  ;;  %v4527_v8 = vld [vmem:[#allocation29_spill] sm:$0xff] }
 0x9c9   :  { %v841_v22 = vpop.xlane.xlu1 %840 }
 0x9ca   :  { %v842_v2 = vcvt.f32.s32 %v841_v22 }
 0x9cc   :  { %v845_v10 = vadd.s32 %v844_v19, %v842_v2 }
 0x9ce   :  { %vm846_vm9 = vcmp.eq.s32.totalorder %v4523_v14, %v845_v10 }
 0x9cf   :  { %2279 = vmatmul.mubr.msk.f32.vlgmr.msra.gmra.mxu0 %vm846_vm9, %v2924_v13  ;;  %2280 = vmatmul.mubr.msk.f32.vlgmr.msra.gmra.mxu1 %vm846_vm9, %v2924_v13 }
 0xa8f   :  { %v915_v18 = vpop.f32.mrf.mxu0  ;;  %v986_v16 = vpop.f32.mrf.mxu1 }
 0xa90   :  { %v916_v15 = vadd.f32 %v915_v18, %v4524_v12  ;;  %v987_v17 = vadd.f32 %v986_v16, %v4525_v6 }
 0xa91   :  { %v917_v9 = vpop.f32.mrf.mxu0  ;;  %v988_v21 = vpop.f32.mrf.mxu1 }
 0xa92   :  { %991 = vst [vmem:[#allocation2 + $0x10] sm:$0xff] %v916_v15  ;;  %993 = vst [vmem:[#allocation2 + $0x18] sm:$0xff] %v987_v17  ;;  %v918_v5 = vadd.f32 %v917_v9, %v4526_v0  ;;  %v989_v22 = vadd.f32 %v988_v21, %v4527_v8 }
 0xa94   :  { %992 = vst [vmem:[#allocation2] sm:$0xff] %v918_v5  ;;  %994 = vst [vmem:[#allocation2 + $0x8] sm:$0xff] %v989_v22 }
 0xa95 PF:  { %v4528_v14 = vmov 0.0   ;;  %v4529_v10 = vld [vmem:[#allocation30_spill] sm:$0xff]  ;;  %v4530_v16 = vld [vmem:[#allocation31_spill] sm:$0xff]  ;;  %v4531_v12 = vld [vmem:[#allocation32_spill] sm:$0xff]  ;;  %s2285_s15 = sld [smem:[#allocation3 + $0x3]] }
 0xa96   :  { %2582 = vmatprep.subr.mxu0 %v4528_v14  ;;  %2614 = vmatprep.mubr.msk.f32.mxu0 %vm2918_vm0, %v4528_v14  ;;  %v4532_v15 = vld [vmem:[#allocation33_spill] sm:$0xff]  ;;  %v4533_v6 = vld [vmem:[#allocation34_spill] sm:$0xff]  ;;  %v4534_v9 = vld [vmem:[#allocation35_spill] sm:$0xff] }
 0xa97   :  { %2583 = vmatpush3.msra.mxu0 %v4529_v10  ;;  %v4535_v0 = vld [vmem:[#allocation36_spill] sm:$0xff]  ;;  %v4536_v8 = vld [vmem:[#allocation37_spill] sm:$0xff] }
 0xa98   :  { %2584 = vmatprep.subr.mxu0 %v4528_v14 }
 0xa99   :  { %v995_v19 = vld [vmem:[#allocation2 + $0x10] sm:$0xff]  ;;  %2585 = vmatpush3.msra.mxu0 %v4530_v16  ;;  %v997_v5 = vld [vmem:[#allocation2 + $0x18] sm:$0xff] }
 0xa9a   :  { %v2281_v13 = vmul.f32 -1.442695, %v995_v19  ;;  %2586 = vmatprep.subr.mxu0 %v4528_v14  ;;  %v4539_v16 = vld [vmem:[#allocation40_spill] sm:$0xff] }
 0xa9b   :  { %v996_v2 = vld [vmem:[#allocation2] sm:$0xff]  ;;  %2587 = vmatpush3.msra.mxu0 %v4531_v12  ;;  %v998_v17 = vld [vmem:[#allocation2 + $0x8] sm:$0xff]  ;;  %v4540_v12 = vld [vmem:[#allocation41_spill] sm:$0xff]  ;;  %p2286_p11 = scmp.le.s32.totalorder %s2285_s15, 0 }
 0xa9c   :  { %v2282_v18 = vmul.f32 -1.442695, %v996_v2  ;;  %2822 = vpow2.f32 %v2281_v13  ;;  %2588 = vmatprep.subr.mxu0 %v4528_v14  ;;  %v2283_v21 = vmul.f32 -1.442695, %v998_v17  ;;  %v4537_v2 = vld [vmem:[#allocation38_spill] sm:$0xff] }
 0xa9d   :  { %2589 = vmatpush3.msra.mxu0 %v4532_v15  ;;  %v4541_v15 = vld [vmem:[#allocation42_spill] sm:$0xff] }
 0xa9e   :  { %2824 = vpow2.f32 %v2282_v18  ;;  %2590 = vmatprep.subr.mxu0 %v4528_v14  ;;  %v4538_v18 = vld [vmem:[#allocation39_spill] sm:$0xff] }
 0xa9f   :  { %2591 = vmatpush3.msra.mxu0 %v4533_v6  ;;  %2826 = vpow2.f32 %v2283_v21  ;;  %v4542_v6 = vld [vmem:[#allocation43_spill] sm:$0xff] }
 0xaa0   :  { %2592 = vmatprep.subr.mxu0 %v4528_v14  ;;  %2828 = vtanh.f32 %v997_v5 }
 0xaa1   :  { %2593 = vmatpush3.msra.mxu0 %v4534_v9  ;;  %v4543_v9 = vld [vmem:[#allocation44_spill] sm:$0xff] }
 0xaa2   :  { %2594 = vmatprep.subr.mxu0 %v4528_v14 }
 0xaa3   :  { %2595 = vmatpush3.msra.mxu0 %v4535_v0  ;;  %v4544_v0 = vld [vmem:[#allocation45_spill] sm:$0xff] }
 0xaa4   :  { %2596 = vmatprep.subr.mxu0 %v4528_v14 }
 0xaa5   :  { %2597 = vmatpush3.msra.mxu0 %v4536_v8 }
 0xaa6   :  { %2598 = vmatprep.subr.mxu0 %v4528_v14 }
 0xaa7   :  { %2599 = vmatpush3.msra.mxu0 %v4537_v2 }
 0xaa8   :  { %2600 = vmatprep.subr.mxu0 %v4528_v14 }
 0xaa9   :  { %v2823_v22 = vpop.eup %2822  ;;  %2601 = vmatpush3.msra.mxu0 %v4538_v18 }
 0xaaa   :  { %v1002_v10 = vadd.f32 1.0, %v2823_v22  ;;  %2602 = vmatprep.subr.mxu0 %v4528_v14 }
 0xaab   :  { %v2825_v19 = vpop.eup %2824  ;;  %2603 = vmatpush3.msra.mxu0 %v4539_v16 }
 0xaac   :  { %v1008_v13 = vadd.f32 1.0, %v2825_v19  ;;  %2830 = vrcp.f32 %v1002_v10  ;;  %2604 = vmatprep.subr.mxu0 %v4528_v14  ;;  %v2827_v17 = vpop.eup %2826 }
 0xaad   :  { %2605 = vmatpush3.msra.mxu0 %v4540_v12  ;;  %v2829_v21 = vpop.eup %2828  ;;  %v1015_v8 = vadd.f32 1.0, %v2827_v17 }
 0xaae   :  { %2832 = vrcp.f32 %v1008_v13  ;;  %2606 = vmatprep.subr.mxu0 %v4528_v14 }
 0xaaf   :  { %2607 = vmatpush3.msra.mxu0 %v4541_v15  ;;  %2834 = vrcp.f32 %v1015_v8 }
 0xab0   :  { %2608 = vmatprep.subr.mxu0 %v4528_v14 }
 0xab1   :  { %2609 = vmatpush3.msra.mxu0 %v4542_v6 }
 0xab2   :  { %2610 = vmatprep.subr.mxu0 %v4528_v14 }
 0xab3   :  { %2611 = vmatpush3.msra.mxu0 %v4543_v9 }
 0xab4   :  { %2612 = vmatprep.subr.mxu0 %v4528_v14 }
 0xab5   :  { %2613 = vmatpush3.msra.mxu0 %v4544_v0 }
 0xab9   :  { %v2831_v5 = vpop.eup %2830 }
 0xaba   :  { %v1019_v19 = vmul.f32 %v2831_v5, %v2829_v21 }
 0xabb   :  { %v2833_v22 = vpop.eup %2832 }
 0xabc   :  { %v1018_v2 = vmul.f32 %v2833_v22, %v3447_v1  ;;  %v2835_v13 = vpop.eup %2834 }
 0xabe   :  { %v1020_v10 = vadd.f32 %v1019_v19, %v1018_v2 }
 0xac0   :  { %2836 = vtanh.f32 %v1020_v10 }
 0xacd   :  { %v2837_v18 = vpop.eup %2836 }
 0xace   :  { %v1022_v16 = vmul.f32 %v2837_v18, %v2835_v13 }
 0xad0   :  { %2615 = vmatmul.mubr.f32.vlgmr.msra.gmra.mxu0 %v1022_v16 }
 0xb8f   :  { %1099 = sbr.rel (%p2286_p11) target bundleno = 2967 (0xb97), region = 61 }
 0xb90   :  { %v1089_v12 = vpop.f32.mrf.mxu0 }
 0xb91   :  { %v3834_v15 = vadd.f32 %v3453_v4, %v1089_v12 }
 0xb92   :  { %v2616_v14 = vpop.f32.mrf.mxu0 }
 0xb93   :  { %2284 = vst [vmem:[%s4348_s7 + $0x18] sm:$0xff] %v3834_v15 }
 0xb94   :  { %v2287_v6 = vld [vmem:[%s4342_s1 + $0x80] sm:$0xff]  ;;  %v2288_v17 = vld [vmem:[%s4342_s1 + $0x88] sm:$0xff]  ;;  %v2289_v9 = vld [vmem:[%s4342_s1 + $0x90] sm:$0xff] }
 0xb95   :  { %1105 = vst [vmem:[#allocation2 + $0x10] sm:$0xff] %v2287_v6  ;;  %1106 = vst [vmem:[#allocation2] sm:$0xff] %v2288_v17  ;;  %v2290_v21 = vld [vmem:[%s4342_s1 + $0x98] sm:$0xff] }
 0xb96   :  { %1107 = vst [vmem:[#allocation2 + $0x18] sm:$0xff] %v2289_v9  ;;  %1108 = vst [vmem:[#allocation2 + $0x8] sm:$0xff] %v2290_v21 }
 0xb97 PF:  { %p2291_p12 = scmp.ne.s32.totalorder %s2285_s15, 0 }
 0xb99   :  { %1112 = sbr.rel (%p2291_p12) target bundleno = 3599 (0xe0f), region = 65 }
 0xb9e   :  { %1113 = vmax.xlane.f32.xlu0 %v3834_v15  ;;  %1134 = vmatprep.subr.mxu0 %v3289_v3  ;;  %v4545_v0 = vld [vmem:[#allocation25_spill] sm:$0xff]  ;;  %v4546_v5 = vld [vmem:[#allocation23_spill] sm:$0xff]  ;;  %v4547_v8 = vld [vmem:[#allocation24_spill] sm:$0xff] }
 0xb9f   :  { %1205 = vmatprep.subr.mxu1 %v3299_v11  ;;  %1135 = vmatpush1.msra.mxu0 %v3284_v63  ;;  %v4548_v22 = vld [vmem:[#allocation20_spill] sm:$0xff]  ;;  %v4549_v19 = vld [vmem:[#allocation22_spill] sm:$0xff]  ;;  %v4550_v2 = vld [vmem:[#allocation19_spill] sm:$0xff] }
 0xba0   :  { %1206 = vmatpush1.msra.mxu1 %v3294_v7  ;;  %1136 = vmatprep.subr.mxu0 %v3269_v60  ;;  %v4551_v10 = vld [vmem:[#allocation21_spill] sm:$0xff]  ;;  %v4552_v13 = vld [vmem:[#allocation16_spill] sm:$0xff]  ;;  %v4553_v18 = vld [vmem:[#allocation18_spill] sm:$0xff] }
 0xba1   :  { %1207 = vmatprep.subr.mxu1 %v3279_v62  ;;  %1137 = vmatpush1.msra.mxu0 %v3264_v59  ;;  %v4554_v16 = vld [vmem:[#allocation14_spill] sm:$0xff]  ;;  %v4555_v12 = vld [vmem:[#allocation17_spill] sm:$0xff]  ;;  %v4556_v14 = vld [vmem:[#allocation11_spill] sm:$0xff] }
 0xba2   :  { %1208 = vmatpush1.msra.mxu1 %v3274_v61  ;;  %1138 = vmatprep.subr.mxu0 %v3249_v56  ;;  %v4557_v6 = vld [vmem:[#allocation13_spill] sm:$0xff]  ;;  %v4558_v17 = vld [vmem:[#allocation10_spill] sm:$0xff]  ;;  %v4559_v9 = vld [vmem:[#allocation12_spill] sm:$0xff] }
 0xba3   :  { %1209 = vmatprep.subr.mxu1 %v3259_v58  ;;  %1139 = vmatpush1.msra.mxu0 %v3244_v55  ;;  %v4560_v21 = vld [vmem:[#allocation7_spill] sm:$0xff] }
 0xba4   :  { %1210 = vmatpush1.msra.mxu1 %v3254_v57  ;;  %1140 = vmatprep.subr.mxu0 %v3229_v52 }
 0xba5   :  { %1211 = vmatprep.subr.mxu1 %v3239_v54  ;;  %1141 = vmatpush1.msra.mxu0 %v3224_v51 }
 0xba6   :  { %1212 = vmatpush1.msra.mxu1 %v3234_v53  ;;  %1142 = vmatprep.subr.mxu0 %v3209_v48 }
 0xba7   :  { %1213 = vmatprep.subr.mxu1 %v3219_v50  ;;  %1143 = vmatpush1.msra.mxu0 %v3204_v47 }
 0xba8   :  { %1214 = vmatpush1.msra.mxu1 %v3214_v49  ;;  %1144 = vmatprep.subr.mxu0 %v3189_v44 }
 0xba9   :  { %1215 = vmatprep.subr.mxu1 %v3199_v46  ;;  %1145 = vmatpush1.msra.mxu0 %v3184_v43 }
 0xbaa   :  { %1216 = vmatpush1.msra.mxu1 %v3194_v45  ;;  %1146 = vmatprep.subr.mxu0 %v3169_v40 }
 0xbab   :  { %1217 = vmatprep.subr.mxu1 %v3179_v42  ;;  %1147 = vmatpush1.msra.mxu0 %v3164_v39 }
 0xbac   :  { %1218 = vmatpush1.msra.mxu1 %v3174_v41  ;;  %1148 = vmatprep.subr.mxu0 %v3149_v36 }
 0xbad   :  { %1219 = vmatprep.subr.mxu1 %v3159_v38  ;;  %1149 = vmatpush1.msra.mxu0 %v3144_v35 }
 0xbae   :  { %1220 = vmatpush1.msra.mxu1 %v3154_v37  ;;  %1150 = vmatprep.subr.mxu0 %v3129_v32 }
 0xbaf   :  { %1221 = vmatprep.subr.mxu1 %v3139_v34  ;;  %1151 = vmatpush1.msra.mxu0 %v3124_v31 }
 0xbb0   :  { %1222 = vmatpush1.msra.mxu1 %v3134_v33  ;;  %1152 = vmatprep.subr.mxu0 %v3109_v28 }
 0xbb1   :  { %1223 = vmatprep.subr.mxu1 %v3119_v30  ;;  %1153 = vmatpush1.msra.mxu0 %v3104_v27 }
 0xbb2   :  { %1224 = vmatpush1.msra.mxu1 %v3114_v29  ;;  %1154 = vmatprep.subr.mxu0 %v3089_v24 }
 0xbb3   :  { %1225 = vmatprep.subr.mxu1 %v3099_v26  ;;  %1155 = vmatpush1.msra.mxu0 %v3084_v23 }
 0xbb4   :  { %1226 = vmatpush1.msra.mxu1 %v3094_v25  ;;  %1156 = vmatprep.subr.mxu0 %v3069_v20 }
 0xbb5   :  { %1227 = vmatprep.subr.mxu1 %v4545_v0  ;;  %1157 = vmatpush1.msra.mxu0 %v4546_v5  ;;  %v4561_v0 = vld [vmem:[#allocation9_spill] sm:$0xff]  ;;  %v4562_v5 = vld [vmem:[#allocation6_spill] sm:$0xff] }
 0xbb6   :  { %1228 = vmatpush1.msra.mxu1 %v4547_v8  ;;  %1158 = vmatprep.subr.mxu0 %v4548_v22  ;;  %v4563_v8 = vld [vmem:[#allocation8_spill] sm:$0xff] }
 0xbb7   :  { %1229 = vmatprep.subr.mxu1 %v4549_v19  ;;  %1159 = vmatpush1.msra.mxu0 %v4550_v2  ;;  %v4564_v19 = vld [vmem:[#allocation15_spill] sm:$0xff] }
 0xbb8   :  { %1230 = vmatpush1.msra.mxu1 %v4551_v10  ;;  %1160 = vmatprep.subr.mxu0 %v4552_v13 }
 0xbb9   :  { %1231 = vmatprep.subr.mxu1 %v4553_v18  ;;  %1161 = vmatpush1.msra.mxu0 %v4554_v16 }
 0xbba   :  { %1232 = vmatpush1.msra.mxu1 %v4555_v12  ;;  %1162 = vmatprep.subr.mxu0 %v4556_v14 }
 0xbbb   :  { %1233 = vmatprep.subr.mxu1 %v4557_v6  ;;  %1163 = vmatpush1.msra.mxu0 %v4558_v17  ;;  %v2925_v6 = vmov 0.0  }
 0xbbc   :  { %1234 = vmatpush1.msra.mxu1 %v4559_v9  ;;  %1164 = vmatprep.subr.mxu0 %v4560_v21 }
 0xbbd   :  { %1235 = vmatprep.subr.mxu1 %v4561_v0  ;;  %1165 = vmatpush1.msra.mxu0 %v4562_v5 }
 0xbbe   :  { %1236 = vmatpush1.msra.mxu1 %v4563_v8  ;;  %1198 = vmatprep.mubr.f32.mxu0 %v2925_v6 }
 0xbbf   :  { %1269 = vmatprep.mubr.f32.mxu1 %v2925_v6 }
 0xc27   :  { %v1114_v22 = vpop.xlane.xlu0 %1113 }
 0xc28   :  { %vm1115_vm10 = vcmp.eq.f32.partialorder %v3834_v15, %v1114_v22  ;;  %v2926_v15 = vmov 1.0  }
 0xc29   :  { %v1116_v2 = vsel %vm1115_vm10, %v4564_v19, 128 }
 0xc2a   :  { %v1118_v10 = vshra.s32 %v1116_v2, 16  ;;  %v1117_v18 = vand.u32 65535, %v1116_v2  ;;  %v4565_v2 = vld [vmem:[#allocation26_spill] sm:$0xff] }
 0xc2c   :  { %v1120_v13 = vcvt.s32.f32 %v1118_v10  ;;  %v1119_v12 = vcvt.s32.f32 %v1117_v18 }
 0xc2e   :  { %1121 = vmin.xlane.f32.xlu0 %v1120_v13 }
 0xcb7   :  { %v1122_v16 = vpop.xlane.xlu0 %1121 }
 0xcb8   :  { %vm1123_vm11 = vcmp.eq.f32.partialorder %v1120_v13, %v1122_v16  ;;  %v1128_v17 = vcvt.f32.s32 %v1122_v16  ;;  %v4566_v13 = vld [vmem:[#allocation28_spill] sm:$0xff]  ;;  %v4567_v16 = vld [vmem:[#allocation27_spill] sm:$0xff] }
 0xcb9   :  { %v1124_v14 = vsel %vm1123_vm11, %v1119_v12, inf }
 0xcba   :  { %1125 = vmin.xlane.f32.xlu1 %v1124_v14  ;;  %v1129_v21 = vshll.u32 %v1128_v17, 16  ;;  %v4568_v17 = vld [vmem:[#allocation29_spill] sm:$0xff] }
 0xd43   :  { %v1126_v9 = vpop.xlane.xlu1 %1125 }
 0xd44   :  { %v1127_v0 = vcvt.f32.s32 %v1126_v9 }
 0xd46   :  { %v1130_v5 = vadd.s32 %v1129_v21, %v1127_v0 }
 0xd48   :  { %vm1131_vm12 = vcmp.eq.s32.totalorder %v4564_v19, %v1130_v5 }
 0xd49   :  { %2293 = vmatmul.mubr.msk.f32.vlgmr.msra.gmra.mxu0 %vm1131_vm12, %v2926_v15  ;;  %2294 = vmatmul.mubr.msk.f32.vlgmr.msra.gmra.mxu1 %vm1131_vm12, %v2926_v15 }
 0xe09   :  { %v1200_v8 = vpop.f32.mrf.mxu0  ;;  %v1271_v22 = vpop.f32.mrf.mxu1 }
 0xe0a   :  { %v1201_v10 = vadd.f32 %v1200_v8, %v4565_v2  ;;  %v1272_v18 = vadd.f32 %v1271_v22, %v4566_v13 }
 0xe0b   :  { %v1202_v12 = vpop.f32.mrf.mxu0  ;;  %v1273_v14 = vpop.f32.mrf.mxu1 }
 0xe0c   :  { %1276 = vst [vmem:[#allocation2 + $0x10] sm:$0xff] %v1201_v10  ;;  %1278 = vst [vmem:[#allocation2 + $0x18] sm:$0xff] %v1272_v18  ;;  %v1203_v6 = vadd.f32 %v1202_v12, %v4567_v16  ;;  %v1274_v9 = vadd.f32 %v1273_v14, %v4568_v17 }
 0xe0e   :  { %1277 = vst [vmem:[#allocation2] sm:$0xff] %v1203_v6  ;;  %1279 = vst [vmem:[#allocation2 + $0x8] sm:$0xff] %v1274_v9 }
 0xe0f PF:  { %v4569_v19 = vmov 0.0   ;;  %v4570_v5 = vld [vmem:[#allocation30_spill] sm:$0xff]  ;;  %v4571_v22 = vld [vmem:[#allocation31_spill] sm:$0xff]  ;;  %v4572_v2 = vld [vmem:[#allocation32_spill] sm:$0xff]  ;;  %s2299_s24 = sld [smem:[#allocation3 + $0x4]] }
 0xe10   :  { %2617 = vmatprep.subr.mxu0 %v4569_v19  ;;  %2649 = vmatprep.mubr.msk.f32.mxu0 %vm2918_vm0, %v4569_v19  ;;  %v4573_v10 = vld [vmem:[#allocation33_spill] sm:$0xff]  ;;  %v4574_v13 = vld [vmem:[#allocation34_spill] sm:$0xff]  ;;  %v4575_v12 = vld [vmem:[#allocation35_spill] sm:$0xff] }
 0xe11   :  { %2618 = vmatpush3.msra.mxu0 %v4570_v5  ;;  %v4576_v16 = vld [vmem:[#allocation36_spill] sm:$0xff]  ;;  %v4577_v17 = vld [vmem:[#allocation37_spill] sm:$0xff] }
 0xe12   :  { %2619 = vmatprep.subr.mxu0 %v4569_v19 }
 0xe13   :  { %v1280_v21 = vld [vmem:[#allocation2 + $0x10] sm:$0xff]  ;;  %2620 = vmatpush3.msra.mxu0 %v4571_v22  ;;  %v1282_v6 = vld [vmem:[#allocation2 + $0x18] sm:$0xff] }
 0xe14   :  { %v2295_v15 = vmul.f32 -1.442695, %v1280_v21  ;;  %2621 = vmatprep.subr.mxu0 %v4569_v19  ;;  %v4580_v22 = vld [vmem:[#allocation40_spill] sm:$0xff] }
 0xe15   :  { %v1281_v0 = vld [vmem:[#allocation2] sm:$0xff]  ;;  %2622 = vmatpush3.msra.mxu0 %v4572_v2  ;;  %v1283_v18 = vld [vmem:[#allocation2 + $0x8] sm:$0xff]  ;;  %v4581_v2 = vld [vmem:[#allocation41_spill] sm:$0xff]  ;;  %p2300_p13 = scmp.le.s32.totalorder %s2299_s24, 0 }
 0xe16   :  { %v2296_v8 = vmul.f32 -1.442695, %v1281_v0  ;;  %2838 = vpow2.f32 %v2295_v15  ;;  %2623 = vmatprep.subr.mxu0 %v4569_v19  ;;  %v2297_v14 = vmul.f32 -1.442695, %v1283_v18  ;;  %v4578_v0 = vld [vmem:[#allocation38_spill] sm:$0xff] }
 0xe17   :  { %2624 = vmatpush3.msra.mxu0 %v4573_v10  ;;  %v4582_v10 = vld [vmem:[#allocation42_spill] sm:$0xff] }
 0xe18   :  { %2840 = vpow2.f32 %v2296_v8  ;;  %2625 = vmatprep.subr.mxu0 %v4569_v19  ;;  %v4579_v8 = vld [vmem:[#allocation39_spill] sm:$0xff] }
 0xe19   :  { %2626 = vmatpush3.msra.mxu0 %v4574_v13  ;;  %2842 = vpow2.f32 %v2297_v14  ;;  %v4583_v13 = vld [vmem:[#allocation43_spill] sm:$0xff] }
 0xe1a   :  { %2627 = vmatprep.subr.mxu0 %v4569_v19  ;;  %2844 = vtanh.f32 %v1282_v6 }
 0xe1b   :  { %2628 = vmatpush3.msra.mxu0 %v4575_v12  ;;  %v4584_v12 = vld [vmem:[#allocation44_spill] sm:$0xff] }
 0xe1c   :  { %2629 = vmatprep.subr.mxu0 %v4569_v19 }
 0xe1d   :  { %2630 = vmatpush3.msra.mxu0 %v4576_v16  ;;  %v4585_v16 = vld [vmem:[#allocation45_spill] sm:$0xff] }
 0xe1e   :  { %2631 = vmatprep.subr.mxu0 %v4569_v19 }
 0xe1f   :  { %2632 = vmatpush3.msra.mxu0 %v4577_v17 }
 0xe20   :  { %2633 = vmatprep.subr.mxu0 %v4569_v19 }
 0xe21   :  { %2634 = vmatpush3.msra.mxu0 %v4578_v0 }
 0xe22   :  { %2635 = vmatprep.subr.mxu0 %v4569_v19 }
 0xe23   :  { %v2839_v9 = vpop.eup %2838  ;;  %2636 = vmatpush3.msra.mxu0 %v4579_v8 }
 0xe24   :  { %v1287_v5 = vadd.f32 1.0, %v2839_v9  ;;  %2637 = vmatprep.subr.mxu0 %v4569_v19 }
 0xe25   :  { %v2841_v21 = vpop.eup %2840  ;;  %2638 = vmatpush3.msra.mxu0 %v4580_v22 }
 0xe26   :  { %v1293_v15 = vadd.f32 1.0, %v2841_v21  ;;  %2846 = vrcp.f32 %v1287_v5  ;;  %2639 = vmatprep.subr.mxu0 %v4569_v19  ;;  %v2843_v18 = vpop.eup %2842 }
 0xe27   :  { %2640 = vmatpush3.msra.mxu0 %v4581_v2  ;;  %v2845_v14 = vpop.eup %2844  ;;  %v1300_v17 = vadd.f32 1.0, %v2843_v18 }
 0xe28   :  { %2848 = vrcp.f32 %v1293_v15  ;;  %2641 = vmatprep.subr.mxu0 %v4569_v19 }
 0xe29   :  { %2642 = vmatpush3.msra.mxu0 %v4582_v10  ;;  %2850 = vrcp.f32 %v1300_v17 }
 0xe2a   :  { %2643 = vmatprep.subr.mxu0 %v4569_v19 }
 0xe2b   :  { %2644 = vmatpush3.msra.mxu0 %v4583_v13 }
 0xe2c   :  { %2645 = vmatprep.subr.mxu0 %v4569_v19 }
 0xe2d   :  { %2646 = vmatpush3.msra.mxu0 %v4584_v12 }
 0xe2e   :  { %2647 = vmatprep.subr.mxu0 %v4569_v19 }
 0xe2f   :  { %2648 = vmatpush3.msra.mxu0 %v4585_v16 }
 0xe33   :  { %v2847_v6 = vpop.eup %2846 }
 0xe34   :  { %v1304_v21 = vmul.f32 %v2847_v6, %v2845_v14 }
 0xe35   :  { %v2849_v9 = vpop.eup %2848 }
 0xe36   :  { %v1303_v0 = vmul.f32 %v2849_v9, %v3447_v1  ;;  %v2851_v15 = vpop.eup %2850 }
 0xe38   :  { %v1305_v5 = vadd.f32 %v1304_v21, %v1303_v0 }
 0xe3a   :  { %2852 = vtanh.f32 %v1305_v5 }
 0xe47   :  { %v2853_v8 = vpop.eup %2852 }
 0xe48   :  { %v1307_v22 = vmul.f32 %v2853_v8, %v2851_v15 }
 0xe4a   :  { %2650 = vmatmul.mubr.f32.vlgmr.msra.gmra.mxu0 %v1307_v22 }
 0xf09   :  { %1384 = sbr.rel (%p2300_p13) target bundleno = 3857 (0xf11), region = 69 }
 0xf0a   :  { %v1374_v2 = vpop.f32.mrf.mxu0 }
 0xf0b   :  { %v3960_v10 = vadd.f32 %v3453_v4, %v1374_v2 }
 0xf0c   :  { %v2651_v19 = vpop.f32.mrf.mxu0 }
 0xf0d   :  { %2298 = vst [vmem:[%s4348_s7 + $0x20] sm:$0xff] %v3960_v10 }
 0xf0e   :  { %v2301_v13 = vld [vmem:[%s4342_s1 + $0xa0] sm:$0xff]  ;;  %v2302_v18 = vld [vmem:[%s4342_s1 + $0xa8] sm:$0xff]  ;;  %v2303_v12 = vld [vmem:[%s4342_s1 + $0xb0] sm:$0xff] }
 0xf0f   :  { %1390 = vst [vmem:[#allocation2 + $0x10] sm:$0xff] %v2301_v13  ;;  %1391 = vst [vmem:[#allocation2] sm:$0xff] %v2302_v18  ;;  %v2304_v14 = vld [vmem:[%s4342_s1 + $0xb8] sm:$0xff] }
 0xf10   :  { %1392 = vst [vmem:[#allocation2 + $0x18] sm:$0xff] %v2303_v12  ;;  %1393 = vst [vmem:[#allocation2 + $0x8] sm:$0xff] %v2304_v14 }
 0xf11 PF:  { %p2305_p0 = scmp.ne.s32.totalorder %s2299_s24, 0 }
 0xf13   :  { %1397 = sbr.rel (%p2305_p0) target bundleno = 4489 (0x1189), region = 73 }
 0xf18   :  { %1398 = vmax.xlane.f32.xlu0 %v3960_v10  ;;  %1419 = vmatprep.subr.mxu0 %v3289_v3  ;;  %v4586_v16 = vld [vmem:[#allocation25_spill] sm:$0xff]  ;;  %v4587_v6 = vld [vmem:[#allocation23_spill] sm:$0xff]  ;;  %v4588_v17 = vld [vmem:[#allocation24_spill] sm:$0xff] }
 0xf19   :  { %1490 = vmatprep.subr.mxu1 %v3299_v11  ;;  %1420 = vmatpush1.msra.mxu0 %v3284_v63  ;;  %v4589_v9 = vld [vmem:[#allocation20_spill] sm:$0xff]  ;;  %v4590_v21 = vld [vmem:[#allocation22_spill] sm:$0xff]  ;;  %v4591_v0 = vld [vmem:[#allocation19_spill] sm:$0xff] }
 0xf1a   :  { %1491 = vmatpush1.msra.mxu1 %v3294_v7  ;;  %1421 = vmatprep.subr.mxu0 %v3269_v60  ;;  %v4592_v5 = vld [vmem:[#allocation21_spill] sm:$0xff]  ;;  %v4593_v15 = vld [vmem:[#allocation16_spill] sm:$0xff]  ;;  %v4594_v8 = vld [vmem:[#allocation18_spill] sm:$0xff] }
 0xf1b   :  { %1492 = vmatprep.subr.mxu1 %v3279_v62  ;;  %1422 = vmatpush1.msra.mxu0 %v3264_v59  ;;  %v4595_v22 = vld [vmem:[#allocation14_spill] sm:$0xff]  ;;  %v4596_v2 = vld [vmem:[#allocation17_spill] sm:$0xff]  ;;  %v4597_v19 = vld [vmem:[#allocation11_spill] sm:$0xff] }
 0xf1c   :  { %1493 = vmatpush1.msra.mxu1 %v3274_v61  ;;  %1423 = vmatprep.subr.mxu0 %v3249_v56  ;;  %v4598_v13 = vld [vmem:[#allocation13_spill] sm:$0xff]  ;;  %v4599_v18 = vld [vmem:[#allocation10_spill] sm:$0xff]  ;;  %v4600_v12 = vld [vmem:[#allocation12_spill] sm:$0xff] }
 0xf1d   :  { %1494 = vmatprep.subr.mxu1 %v3259_v58  ;;  %1424 = vmatpush1.msra.mxu0 %v3244_v55  ;;  %v4601_v14 = vld [vmem:[#allocation7_spill] sm:$0xff] }
 0xf1e   :  { %1495 = vmatpush1.msra.mxu1 %v3254_v57  ;;  %1425 = vmatprep.subr.mxu0 %v3229_v52 }
 0xf1f   :  { %1496 = vmatprep.subr.mxu1 %v3239_v54  ;;  %1426 = vmatpush1.msra.mxu0 %v3224_v51 }
 0xf20   :  { %1497 = vmatpush1.msra.mxu1 %v3234_v53  ;;  %1427 = vmatprep.subr.mxu0 %v3209_v48 }
 0xf21   :  { %1498 = vmatprep.subr.mxu1 %v3219_v50  ;;  %1428 = vmatpush1.msra.mxu0 %v3204_v47 }
 0xf22   :  { %1499 = vmatpush1.msra.mxu1 %v3214_v49  ;;  %1429 = vmatprep.subr.mxu0 %v3189_v44 }
 0xf23   :  { %1500 = vmatprep.subr.mxu1 %v3199_v46  ;;  %1430 = vmatpush1.msra.mxu0 %v3184_v43 }
 0xf24   :  { %1501 = vmatpush1.msra.mxu1 %v3194_v45  ;;  %1431 = vmatprep.subr.mxu0 %v3169_v40 }
 0xf25   :  { %1502 = vmatprep.subr.mxu1 %v3179_v42  ;;  %1432 = vmatpush1.msra.mxu0 %v3164_v39 }
 0xf26   :  { %1503 = vmatpush1.msra.mxu1 %v3174_v41  ;;  %1433 = vmatprep.subr.mxu0 %v3149_v36 }
 0xf27   :  { %1504 = vmatprep.subr.mxu1 %v3159_v38  ;;  %1434 = vmatpush1.msra.mxu0 %v3144_v35 }
 0xf28   :  { %1505 = vmatpush1.msra.mxu1 %v3154_v37  ;;  %1435 = vmatprep.subr.mxu0 %v3129_v32 }
 0xf29   :  { %1506 = vmatprep.subr.mxu1 %v3139_v34  ;;  %1436 = vmatpush1.msra.mxu0 %v3124_v31 }
 0xf2a   :  { %1507 = vmatpush1.msra.mxu1 %v3134_v33  ;;  %1437 = vmatprep.subr.mxu0 %v3109_v28 }
 0xf2b   :  { %1508 = vmatprep.subr.mxu1 %v3119_v30  ;;  %1438 = vmatpush1.msra.mxu0 %v3104_v27 }
 0xf2c   :  { %1509 = vmatpush1.msra.mxu1 %v3114_v29  ;;  %1439 = vmatprep.subr.mxu0 %v3089_v24 }
 0xf2d   :  { %1510 = vmatprep.subr.mxu1 %v3099_v26  ;;  %1440 = vmatpush1.msra.mxu0 %v3084_v23 }
 0xf2e   :  { %1511 = vmatpush1.msra.mxu1 %v3094_v25  ;;  %1441 = vmatprep.subr.mxu0 %v3069_v20 }
 0xf2f   :  { %1512 = vmatprep.subr.mxu1 %v4586_v16  ;;  %1442 = vmatpush1.msra.mxu0 %v4587_v6  ;;  %v4602_v16 = vld [vmem:[#allocation9_spill] sm:$0xff]  ;;  %v4603_v6 = vld [vmem:[#allocation6_spill] sm:$0xff] }
 0xf30   :  { %1513 = vmatpush1.msra.mxu1 %v4588_v17  ;;  %1443 = vmatprep.subr.mxu0 %v4589_v9  ;;  %v4604_v17 = vld [vmem:[#allocation8_spill] sm:$0xff] }
 0xf31   :  { %1514 = vmatprep.subr.mxu1 %v4590_v21  ;;  %1444 = vmatpush1.msra.mxu0 %v4591_v0  ;;  %v4605_v21 = vld [vmem:[#allocation15_spill] sm:$0xff] }
 0xf32   :  { %1515 = vmatpush1.msra.mxu1 %v4592_v5  ;;  %1445 = vmatprep.subr.mxu0 %v4593_v15 }
 0xf33   :  { %1516 = vmatprep.subr.mxu1 %v4594_v8  ;;  %1446 = vmatpush1.msra.mxu0 %v4595_v22 }
 0xf34   :  { %1517 = vmatpush1.msra.mxu1 %v4596_v2  ;;  %1447 = vmatprep.subr.mxu0 %v4597_v19 }
 0xf35   :  { %1518 = vmatprep.subr.mxu1 %v4598_v13  ;;  %1448 = vmatpush1.msra.mxu0 %v4599_v18  ;;  %v2927_v13 = vmov 0.0  }
 0xf36   :  { %1519 = vmatpush1.msra.mxu1 %v4600_v12  ;;  %1449 = vmatprep.subr.mxu0 %v4601_v14 }
 0xf37   :  { %1520 = vmatprep.subr.mxu1 %v4602_v16  ;;  %1450 = vmatpush1.msra.mxu0 %v4603_v6 }
 0xf38   :  { %1521 = vmatpush1.msra.mxu1 %v4604_v17  ;;  %1483 = vmatprep.mubr.f32.mxu0 %v2927_v13 }
 0xf39   :  { %1554 = vmatprep.mubr.f32.mxu1 %v2927_v13 }
 0xfa1   :  { %v1399_v9 = vpop.xlane.xlu0 %1398 }
 0xfa2   :  { %vm1400_vm13 = vcmp.eq.f32.partialorder %v3960_v10, %v1399_v9  ;;  %v2928_v10 = vmov 1.0  }
 0xfa3   :  { %v1401_v0 = vsel %vm1400_vm13, %v4605_v21, 128 }
 0xfa4   :  { %v1403_v5 = vshra.s32 %v1401_v0, 16  ;;  %v1402_v8 = vand.u32 65535, %v1401_v0  ;;  %v4606_v0 = vld [vmem:[#allocation26_spill] sm:$0xff] }
 0xfa6   :  { %v1405_v15 = vcvt.s32.f32 %v1403_v5  ;;  %v1404_v2 = vcvt.s32.f32 %v1402_v8 }
 0xfa8   :  { %1406 = vmin.xlane.f32.xlu0 %v1405_v15 }
0x1031   :  { %v1407_v22 = vpop.xlane.xlu0 %1406 }
0x1032   :  { %vm1408_vm14 = vcmp.eq.f32.partialorder %v1405_v15, %v1407_v22  ;;  %v1413_v18 = vcvt.f32.s32 %v1407_v22  ;;  %v4607_v15 = vld [vmem:[#allocation28_spill] sm:$0xff]  ;;  %v4608_v22 = vld [vmem:[#allocation27_spill] sm:$0xff] }
0x1033   :  { %v1409_v19 = vsel %vm1408_vm14, %v1404_v2, inf }
0x1034   :  { %1410 = vmin.xlane.f32.xlu1 %v1409_v19  ;;  %v1414_v14 = vshll.u32 %v1413_v18, 16  ;;  %v4609_v18 = vld [vmem:[#allocation29_spill] sm:$0xff] }
0x10bd   :  { %v1411_v12 = vpop.xlane.xlu1 %1410 }
0x10be   :  { %v1412_v16 = vcvt.f32.s32 %v1411_v12 }
0x10c0   :  { %v1415_v6 = vadd.s32 %v1414_v14, %v1412_v16 }
0x10c2   :  { %vm1416_vm15 = vcmp.eq.s32.totalorder %v4605_v21, %v1415_v6 }
0x10c3   :  { %2307 = vmatmul.mubr.msk.f32.vlgmr.msra.gmra.mxu0 %vm1416_vm15, %v2928_v10  ;;  %2308 = vmatmul.mubr.msk.f32.vlgmr.msra.gmra.mxu1 %vm1416_vm15, %v2928_v10 }
0x1183   :  { %v1485_v17 = vpop.f32.mrf.mxu0  ;;  %v1556_v9 = vpop.f32.mrf.mxu1 }
0x1184   :  { %v1486_v5 = vadd.f32 %v1485_v17, %v4606_v0  ;;  %v1557_v8 = vadd.f32 %v1556_v9, %v4607_v15 }
0x1185   :  { %v1487_v2 = vpop.f32.mrf.mxu0  ;;  %v1558_v19 = vpop.f32.mrf.mxu1 }
0x1186   :  { %1561 = vst [vmem:[#allocation2 + $0x10] sm:$0xff] %v1486_v5  ;;  %1563 = vst [vmem:[#allocation2 + $0x18] sm:$0xff] %v1557_v8  ;;  %v1488_v13 = vadd.f32 %v1487_v2, %v4608_v22  ;;  %v1559_v12 = vadd.f32 %v1558_v19, %v4609_v18 }
0x1188   :  { %1562 = vst [vmem:[#allocation2] sm:$0xff] %v1488_v13  ;;  %1564 = vst [vmem:[#allocation2 + $0x8] sm:$0xff] %v1559_v12 }
0x1189 PF:  { %v4610_v21 = vmov 0.0   ;;  %v4611_v6 = vld [vmem:[#allocation30_spill] sm:$0xff]  ;;  %v4612_v9 = vld [vmem:[#allocation31_spill] sm:$0xff]  ;;  %v4613_v0 = vld [vmem:[#allocation32_spill] sm:$0xff]  ;;  %s2313_s10 = sld [smem:[#allocation3 + $0x5]] }
0x118a   :  { %2652 = vmatprep.subr.mxu0 %v4610_v21  ;;  %2684 = vmatprep.mubr.msk.f32.mxu0 %vm2918_vm0, %v4610_v21  ;;  %v4614_v5 = vld [vmem:[#allocation33_spill] sm:$0xff]  ;;  %v4615_v15 = vld [vmem:[#allocation34_spill] sm:$0xff]  ;;  %v4616_v2 = vld [vmem:[#allocation35_spill] sm:$0xff] }
0x118b   :  { %2653 = vmatpush3.msra.mxu0 %v4611_v6  ;;  %v4617_v22 = vld [vmem:[#allocation36_spill] sm:$0xff]  ;;  %v4618_v18 = vld [vmem:[#allocation37_spill] sm:$0xff] }
0x118c   :  { %2654 = vmatprep.subr.mxu0 %v4610_v21 }
0x118d   :  { %v1565_v14 = vld [vmem:[#allocation2 + $0x10] sm:$0xff]  ;;  %2655 = vmatpush3.msra.mxu0 %v4612_v9  ;;  %v1567_v13 = vld [vmem:[#allocation2 + $0x18] sm:$0xff] }
0x118e   :  { %v2309_v10 = vmul.f32 -1.442695, %v1565_v14  ;;  %2656 = vmatprep.subr.mxu0 %v4610_v21  ;;  %v4621_v9 = vld [vmem:[#allocation40_spill] sm:$0xff] }
0x118f   :  { %v1566_v16 = vld [vmem:[#allocation2] sm:$0xff]  ;;  %2657 = vmatpush3.msra.mxu0 %v4613_v0  ;;  %v1568_v8 = vld [vmem:[#allocation2 + $0x8] sm:$0xff]  ;;  %v4622_v0 = vld [vmem:[#allocation41_spill] sm:$0xff]  ;;  %p2314_p1 = scmp.le.s32.totalorder %s2313_s10, 0 }
0x1190   :  { %v2310_v17 = vmul.f32 -1.442695, %v1566_v16  ;;  %2854 = vpow2.f32 %v2309_v10  ;;  %2658 = vmatprep.subr.mxu0 %v4610_v21  ;;  %v2311_v19 = vmul.f32 -1.442695, %v1568_v8  ;;  %v4619_v16 = vld [vmem:[#allocation38_spill] sm:$0xff] }
0x1191   :  { %2659 = vmatpush3.msra.mxu0 %v4614_v5  ;;  %v4623_v5 = vld [vmem:[#allocation42_spill] sm:$0xff] }
0x1192   :  { %2856 = vpow2.f32 %v2310_v17  ;;  %2660 = vmatprep.subr.mxu0 %v4610_v21  ;;  %v4620_v17 = vld [vmem:[#allocation39_spill] sm:$0xff] }
0x1193   :  { %2661 = vmatpush3.msra.mxu0 %v4615_v15  ;;  %2858 = vpow2.f32 %v2311_v19  ;;  %v4624_v15 = vld [vmem:[#allocation43_spill] sm:$0xff] }
0x1194   :  { %2662 = vmatprep.subr.mxu0 %v4610_v21  ;;  %2860 = vtanh.f32 %v1567_v13 }
0x1195   :  { %2663 = vmatpush3.msra.mxu0 %v4616_v2  ;;  %v4625_v2 = vld [vmem:[#allocation44_spill] sm:$0xff] }
0x1196   :  { %2664 = vmatprep.subr.mxu0 %v4610_v21 }
0x1197   :  { %2665 = vmatpush3.msra.mxu0 %v4617_v22  ;;  %v4626_v22 = vld [vmem:[#allocation45_spill] sm:$0xff] }
0x1198   :  { %2666 = vmatprep.subr.mxu0 %v4610_v21 }
0x1199   :  { %2667 = vmatpush3.msra.mxu0 %v4618_v18 }
0x119a   :  { %2668 = vmatprep.subr.mxu0 %v4610_v21 }
0x119b   :  { %2669 = vmatpush3.msra.mxu0 %v4619_v16 }
0x119c   :  { %2670 = vmatprep.subr.mxu0 %v4610_v21 }
0x119d   :  { %v2855_v12 = vpop.eup %2854  ;;  %2671 = vmatpush3.msra.mxu0 %v4620_v17 }
0x119e   :  { %v1572_v6 = vadd.f32 1.0, %v2855_v12  ;;  %2672 = vmatprep.subr.mxu0 %v4610_v21 }
0x119f   :  { %v2857_v14 = vpop.eup %2856  ;;  %2673 = vmatpush3.msra.mxu0 %v4621_v9 }
0x11a0   :  { %v1578_v10 = vadd.f32 1.0, %v2857_v14  ;;  %2862 = vrcp.f32 %v1572_v6  ;;  %2674 = vmatprep.subr.mxu0 %v4610_v21  ;;  %v2859_v8 = vpop.eup %2858 }
0x11a1   :  { %2675 = vmatpush3.msra.mxu0 %v4622_v0  ;;  %v2861_v19 = vpop.eup %2860  ;;  %v1585_v18 = vadd.f32 1.0, %v2859_v8 }
0x11a2   :  { %2864 = vrcp.f32 %v1578_v10  ;;  %2676 = vmatprep.subr.mxu0 %v4610_v21 }
0x11a3   :  { %2677 = vmatpush3.msra.mxu0 %v4623_v5  ;;  %2866 = vrcp.f32 %v1585_v18 }
0x11a4   :  { %2678 = vmatprep.subr.mxu0 %v4610_v21 }
0x11a5   :  { %2679 = vmatpush3.msra.mxu0 %v4624_v15 }
0x11a6   :  { %2680 = vmatprep.subr.mxu0 %v4610_v21 }
0x11a7   :  { %2681 = vmatpush3.msra.mxu0 %v4625_v2 }
0x11a8   :  { %2682 = vmatprep.subr.mxu0 %v4610_v21 }
0x11a9   :  { %2683 = vmatpush3.msra.mxu0 %v4626_v22 }
0x11ad   :  { %v2863_v13 = vpop.eup %2862 }
0x11ae   :  { %v1589_v14 = vmul.f32 %v2863_v13, %v2861_v19 }
0x11af   :  { %v2865_v12 = vpop.eup %2864 }
0x11b0   :  { %v1588_v16 = vmul.f32 %v2865_v12, %v3447_v1  ;;  %v2867_v10 = vpop.eup %2866 }
0x11b2   :  { %v1590_v6 = vadd.f32 %v1589_v14, %v1588_v16 }
0x11b4   :  { %2868 = vtanh.f32 %v1590_v6 }
0x11c1   :  { %v2869_v17 = vpop.eup %2868 }
0x11c2   :  { %v1592_v9 = vmul.f32 %v2869_v17, %v2867_v10 }
0x11c4   :  { %2685 = vmatmul.mubr.f32.vlgmr.msra.gmra.mxu0 %v1592_v9 }
0x1283   :  { %1669 = sbr.rel (%p2314_p1) target bundleno = 4747 (0x128b), region = 77 }
0x1284   :  { %v1659_v0 = vpop.f32.mrf.mxu0 }
0x1285   :  { %v4086_v5 = vadd.f32 %v3453_v4, %v1659_v0 }
0x1286   :  { %v2686_v21 = vpop.f32.mrf.mxu0 }
0x1287   :  { %2312 = vst [vmem:[%s4348_s7 + $0x28] sm:$0xff] %v4086_v5 }
0x1288   :  { %v2315_v15 = vld [vmem:[%s4342_s1 + $0xc0] sm:$0xff]  ;;  %v2316_v8 = vld [vmem:[%s4342_s1 + $0xc8] sm:$0xff]  ;;  %v2317_v2 = vld [vmem:[%s4342_s1 + $0xd0] sm:$0xff] }
0x1289   :  { %1675 = vst [vmem:[#allocation2 + $0x10] sm:$0xff] %v2315_v15  ;;  %1676 = vst [vmem:[#allocation2] sm:$0xff] %v2316_v8  ;;  %v2318_v19 = vld [vmem:[%s4342_s1 + $0xd8] sm:$0xff] }
0x128a   :  { %1677 = vst [vmem:[#allocation2 + $0x18] sm:$0xff] %v2317_v2  ;;  %1678 = vst [vmem:[#allocation2 + $0x8] sm:$0xff] %v2318_v19 }
0x128b PF:  { %p2319_p2 = scmp.ne.s32.totalorder %s2313_s10, 0 }
0x128d   :  { %1682 = sbr.rel (%p2319_p2) target bundleno = 5379 (0x1503), region = 81 }
0x1292   :  { %1683 = vmax.xlane.f32.xlu0 %v4086_v5  ;;  %1704 = vmatprep.subr.mxu0 %v3289_v3  ;;  %v4627_v22 = vld [vmem:[#allocation25_spill] sm:$0xff]  ;;  %v4628_v13 = vld [vmem:[#allocation23_spill] sm:$0xff]  ;;  %v4629_v18 = vld [vmem:[#allocation24_spill] sm:$0xff] }
0x1293   :  { %1775 = vmatprep.subr.mxu1 %v3299_v11  ;;  %1705 = vmatpush1.msra.mxu0 %v3284_v63  ;;  %v4630_v12 = vld [vmem:[#allocation20_spill] sm:$0xff]  ;;  %v4631_v14 = vld [vmem:[#allocation22_spill] sm:$0xff]  ;;  %v4632_v16 = vld [vmem:[#allocation19_spill] sm:$0xff] }
0x1294   :  { %1776 = vmatpush1.msra.mxu1 %v3294_v7  ;;  %1706 = vmatprep.subr.mxu0 %v3269_v60  ;;  %v4633_v6 = vld [vmem:[#allocation21_spill] sm:$0xff]  ;;  %v4634_v10 = vld [vmem:[#allocation16_spill] sm:$0xff]  ;;  %v4635_v17 = vld [vmem:[#allocation18_spill] sm:$0xff] }
0x1295   :  { %1777 = vmatprep.subr.mxu1 %v3279_v62  ;;  %1707 = vmatpush1.msra.mxu0 %v3264_v59  ;;  %v4636_v9 = vld [vmem:[#allocation14_spill] sm:$0xff]  ;;  %v4637_v0 = vld [vmem:[#allocation17_spill] sm:$0xff]  ;;  %v4638_v21 = vld [vmem:[#allocation11_spill] sm:$0xff] }
0x1296   :  { %1778 = vmatpush1.msra.mxu1 %v3274_v61  ;;  %1708 = vmatprep.subr.mxu0 %v3249_v56  ;;  %v4639_v15 = vld [vmem:[#allocation13_spill] sm:$0xff]  ;;  %v4640_v8 = vld [vmem:[#allocation10_spill] sm:$0xff]  ;;  %v4641_v2 = vld [vmem:[#allocation12_spill] sm:$0xff] }
0x1297   :  { %1779 = vmatprep.subr.mxu1 %v3259_v58  ;;  %1709 = vmatpush1.msra.mxu0 %v3244_v55  ;;  %v4642_v19 = vld [vmem:[#allocation7_spill] sm:$0xff] }
0x1298   :  { %1780 = vmatpush1.msra.mxu1 %v3254_v57  ;;  %1710 = vmatprep.subr.mxu0 %v3229_v52 }
0x1299   :  { %1781 = vmatprep.subr.mxu1 %v3239_v54  ;;  %1711 = vmatpush1.msra.mxu0 %v3224_v51 }
0x129a   :  { %1782 = vmatpush1.msra.mxu1 %v3234_v53  ;;  %1712 = vmatprep.subr.mxu0 %v3209_v48 }
0x129b   :  { %1783 = vmatprep.subr.mxu1 %v3219_v50  ;;  %1713 = vmatpush1.msra.mxu0 %v3204_v47 }
0x129c   :  { %1784 = vmatpush1.msra.mxu1 %v3214_v49  ;;  %1714 = vmatprep.subr.mxu0 %v3189_v44 }
0x129d   :  { %1785 = vmatprep.subr.mxu1 %v3199_v46  ;;  %1715 = vmatpush1.msra.mxu0 %v3184_v43 }
0x129e   :  { %1786 = vmatpush1.msra.mxu1 %v3194_v45  ;;  %1716 = vmatprep.subr.mxu0 %v3169_v40 }
0x129f   :  { %1787 = vmatprep.subr.mxu1 %v3179_v42  ;;  %1717 = vmatpush1.msra.mxu0 %v3164_v39 }
0x12a0   :  { %1788 = vmatpush1.msra.mxu1 %v3174_v41  ;;  %1718 = vmatprep.subr.mxu0 %v3149_v36 }
0x12a1   :  { %1789 = vmatprep.subr.mxu1 %v3159_v38  ;;  %1719 = vmatpush1.msra.mxu0 %v3144_v35 }
0x12a2   :  { %1790 = vmatpush1.msra.mxu1 %v3154_v37  ;;  %1720 = vmatprep.subr.mxu0 %v3129_v32 }
0x12a3   :  { %1791 = vmatprep.subr.mxu1 %v3139_v34  ;;  %1721 = vmatpush1.msra.mxu0 %v3124_v31 }
0x12a4   :  { %1792 = vmatpush1.msra.mxu1 %v3134_v33  ;;  %1722 = vmatprep.subr.mxu0 %v3109_v28 }
0x12a5   :  { %1793 = vmatprep.subr.mxu1 %v3119_v30  ;;  %1723 = vmatpush1.msra.mxu0 %v3104_v27 }
0x12a6   :  { %1794 = vmatpush1.msra.mxu1 %v3114_v29  ;;  %1724 = vmatprep.subr.mxu0 %v3089_v24 }
0x12a7   :  { %1795 = vmatprep.subr.mxu1 %v3099_v26  ;;  %1725 = vmatpush1.msra.mxu0 %v3084_v23 }
0x12a8   :  { %1796 = vmatpush1.msra.mxu1 %v3094_v25  ;;  %1726 = vmatprep.subr.mxu0 %v3069_v20 }
0x12a9   :  { %1797 = vmatprep.subr.mxu1 %v4627_v22  ;;  %1727 = vmatpush1.msra.mxu0 %v4628_v13  ;;  %v4643_v22 = vld [vmem:[#allocation9_spill] sm:$0xff]  ;;  %v4644_v13 = vld [vmem:[#allocation6_spill] sm:$0xff] }
0x12aa   :  { %1798 = vmatpush1.msra.mxu1 %v4629_v18  ;;  %1728 = vmatprep.subr.mxu0 %v4630_v12  ;;  %v4645_v18 = vld [vmem:[#allocation8_spill] sm:$0xff] }
0x12ab   :  { %1799 = vmatprep.subr.mxu1 %v4631_v14  ;;  %1729 = vmatpush1.msra.mxu0 %v4632_v16  ;;  %v4646_v14 = vld [vmem:[#allocation15_spill] sm:$0xff] }
0x12ac   :  { %1800 = vmatpush1.msra.mxu1 %v4633_v6  ;;  %1730 = vmatprep.subr.mxu0 %v4634_v10 }
0x12ad   :  { %1801 = vmatprep.subr.mxu1 %v4635_v17  ;;  %1731 = vmatpush1.msra.mxu0 %v4636_v9 }
0x12ae   :  { %1802 = vmatpush1.msra.mxu1 %v4637_v0  ;;  %1732 = vmatprep.subr.mxu0 %v4638_v21 }
0x12af   :  { %1803 = vmatprep.subr.mxu1 %v4639_v15  ;;  %1733 = vmatpush1.msra.mxu0 %v4640_v8  ;;  %v2929_v15 = vmov 0.0  }
0x12b0   :  { %1804 = vmatpush1.msra.mxu1 %v4641_v2  ;;  %1734 = vmatprep.subr.mxu0 %v4642_v19 }
0x12b1   :  { %1805 = vmatprep.subr.mxu1 %v4643_v22  ;;  %1735 = vmatpush1.msra.mxu0 %v4644_v13 }
0x12b2   :  { %1806 = vmatpush1.msra.mxu1 %v4645_v18  ;;  %1768 = vmatprep.mubr.f32.mxu0 %v2929_v15 }
0x12b3   :  { %1839 = vmatprep.mubr.f32.mxu1 %v2929_v15 }
0x131b   :  { %v1684_v12 = vpop.xlane.xlu0 %1683 }
0x131c   :  { %vm1685_vm1 = vcmp.eq.f32.partialorder %v4086_v5, %v1684_v12  ;;  %v2930_v5 = vmov 1.0  }
0x131d   :  { %v1686_v16 = vsel %vm1685_vm1, %v4646_v14, 128 }
0x131e   :  { %v1688_v6 = vshra.s32 %v1686_v16, 16  ;;  %v1687_v17 = vand.u32 65535, %v1686_v16  ;;  %v4647_v16 = vld [vmem:[#allocation26_spill] sm:$0xff] }
0x1320   :  { %v1690_v10 = vcvt.s32.f32 %v1688_v6  ;;  %v1689_v0 = vcvt.s32.f32 %v1687_v17 }
0x1322   :  { %1691 = vmin.xlane.f32.xlu0 %v1690_v10 }
0x13ab   :  { %v1692_v9 = vpop.xlane.xlu0 %1691 }
0x13ac   :  { %vm1693_vm2 = vcmp.eq.f32.partialorder %v1690_v10, %v1692_v9  ;;  %v1698_v8 = vcvt.f32.s32 %v1692_v9  ;;  %v4648_v10 = vld [vmem:[#allocation28_spill] sm:$0xff]  ;;  %v4649_v9 = vld [vmem:[#allocation27_spill] sm:$0xff] }
0x13ad   :  { %v1694_v21 = vsel %vm1693_vm2, %v1689_v0, inf }
0x13ae   :  { %1695 = vmin.xlane.f32.xlu1 %v1694_v21  ;;  %v1699_v19 = vshll.u32 %v1698_v8, 16  ;;  %v4650_v8 = vld [vmem:[#allocation29_spill] sm:$0xff] }
0x1437   :  { %v1696_v2 = vpop.xlane.xlu1 %1695 }
0x1438   :  { %v1697_v22 = vcvt.f32.s32 %v1696_v2 }
0x143a   :  { %v1700_v13 = vadd.s32 %v1699_v19, %v1697_v22 }
0x143c   :  { %vm1701_vm3 = vcmp.eq.s32.totalorder %v4646_v14, %v1700_v13 }
0x143d   :  { %2321 = vmatmul.mubr.msk.f32.vlgmr.msra.gmra.mxu0 %vm1701_vm3, %v2930_v5  ;;  %2322 = vmatmul.mubr.msk.f32.vlgmr.msra.gmra.mxu1 %vm1701_vm3, %v2930_v5 }
0x14fd   :  { %v1770_v18 = vpop.f32.mrf.mxu0  ;;  %v1841_v12 = vpop.f32.mrf.mxu1 }
0x14fe   :  { %v1771_v6 = vadd.f32 %v1770_v18, %v4647_v16  ;;  %v1842_v17 = vadd.f32 %v1841_v12, %v4648_v10 }
0x14ff   :  { %v1772_v0 = vpop.f32.mrf.mxu0  ;;  %v1843_v21 = vpop.f32.mrf.mxu1 }
0x1500   :  { %1846 = vst [vmem:[#allocation2 + $0x10] sm:$0xff] %v1771_v6  ;;  %1848 = vst [vmem:[#allocation2 + $0x18] sm:$0xff] %v1842_v17  ;;  %v1773_v15 = vadd.f32 %v1772_v0, %v4649_v9  ;;  %v1844_v2 = vadd.f32 %v1843_v21, %v4650_v8 }
0x1502   :  { %1847 = vst [vmem:[#allocation2] sm:$0xff] %v1773_v15  ;;  %1849 = vst [vmem:[#allocation2 + $0x8] sm:$0xff] %v1844_v2 }
0x1503 PF:  { %v4651_v14 = vmov 0.0   ;;  %v4652_v13 = vld [vmem:[#allocation30_spill] sm:$0xff]  ;;  %v4653_v12 = vld [vmem:[#allocation31_spill] sm:$0xff]  ;;  %v4654_v16 = vld [vmem:[#allocation32_spill] sm:$0xff]  ;;  %s2327_s18 = sld [smem:[#allocation3 + $0x6]] }
0x1504   :  { %2687 = vmatprep.subr.mxu0 %v4651_v14  ;;  %2719 = vmatprep.mubr.msk.f32.mxu0 %vm2918_vm0, %v4651_v14  ;;  %v4655_v6 = vld [vmem:[#allocation33_spill] sm:$0xff]  ;;  %v4656_v10 = vld [vmem:[#allocation34_spill] sm:$0xff]  ;;  %v4657_v0 = vld [vmem:[#allocation35_spill] sm:$0xff] }
0x1505   :  { %2688 = vmatpush3.msra.mxu0 %v4652_v13  ;;  %v4658_v9 = vld [vmem:[#allocation36_spill] sm:$0xff]  ;;  %v4659_v8 = vld [vmem:[#allocation37_spill] sm:$0xff] }
0x1506   :  { %2689 = vmatprep.subr.mxu0 %v4651_v14 }
0x1507   :  { %v1850_v19 = vld [vmem:[#allocation2 + $0x10] sm:$0xff]  ;;  %2690 = vmatpush3.msra.mxu0 %v4653_v12  ;;  %v1852_v15 = vld [vmem:[#allocation2 + $0x18] sm:$0xff] }
0x1508   :  { %v2323_v5 = vmul.f32 -1.442695, %v1850_v19  ;;  %2691 = vmatprep.subr.mxu0 %v4651_v14  ;;  %v4662_v12 = vld [vmem:[#allocation40_spill] sm:$0xff] }
0x1509   :  { %v1851_v22 = vld [vmem:[#allocation2] sm:$0xff]  ;;  %2692 = vmatpush3.msra.mxu0 %v4654_v16  ;;  %v1853_v17 = vld [vmem:[#allocation2 + $0x8] sm:$0xff]  ;;  %v4663_v16 = vld [vmem:[#allocation41_spill] sm:$0xff]  ;;  %p2328_p3 = scmp.le.s32.totalorder %s2327_s18, 0 }
0x150a   :  { %v2324_v18 = vmul.f32 -1.442695, %v1851_v22  ;;  %2870 = vpow2.f32 %v2323_v5  ;;  %2693 = vmatprep.subr.mxu0 %v4651_v14  ;;  %v2325_v21 = vmul.f32 -1.442695, %v1853_v17  ;;  %v4660_v22 = vld [vmem:[#allocation38_spill] sm:$0xff] }
0x150b   :  { %2694 = vmatpush3.msra.mxu0 %v4655_v6  ;;  %v4664_v6 = vld [vmem:[#allocation42_spill] sm:$0xff] }
0x150c   :  { %2872 = vpow2.f32 %v2324_v18  ;;  %2695 = vmatprep.subr.mxu0 %v4651_v14  ;;  %v4661_v18 = vld [vmem:[#allocation39_spill] sm:$0xff] }
0x150d   :  { %2696 = vmatpush3.msra.mxu0 %v4656_v10  ;;  %2874 = vpow2.f32 %v2325_v21  ;;  %v4665_v10 = vld [vmem:[#allocation43_spill] sm:$0xff] }
0x150e   :  { %2697 = vmatprep.subr.mxu0 %v4651_v14  ;;  %2876 = vtanh.f32 %v1852_v15 }
0x150f   :  { %2698 = vmatpush3.msra.mxu0 %v4657_v0  ;;  %v4666_v0 = vld [vmem:[#allocation44_spill] sm:$0xff] }
0x1510   :  { %2699 = vmatprep.subr.mxu0 %v4651_v14 }
0x1511   :  { %2700 = vmatpush3.msra.mxu0 %v4658_v9  ;;  %v4667_v9 = vld [vmem:[#allocation45_spill] sm:$0xff] }
0x1512   :  { %2701 = vmatprep.subr.mxu0 %v4651_v14 }
0x1513   :  { %2702 = vmatpush3.msra.mxu0 %v4659_v8 }
0x1514   :  { %2703 = vmatprep.subr.mxu0 %v4651_v14 }
0x1515   :  { %2704 = vmatpush3.msra.mxu0 %v4660_v22 }
0x1516   :  { %2705 = vmatprep.subr.mxu0 %v4651_v14 }
0x1517   :  { %v2871_v2 = vpop.eup %2870  ;;  %2706 = vmatpush3.msra.mxu0 %v4661_v18 }
0x1518   :  { %v1857_v13 = vadd.f32 1.0, %v2871_v2  ;;  %2707 = vmatprep.subr.mxu0 %v4651_v14 }
0x1519   :  { %v2873_v19 = vpop.eup %2872  ;;  %2708 = vmatpush3.msra.mxu0 %v4662_v12 }
0x151a   :  { %v1863_v5 = vadd.f32 1.0, %v2873_v19  ;;  %2878 = vrcp.f32 %v1857_v13  ;;  %2709 = vmatprep.subr.mxu0 %v4651_v14  ;;  %v2875_v17 = vpop.eup %2874 }
0x151b   :  { %2710 = vmatpush3.msra.mxu0 %v4663_v16  ;;  %v2877_v21 = vpop.eup %2876  ;;  %v1870_v8 = vadd.f32 1.0, %v2875_v17 }
0x151c   :  { %2880 = vrcp.f32 %v1863_v5  ;;  %2711 = vmatprep.subr.mxu0 %v4651_v14 }
0x151d   :  { %2712 = vmatpush3.msra.mxu0 %v4664_v6  ;;  %2882 = vrcp.f32 %v1870_v8 }
0x151e   :  { %2713 = vmatprep.subr.mxu0 %v4651_v14 }
0x151f   :  { %2714 = vmatpush3.msra.mxu0 %v4665_v10 }
0x1520   :  { %2715 = vmatprep.subr.mxu0 %v4651_v14 }
0x1521   :  { %2716 = vmatpush3.msra.mxu0 %v4666_v0 }
0x1522   :  { %2717 = vmatprep.subr.mxu0 %v4651_v14 }
0x1523   :  { %2718 = vmatpush3.msra.mxu0 %v4667_v9 }
0x1527   :  { %v2879_v15 = vpop.eup %2878 }
0x1528   :  { %v1874_v19 = vmul.f32 %v2879_v15, %v2877_v21 }
0x1529   :  { %v2881_v2 = vpop.eup %2880 }
0x152a   :  { %v1873_v22 = vmul.f32 %v2881_v2, %v3447_v1  ;;  %v2883_v5 = vpop.eup %2882 }
0x152c   :  { %v1875_v13 = vadd.f32 %v1874_v19, %v1873_v22 }
0x152e   :  { %2884 = vtanh.f32 %v1875_v13 }
0x153b   :  { %v2885_v18 = vpop.eup %2884 }
0x153c   :  { %v1877_v12 = vmul.f32 %v2885_v18, %v2883_v5 }
0x153e   :  { %2720 = vmatmul.mubr.f32.vlgmr.msra.gmra.mxu0 %v1877_v12 }
0x15fd   :  { %1954 = sbr.rel (%p2328_p3) target bundleno = 5637 (0x1605), region = 85 }
0x15fe   :  { %v1944_v16 = vpop.f32.mrf.mxu0 }
0x15ff   :  { %v4212_v6 = vadd.f32 %v3453_v4, %v1944_v16 }
0x1600   :  { %v2721_v14 = vpop.f32.mrf.mxu0 }
0x1601   :  { %2326 = vst [vmem:[%s4348_s7 + $0x30] sm:$0xff] %v4212_v6 }
0x1602   :  { %v2329_v10 = vld [vmem:[%s4342_s1 + $0xe0] sm:$0xff]  ;;  %v2330_v17 = vld [vmem:[%s4342_s1 + $0xe8] sm:$0xff]  ;;  %v2331_v0 = vld [vmem:[%s4342_s1 + $0xf0] sm:$0xff] }
0x1603   :  { %1960 = vst [vmem:[#allocation2 + $0x10] sm:$0xff] %v2329_v10  ;;  %1961 = vst [vmem:[#allocation2] sm:$0xff] %v2330_v17  ;;  %v2332_v21 = vld [vmem:[%s4342_s1 + $0xf8] sm:$0xff] }
0x1604   :  { %1962 = vst [vmem:[#allocation2 + $0x18] sm:$0xff] %v2331_v0  ;;  %1963 = vst [vmem:[#allocation2 + $0x8] sm:$0xff] %v2332_v21 }
0x1605 PF:  { %p2333_p4 = scmp.ne.s32.totalorder %s2327_s18, 0 }
0x1607   :  { %1967 = sbr.rel (%p2333_p4) target bundleno = 6269 (0x187d), region = 89 }
0x160c   :  { %1968 = vmax.xlane.f32.xlu0 %v4212_v6  ;;  %1989 = vmatprep.subr.mxu0 %v3289_v3  ;;  %v4691_v9 = vld [vmem:[#allocation29_spill] sm:$0xff] }
0x160d   :  { %2060 = vmatprep.subr.mxu1 %v3299_v11  ;;  %1990 = vmatpush1.msra.mxu0 %v3284_v63  ;;  %v4669_v11 = vld [vmem:[#allocation23_spill] sm:$0xff] }
0x160e   :  { %2061 = vmatpush1.msra.mxu1 %v3294_v7  ;;  %1991 = vmatprep.subr.mxu0 %v3269_v60  ;;  %v4668_v7 = vld [vmem:[#allocation25_spill] sm:$0xff]  ;;  %v4690_v63 = vld [vmem:[#allocation27_spill] sm:$0xff] }
0x160f   :  { %2062 = vmatprep.subr.mxu1 %v3279_v62  ;;  %1992 = vmatpush1.msra.mxu0 %v3264_v59  ;;  %v4689_v59 = vld [vmem:[#allocation28_spill] sm:$0xff] }
0x1610   :  { %2063 = vmatpush1.msra.mxu1 %v3274_v61  ;;  %1993 = vmatprep.subr.mxu0 %v3249_v56 }
0x1611   :  { %2064 = vmatprep.subr.mxu1 %v3259_v58  ;;  %1994 = vmatpush1.msra.mxu0 %v3244_v55 }
0x1612   :  { %2065 = vmatpush1.msra.mxu1 %v3254_v57  ;;  %1995 = vmatprep.subr.mxu0 %v3229_v52  ;;  %v4688_v57 = vld [vmem:[#allocation26_spill] sm:$0xff] }
0x1613   :  { %2066 = vmatprep.subr.mxu1 %v3239_v54  ;;  %1996 = vmatpush1.msra.mxu0 %v3224_v51  ;;  %v2932_v54 = vmov 1.0  }
0x1614   :  { %2067 = vmatpush1.msra.mxu1 %v3234_v53  ;;  %1997 = vmatprep.subr.mxu0 %v3209_v48  ;;  %v2931_v48 = vmov 0.0  }
0x1615   :  { %2068 = vmatprep.subr.mxu1 %v3219_v50  ;;  %1998 = vmatpush1.msra.mxu0 %v3204_v47 }
0x1616   :  { %2069 = vmatpush1.msra.mxu1 %v3214_v49  ;;  %1999 = vmatprep.subr.mxu0 %v3189_v44 }
0x1617   :  { %2070 = vmatprep.subr.mxu1 %v3199_v46  ;;  %2000 = vmatpush1.msra.mxu0 %v3184_v43 }
0x1618   :  { %2071 = vmatpush1.msra.mxu1 %v3194_v45  ;;  %2001 = vmatprep.subr.mxu0 %v3169_v40  ;;  %v4687_v40 = vld [vmem:[#allocation15_spill] sm:$0xff] }
0x1619   :  { %2072 = vmatprep.subr.mxu1 %v3179_v42  ;;  %2002 = vmatpush1.msra.mxu0 %v3164_v39 }
0x161a   :  { %2073 = vmatpush1.msra.mxu1 %v3174_v41  ;;  %2003 = vmatprep.subr.mxu0 %v3149_v36  ;;  %v4684_v36 = vld [vmem:[#allocation9_spill] sm:$0xff] }
0x161b   :  { %2074 = vmatprep.subr.mxu1 %v3159_v38  ;;  %2004 = vmatpush1.msra.mxu0 %v3144_v35  ;;  %v4683_v35 = vld [vmem:[#allocation7_spill] sm:$0xff]  ;;  %v4686_v38 = vld [vmem:[#allocation8_spill] sm:$0xff] }
0x161c   :  { %2075 = vmatpush1.msra.mxu1 %v3154_v37  ;;  %2005 = vmatprep.subr.mxu0 %v3129_v32  ;;  %v4680_v32 = vld [vmem:[#allocation13_spill] sm:$0xff]  ;;  %v4685_v37 = vld [vmem:[#allocation6_spill] sm:$0xff] }
0x161d   :  { %2076 = vmatprep.subr.mxu1 %v3139_v34  ;;  %2006 = vmatpush1.msra.mxu0 %v3124_v31  ;;  %v4679_v31 = vld [vmem:[#allocation11_spill] sm:$0xff]  ;;  %v4682_v34 = vld [vmem:[#allocation12_spill] sm:$0xff] }
0x161e   :  { %2077 = vmatpush1.msra.mxu1 %v3134_v33  ;;  %2007 = vmatprep.subr.mxu0 %v3109_v28  ;;  %v4670_v28 = vld [vmem:[#allocation24_spill] sm:$0xff]  ;;  %v4681_v33 = vld [vmem:[#allocation10_spill] sm:$0xff] }
0x161f   :  { %2078 = vmatprep.subr.mxu1 %v3119_v30  ;;  %2008 = vmatpush1.msra.mxu0 %v3104_v27  ;;  %v4671_v30 = vld [vmem:[#allocation20_spill] sm:$0xff]  ;;  %v4672_v27 = vld [vmem:[#allocation22_spill] sm:$0xff] }
0x1620   :  { %2079 = vmatpush1.msra.mxu1 %v3114_v29  ;;  %2009 = vmatprep.subr.mxu0 %v3089_v24  ;;  %v4673_v29 = vld [vmem:[#allocation19_spill] sm:$0xff]  ;;  %v4674_v24 = vld [vmem:[#allocation21_spill] sm:$0xff] }
0x1621   :  { %2080 = vmatprep.subr.mxu1 %v3099_v26  ;;  %2010 = vmatpush1.msra.mxu0 %v3084_v23  ;;  %v4675_v26 = vld [vmem:[#allocation16_spill] sm:$0xff]  ;;  %v4676_v23 = vld [vmem:[#allocation18_spill] sm:$0xff] }
0x1622   :  { %2081 = vmatpush1.msra.mxu1 %v3094_v25  ;;  %2011 = vmatprep.subr.mxu0 %v3069_v20  ;;  %v4677_v25 = vld [vmem:[#allocation14_spill] sm:$0xff]  ;;  %v4678_v20 = vld [vmem:[#allocation17_spill] sm:$0xff] }
0x1623   :  { %2082 = vmatprep.subr.mxu1 %v4668_v7  ;;  %2012 = vmatpush1.msra.mxu0 %v4669_v11 }
0x1624   :  { %2083 = vmatpush1.msra.mxu1 %v4670_v28  ;;  %2013 = vmatprep.subr.mxu0 %v4671_v30 }
0x1625   :  { %2084 = vmatprep.subr.mxu1 %v4672_v27  ;;  %2014 = vmatpush1.msra.mxu0 %v4673_v29 }
0x1626   :  { %2085 = vmatpush1.msra.mxu1 %v4674_v24  ;;  %2015 = vmatprep.subr.mxu0 %v4675_v26 }
0x1627   :  { %2086 = vmatprep.subr.mxu1 %v4676_v23  ;;  %2016 = vmatpush1.msra.mxu0 %v4677_v25 }
0x1628   :  { %2087 = vmatpush1.msra.mxu1 %v4678_v20  ;;  %2017 = vmatprep.subr.mxu0 %v4679_v31 }
0x1629   :  { %2088 = vmatprep.subr.mxu1 %v4680_v32  ;;  %2018 = vmatpush1.msra.mxu0 %v4681_v33 }
0x162a   :  { %2089 = vmatpush1.msra.mxu1 %v4682_v34  ;;  %2019 = vmatprep.subr.mxu0 %v4683_v35 }
0x162b   :  { %2090 = vmatprep.subr.mxu1 %v4684_v36  ;;  %2020 = vmatpush1.msra.mxu0 %v4685_v37 }
0x162c   :  { %2091 = vmatpush1.msra.mxu1 %v4686_v38  ;;  %2053 = vmatprep.mubr.f32.mxu0 %v2931_v48 }
0x162d   :  { %2124 = vmatprep.mubr.f32.mxu1 %v2931_v48 }
0x1695   :  { %v1969_v39 = vpop.xlane.xlu0 %1968 }
0x1696   :  { %vm1970_vm4 = vcmp.eq.f32.partialorder %v4212_v6, %v1969_v39 }
0x1697   :  { %v1971_v41 = vsel %vm1970_vm4, %v4687_v40, 128 }
0x1698   :  { %v1973_v42 = vshra.s32 %v1971_v41, 16  ;;  %v1972_v44 = vand.u32 65535, %v1971_v41 }
0x169a   :  { %v1975_v43 = vcvt.s32.f32 %v1973_v42  ;;  %v1974_v46 = vcvt.s32.f32 %v1972_v44 }
0x169c   :  { %1976 = vmin.xlane.f32.xlu0 %v1975_v43 }
0x1725   :  { %v1977_v45 = vpop.xlane.xlu0 %1976 }
0x1726   :  { %vm1978_vm5 = vcmp.eq.f32.partialorder %v1975_v43, %v1977_v45  ;;  %v1983_v49 = vcvt.f32.s32 %v1977_v45 }
0x1727   :  { %v1979_v47 = vsel %vm1978_vm5, %v1974_v46, inf }
0x1728   :  { %1980 = vmin.xlane.f32.xlu1 %v1979_v47  ;;  %v1984_v51 = vshll.u32 %v1983_v49, 16 }
0x17b1   :  { %v1981_v50 = vpop.xlane.xlu1 %1980 }
0x17b2   :  { %v1982_v52 = vcvt.f32.s32 %v1981_v50 }
0x17b4   :  { %v1985_v53 = vadd.s32 %v1984_v51, %v1982_v52 }
0x17b6   :  { %vm1986_vm6 = vcmp.eq.s32.totalorder %v4687_v40, %v1985_v53 }
0x17b7   :  { %2335 = vmatmul.mubr.msk.f32.vlgmr.msra.gmra.mxu0 %vm1986_vm6, %v2932_v54  ;;  %2336 = vmatmul.mubr.msk.f32.vlgmr.msra.gmra.mxu1 %vm1986_vm6, %v2932_v54 }
0x1877   :  { %v2055_v55 = vpop.f32.mrf.mxu0  ;;  %v2126_v56 = vpop.f32.mrf.mxu1 }
0x1878   :  { %v2056_v58 = vadd.f32 %v2055_v55, %v4688_v57  ;;  %v2127_v60 = vadd.f32 %v2126_v56, %v4689_v59 }
0x1879   :  { %v2057_v61 = vpop.f32.mrf.mxu0  ;;  %v2128_v62 = vpop.f32.mrf.mxu1 }
0x187a   :  { %2131 = vst [vmem:[#allocation2 + $0x10] sm:$0xff] %v2056_v58  ;;  %2133 = vst [vmem:[#allocation2 + $0x18] sm:$0xff] %v2127_v60  ;;  %v2058_v3 = vadd.f32 %v2057_v61, %v4690_v63  ;;  %v2129_v15 = vadd.f32 %v2128_v62, %v4691_v9 }
0x187c   :  { %2132 = vst [vmem:[#allocation2] sm:$0xff] %v2058_v3  ;;  %2134 = vst [vmem:[#allocation2 + $0x8] sm:$0xff] %v2129_v15 }
0x187d PF:  { %v4692_v8 = vmov 0.0   ;;  %v4693_v22 = vld [vmem:[#allocation30_spill] sm:$0xff]  ;;  %v4694_v18 = vld [vmem:[#allocation31_spill] sm:$0xff]  ;;  %v4695_v12 = vld [vmem:[#allocation32_spill] sm:$0xff] }
0x187e   :  { %2722 = vmatprep.subr.mxu0 %v4692_v8  ;;  %2754 = vmatprep.mubr.msk.f32.mxu0 %vm2918_vm0, %v4692_v8  ;;  %v4696_v16 = vld [vmem:[#allocation33_spill] sm:$0xff]  ;;  %v4697_v6 = vld [vmem:[#allocation34_spill] sm:$0xff]  ;;  %v4698_v10 = vld [vmem:[#allocation35_spill] sm:$0xff] }
0x187f   :  { %2723 = vmatpush3.msra.mxu0 %v4693_v22  ;;  %v4699_v0 = vld [vmem:[#allocation36_spill] sm:$0xff]  ;;  %v4700_v7 = vld [vmem:[#allocation37_spill] sm:$0xff]  ;;  %v4701_v30 = vld [vmem:[#allocation38_spill] sm:$0xff] }
0x1880   :  { %2724 = vmatprep.subr.mxu0 %v4692_v8  ;;  %v4702_v24 = vld [vmem:[#allocation39_spill] sm:$0xff]  ;;  %v4703_v26 = vld [vmem:[#allocation40_spill] sm:$0xff]  ;;  %v4704_v23 = vld [vmem:[#allocation41_spill] sm:$0xff] }
0x1881   :  { %v2135_v2 = vld [vmem:[#allocation2 + $0x10] sm:$0xff]  ;;  %2725 = vmatpush3.msra.mxu0 %v4694_v18  ;;  %v2137_v21 = vld [vmem:[#allocation2 + $0x18] sm:$0xff]  ;;  %v4705_v25 = vld [vmem:[#allocation42_spill] sm:$0xff] }
0x1882   :  { %v2337_v13 = vmul.f32 -1.442695, %v2135_v2  ;;  %2726 = vmatprep.subr.mxu0 %v4692_v8  ;;  %v4706_v20 = vld [vmem:[#allocation43_spill] sm:$0xff]  ;;  %v4707_v32 = vld [vmem:[#allocation44_spill] sm:$0xff]  ;;  %v4708_v34 = vld [vmem:[#allocation45_spill] sm:$0xff] }
0x1883   :  { %v2136_v19 = vld [vmem:[#allocation2] sm:$0xff]  ;;  %2727 = vmatpush3.msra.mxu0 %v4695_v12  ;;  %v2138_v14 = vld [vmem:[#allocation2 + $0x8] sm:$0xff] }
0x1884   :  { %v2338_v5 = vmul.f32 -1.442695, %v2136_v19  ;;  %2886 = vpow2.f32 %v2337_v13  ;;  %2728 = vmatprep.subr.mxu0 %v4692_v8  ;;  %v2339_v17 = vmul.f32 -1.442695, %v2138_v14 }
0x1885   :  { %2729 = vmatpush3.msra.mxu0 %v4696_v16 }
0x1886   :  { %2888 = vpow2.f32 %v2338_v5  ;;  %2730 = vmatprep.subr.mxu0 %v4692_v8 }
0x1887   :  { %2731 = vmatpush3.msra.mxu0 %v4697_v6  ;;  %2890 = vpow2.f32 %v2339_v17 }
0x1888   :  { %2732 = vmatprep.subr.mxu0 %v4692_v8  ;;  %2892 = vtanh.f32 %v2137_v21 }
0x1889   :  { %2733 = vmatpush3.msra.mxu0 %v4698_v10 }
0x188a   :  { %2734 = vmatprep.subr.mxu0 %v4692_v8 }
0x188b   :  { %2735 = vmatpush3.msra.mxu0 %v4699_v0 }
0x188c   :  { %2736 = vmatprep.subr.mxu0 %v4692_v8 }
0x188d   :  { %2737 = vmatpush3.msra.mxu0 %v4700_v7 }
0x188e   :  { %2738 = vmatprep.subr.mxu0 %v4692_v8 }
0x188f   :  { %2739 = vmatpush3.msra.mxu0 %v4701_v30 }
0x1890   :  { %2740 = vmatprep.subr.mxu0 %v4692_v8 }
0x1891   :  { %v2887_v11 = vpop.eup %2886  ;;  %2741 = vmatpush3.msra.mxu0 %v4702_v24 }
0x1892   :  { %v2142_v27 = vadd.f32 1.0, %v2887_v11  ;;  %2742 = vmatprep.subr.mxu0 %v4692_v8 }
0x1893   :  { %v2889_v28 = vpop.eup %2888  ;;  %2743 = vmatpush3.msra.mxu0 %v4703_v26 }
0x1894   :  { %v2148_v29 = vadd.f32 1.0, %v2889_v28  ;;  %2894 = vrcp.f32 %v2142_v27  ;;  %2744 = vmatprep.subr.mxu0 %v4692_v8  ;;  %v2891_v31 = vpop.eup %2890 }
0x1895   :  { %2745 = vmatpush3.msra.mxu0 %v4704_v23  ;;  %v2893_v33 = vpop.eup %2892  ;;  %v2155_v36 = vadd.f32 1.0, %v2891_v31 }
0x1896   :  { %2896 = vrcp.f32 %v2148_v29  ;;  %2746 = vmatprep.subr.mxu0 %v4692_v8 }
0x1897   :  { %2747 = vmatpush3.msra.mxu0 %v4705_v25  ;;  %2898 = vrcp.f32 %v2155_v36 }
0x1898   :  { %2748 = vmatprep.subr.mxu0 %v4692_v8 }
0x1899   :  { %2749 = vmatpush3.msra.mxu0 %v4706_v20 }
0x189a   :  { %2750 = vmatprep.subr.mxu0 %v4692_v8 }
0x189b   :  { %2751 = vmatpush3.msra.mxu0 %v4707_v32 }
0x189c   :  { %2752 = vmatprep.subr.mxu0 %v4692_v8 }
0x189d   :  { %2753 = vmatpush3.msra.mxu0 %v4708_v34 }
0x18a1   :  { %v2895_v35 = vpop.eup %2894 }
0x18a2   :  { %v2159_v38 = vmul.f32 %v2895_v35, %v2893_v33 }
0x18a3   :  { %v2897_v37 = vpop.eup %2896 }
0x18a4   :  { %v2158_v39 = vmul.f32 %v2897_v37, %v3447_v1  ;;  %v2899_v41 = vpop.eup %2898 }
0x18a6   :  { %v2160_v40 = vadd.f32 %v2159_v38, %v2158_v39 }
0x18a8   :  { %2900 = vtanh.f32 %v2160_v40 }
0x18b5   :  { %v2901_v42 = vpop.eup %2900 }
0x18b6   :  { %v2162_v43 = vmul.f32 %v2901_v42, %v2899_v41 }
0x18b8   :  { %2755 = vmatmul.mubr.f32.vlgmr.msra.gmra.mxu0 %v2162_v43 }
0x1978   :  { %v2229_v44 = vpop.f32.mrf.mxu0 }
0x1979   :  { %v2230_v45 = vadd.f32 %v3453_v4, %v2229_v44 }
0x197a   :  { %v2756_v46 = vpop.f32.mrf.mxu0 }
0x197b   :  { %2340 = vst [vmem:[%s4348_s7 + $0x38] sm:$0xff] %v2230_v45 }
0x197c   :  { %2239 = vsyncpa [#allocation4], 1 }

</bundles_post_ra>
